<compile_context>
chip_gen: v5e
topology: v5e:2x2
jax: 0.10.0
libtpu: 0.0.40
codegen_flags: <defaults>
</compile_context>

<pallas_src>
import jax
import jax.numpy as jnp
from jax import lax
from jax.experimental import pallas as pl
from jax.experimental.pallas import tpu as pltpu


C_OUT = 28                  # conv output channels
PDIM = 13                   # pooled spatial size (13 x 13)
POOLED = PDIM * PDIM        # 169
FEAT = C_OUT * POOLED       # 4732  (PyTorch fc1 input size)
HID = 128
N_CLS = 10

K_TAPS = 9                  # 3x3 conv taps
K_GRP = PDIM * K_TAPS       # 117  patch columns per (quadrant, pooled-row)
K_PAD = 128                 # padded to one lane tile
SLAB = PDIM * C_OUT         # 364  conv-output columns per pooled-row group
SLAB_PAD = 384              # padded to 3 lane tiles (aligned scratch stores)
FEAT_PAD = PDIM * SLAB_PAD  # 4992 padded fc1 input width
OUT_PAD = 128               # lane-dense logits block (sliced to 10 outside)


def _ceil_to(x, m):
    return ((x + m - 1) // m) * m


# ---------------------------------------------------------------------------
# Fused kernel: conv(1->28,k=3) + ReLU + maxpool(2,2) + fc1 + ReLU + fc2
# for one batch tile of TB images.
#
#   patches_ref : (4, 13, TB, 128) bf16
#       [q, r, b, pc*9 + t] = pixel feeding conv tap t at pooled position
#       (row r, col pc) of pooling quadrant q (cols 117..127 are zero).
#   wblk_ref    : (128, 384) bf16 block-diagonal conv weight,
#       [pc*9 + t, pc*28 + c] = wconv[c, t]  (all other entries zero).
#   => dot(patches[q, r], wblk) is the pre-bias conv output (TB, 364) for
#      quadrant q of pooled row r, already batch-major.  Quadrant max is the
#      maxpool; bias + ReLU are applied after the max (valid: shared bias,
#      ReLU monotone).  Slabs land in feat_ref (TB, 4992); w1 was permuted at
#      init to this (pr, pc, c) feature order, so fc1 is a single big dot.
# ---------------------------------------------------------------------------
def fused_mnist_kernel(patches_ref, wblk_ref, bcv_ref, w1_ref, b1_ref,
                       w2_ref, b2_ref, out_ref, feat_ref):
    wblk = wblk_ref[...]                           # (128, 384) bf16
    bcv = bcv_ref[...]                             # (1, 384)   f32

    # conv + ReLU + maxpool, one pooled-row group (13 positions) at a time
    for r in range(PDIM):                          # unrolled: 4*13 = 52 dots
        m = jnp.dot(patches_ref[0, r], wblk,
                    preferred_element_type=jnp.float32)          # (TB, 384)
        for q in range(1, 4):
            m = jnp.maximum(
                m, jnp.dot(patches_ref[q, r], wblk,
                           preferred_element_type=jnp.float32))
        slab = jnp.maximum(m + bcv, 0.0)           # bias + ReLU after the max
        feat_ref[:, r * SLAB_PAD:(r + 1) * SLAB_PAD] = slab.astype(feat_ref.dtype)

    # fc1 + ReLU + fc2 (lane-dense padded output, sliced to 10 in wrapper)
    h = jnp.dot(feat_ref[...], w1_ref[...],
                preferred_element_type=jnp.float32) + b1_ref[...]
    h = jnp.maximum(h, 0.0).astype(jnp.bfloat16)
    out_ref[...] = (jnp.dot(h, w2_ref[...],
                            preferred_element_type=jnp.float32) + b2_ref[...])


# ---------------------------------------------------------------------------
# Wrapper glue
# ---------------------------------------------------------------------------
def _pick_tile(batch):
    b8 = _ceil_to(batch, 8)
    if b8 <= 8:
        return b8
    if b8 <= 512:
        return _ceil_to(b8 // 2, 8)   # >= 2 grid steps (both v7x TensorCores)
    return 256                        # fills the 256-row MXU on v6e/v7x


def _build_patches(img):
    """img: (B, 28, 28) bf16 -> (4, 13, B, 128) bf16 grouped im2col patches."""
    b = img.shape[0]
    quads = []
    for pi in range(2):
        for pj in range(2):
            taps = []
            for di in range(3):
                for dj in range(3):
                    taps.append(img[:, pi + di:pi + di + 26:2,
                                    pj + dj:pj + dj + 26:2])     # (B, 13, 13)
            t = jnp.stack(taps, axis=-1)                         # (B,13,13,9)
            t = jnp.transpose(t, (1, 0, 2, 3)).reshape(PDIM, b, K_GRP)
            quads.append(t)
    patches = jnp.stack(quads, axis=0)                           # (4,13,B,117)
    return jnp.pad(patches, ((0, 0), (0, 0), (0, 0), (0, K_PAD - K_GRP)))


def mnist_forward(x, params, *, tile=None):
    """x: (B, 1, 28, 28) float32 NCHW -> logits (B, 10)."""
    wblk, bcv, w1p, b1r, w2p, b2r = params
    B = x.shape[0]
    TB = tile or _pick_tile(B)
    B_pad = _ceil_to(B, TB)

    img = x[:, 0].astype(jnp.bfloat16)     # bf16 glue: halve im2col traffic
    if B_pad != B:
        img = jnp.pad(img, ((0, B_pad - B), (0, 0), (0, 0)))
    patches = _build_patches(img)          # (4, 13, B_pad, 128) bf16

    grid = (B_pad // TB,)
    logits = pl.pallas_call(
        fused_mnist_kernel,
        out_shape=jax.ShapeDtypeStruct((B_pad, OUT_PAD), jnp.float32),
        grid=grid,
        in_specs=[
            pl.BlockSpec((4, PDIM, TB, K_PAD), lambda n: (0, 0, n, 0)),
            pl.BlockSpec((K_PAD, SLAB_PAD), lambda n: (0, 0)),
            pl.BlockSpec((1, SLAB_PAD), lambda n: (0, 0)),
            pl.BlockSpec((FEAT_PAD, HID), lambda n: (0, 0)),
            pl.BlockSpec((1, HID), lambda n: (0, 0)),
            pl.BlockSpec((HID, OUT_PAD), lambda n: (0, 0)),
            pl.BlockSpec((1, OUT_PAD), lambda n: (0, 0)),
        ],
        out_specs=pl.BlockSpec((TB, OUT_PAD), lambda n: (n, 0)),
        scratch_shapes=[pltpu.VMEM((TB, FEAT_PAD), jnp.bfloat16)],
        compiler_params=pltpu.CompilerParams(
            dimension_semantics=("parallel",)),
    )(patches, wblk, bcv, w1p, b1r, w2p, b2r)

    return logits[:B, :N_CLS]


def init_params(key):
    k = jax.random.split(key, 6)
    wconv = jax.random.normal(k[0], (C_OUT, 1, 3, 3), jnp.float32) * 0.1
    bconv = jax.random.normal(k[1], (C_OUT,), jnp.float32) * 0.1
    w1 = jax.random.normal(k[2], (HID, FEAT), jnp.float32) * 0.01
    b1 = jax.random.normal(k[3], (HID,), jnp.float32) * 0.01
    w2 = jax.random.normal(k[4], (N_CLS, HID), jnp.float32) * 0.1
    b2 = jax.random.normal(k[5], (N_CLS,), jnp.float32) * 0.1

    # ---- kernel-side layouts (all permutation/padding done here: free) ----
    wc9 = wconv.reshape(C_OUT, K_TAPS)                           # [c, t]
    # block-diagonal conv weight: [pc*9 + t, pc*28 + c] = wconv[c, t]
    blk = jnp.einsum('pq,tc->ptqc', jnp.eye(PDIM, dtype=jnp.float32), wc9.T)
    wblk = jnp.pad(blk.reshape(K_GRP, SLAB),
                   ((0, K_PAD - K_GRP),
                    (0, SLAB_PAD - SLAB))).astype(jnp.bfloat16)  # (128, 384)
    bcv = jnp.pad(jnp.tile(bconv, PDIM),
                  (0, SLAB_PAD - SLAB)).reshape(1, SLAB_PAD)     # (1, 384) f32

    # fc1 weight permuted to the fused kernel's (pr, pc, c) feature order
    w1p = jnp.transpose(w1.reshape(HID, C_OUT, PDIM, PDIM), (2, 3, 1, 0))
    w1p = jnp.pad(w1p.reshape(PDIM, SLAB, HID),
                  ((0, 0), (0, SLAB_PAD - SLAB), (0, 0)))
    w1p = w1p.reshape(FEAT_PAD, HID).astype(jnp.bfloat16)        # (4992, 128)
    b1r = b1.reshape(1, HID)

    # fc2 padded to a lane-dense 128-wide output
    w2p = jnp.pad(w2.T, ((0, 0), (0, OUT_PAD - N_CLS))).astype(jnp.bfloat16)
    b2r = jnp.pad(b2, (0, OUT_PAD - N_CLS)).reshape(1, OUT_PAD)

    torch_params = (wconv, bconv, w1, b1, w2, b2)
    kernel_params = (wblk, bcv, w1p, b1r, w2p, b2r)
    return torch_params, kernel_params


def reference_forward(x, torch_params):
    """Pure-JAX f32 reference with PyTorch semantics (sanity check)."""
    wconv, bconv, w1, b1, w2, b2 = torch_params
    conv = lax.conv_general_dilated(
        x, wconv, window_strides=(1, 1), padding="VALID",
        dimension_numbers=("NCHW", "OIHW", "NCHW")) + bconv[None, :, None, None]
    act = jnp.maximum(conv, 0.0)
    pooled = lax.reduce_window(act, -jnp.inf, lax.max,
                               (1, 1, 2, 2), (1, 1, 2, 2), "VALID")
    flat = pooled.reshape(x.shape[0], -1)
    h = jnp.maximum(flat @ w1.T + b1, 0.0)
    return h @ w2.T + b2


if __name__ == "__main__":
    key = jax.random.PRNGKey(0)
    kx, kp = jax.random.split(key)
    torch_params, kernel_params = init_params(kp)

    # MNIST-shaped input (fc1 fixes spatial size to 28x28, C=1); small batch.
    x = jax.random.normal(kx, (2, 1, 28, 28), jnp.float32)

    fwd = jax.jit(mnist_forward)
    logits = jax.block_until_ready(fwd(x, kernel_params))
    assert logits.shape == (2, N_CLS), logits.shape

    ref = jax.block_until_ready(reference_forward(x, torch_params))
    max_err = float(jnp.max(jnp.abs(logits - ref)))
    assert jnp.allclose(logits, ref, atol=5e-2, rtol=5e-2), (
        f"mismatch vs reference: max abs err {max_err}")

    print("KERNEL_OK")
</pallas_src>

<mosaic_0001>
module attributes {stable_mosaic.version = 11 : i64} {
  func.func @fused_mnist_kernel(%arg0: i32, %arg1: memref<4x13x8x128xbf16, #tpu.memory_space<vmem>>, %arg2: memref<128x384xbf16, #tpu.memory_space<vmem>>, %arg3: memref<1x384xf32, #tpu.memory_space<vmem>>, %arg4: memref<4992x128xbf16, #tpu.memory_space<vmem>>, %arg5: memref<1x128xf32, #tpu.memory_space<vmem>>, %arg6: memref<128x128xbf16, #tpu.memory_space<vmem>>, %arg7: memref<1x128xf32, #tpu.memory_space<vmem>>, %arg8: memref<8x128xf32, #tpu.memory_space<vmem>>, %arg9: memref<8x4992xbf16, #tpu.memory_space<vmem>>) attributes {dimension_semantics = [#tpu.dimension_semantics<parallel>], iteration_bounds = array<i64: 1>, scalar_prefetch = 0 : i64, scratch_operands = 1 : i64, tpu.core_type = #tpu.core_type<tc>, window_params = [{transform_indices = @transform_0, window_bounds = array<i64: 4, 13, 8, 128>}, {pipeline_mode = #tpu.pipeline_mode<synchronous>, transform_indices = @transform_1, window_bounds = array<i64: 128, 384>}, {pipeline_mode = #tpu.pipeline_mode<synchronous>, transform_indices = @transform_2, window_bounds = array<i64: 1, 384>}, {pipeline_mode = #tpu.pipeline_mode<synchronous>, transform_indices = @transform_3, window_bounds = array<i64: 4992, 128>}, {pipeline_mode = #tpu.pipeline_mode<synchronous>, transform_indices = @transform_4, window_bounds = array<i64: 1, 128>}, {pipeline_mode = #tpu.pipeline_mode<synchronous>, transform_indices = @transform_5, window_bounds = array<i64: 128, 128>}, {pipeline_mode = #tpu.pipeline_mode<synchronous>, transform_indices = @transform_6, window_bounds = array<i64: 1, 128>}, {transform_indices = @transform_7, window_bounds = array<i64: 8, 128>}]} {
    %c0 = arith.constant 0 : index
    %c0_0 = arith.constant 0 : index
    %0 = vector.load %arg2[%c0, %c0_0] : memref<128x384xbf16, #tpu.memory_space<vmem>>, vector<128x384xbf16>
    %c0_1 = arith.constant 0 : index
    %c0_2 = arith.constant 0 : index
    %1 = vector.load %arg3[%c0_1, %c0_2] : memref<1x384xf32, #tpu.memory_space<vmem>>, vector<1x384xf32>
    %c0_3 = arith.constant 0 : index
    %c0_4 = arith.constant 0 : index
    %c0_5 = arith.constant 0 : index
    %c0_6 = arith.constant 0 : index
    %2 = vector.load %arg1[%c0_3, %c0_4, %c0_5, %c0_6] : memref<4x13x8x128xbf16, #tpu.memory_space<vmem>>, vector<1x1x8x128xbf16>
    %3 = vector.shape_cast %2 : vector<1x1x8x128xbf16> to vector<8x128xbf16>
    %cst = arith.constant dense<0.000000e+00> : vector<8x384xf32>
    %4 = tpu.matmul %3, %0, %cst {dimension_numbers = #tpu.dot_dimension_numbers<[1], [0], [0], [1], [0, 0, 1, 1], [], []>} : vector<8x128xbf16>, vector<128x384xbf16>, vector<8x384xf32> -> vector<8x384xf32>
    %c1 = arith.constant 1 : index
    %c0_7 = arith.constant 0 : index
    %c0_8 = arith.constant 0 : index
    %c0_9 = arith.constant 0 : index
    %5 = vector.load %arg1[%c1, %c0_7, %c0_8, %c0_9] : memref<4x13x8x128xbf16, #tpu.memory_space<vmem>>, vector<1x1x8x128xbf16>
    %6 = vector.shape_cast %5 : vector<1x1x8x128xbf16> to vector<8x128xbf16>
    %cst_10 = arith.constant dense<0.000000e+00> : vector<8x384xf32>
    %7 = tpu.matmul %6, %0, %cst_10 {dimension_numbers = #tpu.dot_dimension_numbers<[1], [0], [0], [1], [0, 0, 1, 1], [], []>} : vector<8x128xbf16>, vector<128x384xbf16>, vector<8x384xf32> -> vector<8x384xf32>
    %8 = arith.maximumf %4, %7 : vector<8x384xf32>
    %c2 = arith.constant 2 : index
    %c0_11 = arith.constant 0 : index
    %c0_12 = arith.constant 0 : index
    %c0_13 = arith.constant 0 : index
    %9 = vector.load %arg1[%c2, %c0_11, %c0_12, %c0_13] : memref<4x13x8x128xbf16, #tpu.memory_space<vmem>>, vector<1x1x8x128xbf16>
    %10 = vector.shape_cast %9 : vector<1x1x8x128xbf16> to vector<8x128xbf16>
    %cst_14 = arith.constant dense<0.000000e+00> : vector<8x384xf32>
    %11 = tpu.matmul %10, %0, %cst_14 {dimension_numbers = #tpu.dot_dimension_numbers<[1], [0], [0], [1], [0, 0, 1, 1], [], []>} : vector<8x128xbf16>, vector<128x384xbf16>, vector<8x384xf32> -> vector<8x384xf32>
    %12 = arith.maximumf %8, %11 : vector<8x384xf32>
    %c3 = arith.constant 3 : index
    %c0_15 = arith.constant 0 : index
    %c0_16 = arith.constant 0 : index
    %c0_17 = arith.constant 0 : index
    %13 = vector.load %arg1[%c3, %c0_15, %c0_16, %c0_17] : memref<4x13x8x128xbf16, #tpu.memory_space<vmem>>, vector<1x1x8x128xbf16>
    %14 = vector.shape_cast %13 : vector<1x1x8x128xbf16> to vector<8x128xbf16>
    %cst_18 = arith.constant dense<0.000000e+00> : vector<8x384xf32>
    %15 = tpu.matmul %14, %0, %cst_18 {dimension_numbers = #tpu.dot_dimension_numbers<[1], [0], [0], [1], [0, 0, 1, 1], [], []>} : vector<8x128xbf16>, vector<128x384xbf16>, vector<8x384xf32> -> vector<8x384xf32>
    %16 = arith.maximumf %12, %15 : vector<8x384xf32>
    %17 = vector.broadcast %1 : vector<1x384xf32> to vector<8x384xf32>
    %18 = arith.addf %16, %17 : vector<8x384xf32>
    %cst_19 = arith.constant 0.000000e+00 : f32
    %19 = vector.broadcast %cst_19 : f32 to vector<8x384xf32>
    %20 = arith.maximumf %18, %19 : vector<8x384xf32>
    %21 = arith.truncf %20 : vector<8x384xf32> to vector<8x384xbf16>
    %c0_20 = arith.constant 0 : index
    %c0_21 = arith.constant 0 : index
    %22 = vector.load %arg9[%c0_20, %c0_21] : memref<8x4992xbf16, #tpu.memory_space<vmem>>, vector<8x384xbf16>
    tpu.vector_store %arg9[%c0_20, %c0_21], %21 {strides = array<i32>} : memref<8x4992xbf16, #tpu.memory_space<vmem>>, vector<8x384xbf16>,
    %c0_22 = arith.constant 0 : index
    %c1_23 = arith.constant 1 : index
    %c0_24 = arith.constant 0 : index
    %c0_25 = arith.constant 0 : index
    %23 = vector.load %arg1[%c0_22, %c1_23, %c0_24, %c0_25] : memref<4x13x8x128xbf16, #tpu.memory_space<vmem>>, vector<1x1x8x128xbf16>
    %24 = vector.shape_cast %23 : vector<1x1x8x128xbf16> to vector<8x128xbf16>
    %cst_26 = arith.constant dense<0.000000e+00> : vector<8x384xf32>
    %25 = tpu.matmul %24, %0, %cst_26 {dimension_numbers = #tpu.dot_dimension_numbers<[1], [0], [0], [1], [0, 0, 1, 1], [], []>} : vector<8x128xbf16>, vector<128x384xbf16>, vector<8x384xf32> -> vector<8x384xf32>
    %c1_27 = arith.constant 1 : index
    %c1_28 = arith.constant 1 : index
    %c0_29 = arith.constant 0 : index
    %c0_30 = arith.constant 0 : index
    %26 = vector.load %arg1[%c1_27, %c1_28, %c0_29, %c0_30] : memref<4x13x8x128xbf16, #tpu.memory_space<vmem>>, vector<1x1x8x128xbf16>
    %27 = vector.shape_cast %26 : vector<1x1x8x128xbf16> to vector<8x128xbf16>
    %cst_31 = arith.constant dense<0.000000e+00> : vector<8x384xf32>
    %28 = tpu.matmul %27, %0, %cst_31 {dimension_numbers = #tpu.dot_dimension_numbers<[1], [0], [0], [1], [0, 0, 1, 1], [], []>} : vector<8x128xbf16>, vector<128x384xbf16>, vector<8x384xf32> -> vector<8x384xf32>
    %29 = arith.maximumf %25, %28 : vector<8x384xf32>
    %c2_32 = arith.constant 2 : index
    %c1_33 = arith.constant 1 : index
    %c0_34 = arith.constant 0 : index
    %c0_35 = arith.constant 0 : index
    %30 = vector.load %arg1[%c2_32, %c1_33, %c0_34, %c0_35] : memref<4x13x8x128xbf16, #tpu.memory_space<vmem>>, vector<1x1x8x128xbf16>
    %31 = vector.shape_cast %30 : vector<1x1x8x128xbf16> to vector<8x128xbf16>
    %cst_36 = arith.constant dense<0.000000e+00> : vector<8x384xf32>
    %32 = tpu.matmul %31, %0, %cst_36 {dimension_numbers = #tpu.dot_dimension_numbers<[1], [0], [0], [1], [0, 0, 1, 1], [], []>} : vector<8x128xbf16>, vector<128x384xbf16>, vector<8x384xf32> -> vector<8x384xf32>
    %33 = arith.maximumf %29, %32 : vector<8x384xf32>
    %c3_37 = arith.constant 3 : index
    %c1_38 = arith.constant 1 : index
    %c0_39 = arith.constant 0 : index
    %c0_40 = arith.constant 0 : index
    %34 = vector.load %arg1[%c3_37, %c1_38, %c0_39, %c0_40] : memref<4x13x8x128xbf16, #tpu.memory_space<vmem>>, vector<1x1x8x128xbf16>
    %35 = vector.shape_cast %34 : vector<1x1x8x128xbf16> to vector<8x128xbf16>
    %cst_41 = arith.constant dense<0.000000e+00> : vector<8x384xf32>
    %36 = tpu.matmul %35, %0, %cst_41 {dimension_numbers = #tpu.dot_dimension_numbers<[1], [0], [0], [1], [0, 0, 1, 1], [], []>} : vector<8x128xbf16>, vector<128x384xbf16>, vector<8x384xf32> -> vector<8x384xf32>
    %37 = arith.maximumf %33, %36 : vector<8x384xf32>
    %38 = vector.broadcast %1 : vector<1x384xf32> to vector<8x384xf32>
    %39 = arith.addf %37, %38 : vector<8x384xf32>
    %cst_42 = arith.constant 0.000000e+00 : f32
    %40 = vector.broadcast %cst_42 : f32 to vector<8x384xf32>
    %41 = arith.maximumf %39, %40 : vector<8x384xf32>
    %42 = arith.truncf %41 : vector<8x384xf32> to vector<8x384xbf16>
    %c0_43 = arith.constant 0 : index
    %c384 = arith.constant 384 : index
    %43 = vector.load %arg9[%c0_43, %c384] : memref<8x4992xbf16, #tpu.memory_space<vmem>>, vector<8x384xbf16>
    tpu.vector_store %arg9[%c0_43, %c384], %42 {strides = array<i32>} : memref<8x4992xbf16, #tpu.memory_space<vmem>>, vector<8x384xbf16>,
    %c0_44 = arith.constant 0 : index
    %c2_45 = arith.constant 2 : index
    %c0_46 = arith.constant 0 : index
    %c0_47 = arith.constant 0 : index
    %44 = vector.load %arg1[%c0_44, %c2_45, %c0_46, %c0_47] : memref<4x13x8x128xbf16, #tpu.memory_space<vmem>>, vector<1x1x8x128xbf16>
    %45 = vector.shape_cast %44 : vector<1x1x8x128xbf16> to vector<8x128xbf16>
    %cst_48 = arith.constant dense<0.000000e+00> : vector<8x384xf32>
    %46 = tpu.matmul %45, %0, %cst_48 {dimension_numbers = #tpu.dot_dimension_numbers<[1], [0], [0], [1], [0, 0, 1, 1], [], []>} : vector<8x128xbf16>, vector<128x384xbf16>, vector<8x384xf32> -> vector<8x384xf32>
    %c1_49 = arith.constant 1 : index
    %c2_50 = arith.constant 2 : index
    %c0_51 = arith.constant 0 : index
    %c0_52 = arith.constant 0 : index
    %47 = vector.load %arg1[%c1_49, %c2_50, %c0_51, %c0_52] : memref<4x13x8x128xbf16, #tpu.memory_space<vmem>>, vector<1x1x8x128xbf16>
    %48 = vector.shape_cast %47 : vector<1x1x8x128xbf16> to vector<8x128xbf16>
    %cst_53 = arith.constant dense<0.000000e+00> : vector<8x384xf32>
    %49 = tpu.matmul %48, %0, %cst_53 {dimension_numbers = #tpu.dot_dimension_numbers<[1], [0], [0], [1], [0, 0, 1, 1], [], []>} : vector<8x128xbf16>, vector<128x384xbf16>, vector<8x384xf32> -> vector<8x384xf32>
    %50 = arith.maximumf %46, %49 : vector<8x384xf32>
    %c2_54 = arith.constant 2 : index
    %c2_55 = arith.constant 2 : index
    %c0_56 = arith.constant 0 : index
    %c0_57 = arith.constant 0 : index
    %51 = vector.load %arg1[%c2_54, %c2_55, %c0_56, %c0_57] : memref<4x13x8x128xbf16, #tpu.memory_space<vmem>>, vector<1x1x8x128xbf16>
    %52 = vector.shape_cast %51 : vector<1x1x8x128xbf16> to vector<8x128xbf16>
    %cst_58 = arith.constant dense<0.000000e+00> : vector<8x384xf32>
    %53 = tpu.matmul %52, %0, %cst_58 {dimension_numbers = #tpu.dot_dimension_numbers<[1], [0], [0], [1], [0, 0, 1, 1], [], []>} : vector<8x128xbf16>, vector<128x384xbf16>, vector<8x384xf32> -> vector<8x384xf32>
    %54 = arith.maximumf %50, %53 : vector<8x384xf32>
    %c3_59 = arith.constant 3 : index
    %c2_60 = arith.constant 2 : index
    %c0_61 = arith.constant 0 : index
    %c0_62 = arith.constant 0 : index
    %55 = vector.load %arg1[%c3_59, %c2_60, %c0_61, %c0_62] : memref<4x13x8x128xbf16, #tpu.memory_space<vmem>>, vector<1x1x8x128xbf16>
    %56 = vector.shape_cast %55 : vector<1x1x8x128xbf16> to vector<8x128xbf16>
    %cst_63 = arith.constant dense<0.000000e+00> : vector<8x384xf32>
    %57 = tpu.matmul %56, %0, %cst_63 {dimension_numbers = #tpu.dot_dimension_numbers<[1], [0], [0], [1], [0, 0, 1, 1], [], []>} : vector<8x128xbf16>, vector<128x384xbf16>, vector<8x384xf32> -> vector<8x384xf32>
    %58 = arith.maximumf %54, %57 : vector<8x384xf32>
    %59 = vector.broadcast %1 : vector<1x384xf32> to vector<8x384xf32>
    %60 = arith.addf %58, %59 : vector<8x384xf32>
    %cst_64 = arith.constant 0.000000e+00 : f32
    %61 = vector.broadcast %cst_64 : f32 to vector<8x384xf32>
    %62 = arith.maximumf %60, %61 : vector<8x384xf32>
    %63 = arith.truncf %62 : vector<8x384xf32> to vector<8x384xbf16>
    %c0_65 = arith.constant 0 : index
    %c768 = arith.constant 768 : index
    %64 = vector.load %arg9[%c0_65, %c768] : memref<8x4992xbf16, #tpu.memory_space<vmem>>, vector<8x384xbf16>
    tpu.vector_store %arg9[%c0_65, %c768], %63 {strides = array<i32>} : memref<8x4992xbf16, #tpu.memory_space<vmem>>, vector<8x384xbf16>,
    %c0_66 = arith.constant 0 : index
    %c3_67 = arith.constant 3 : index
    %c0_68 = arith.constant 0 : index
    %c0_69 = arith.constant 0 : index
    %65 = vector.load %arg1[%c0_66, %c3_67, %c0_68, %c0_69] : memref<4x13x8x128xbf16, #tpu.memory_space<vmem>>, vector<1x1x8x128xbf16>
    %66 = vector.shape_cast %65 : vector<1x1x8x128xbf16> to vector<8x128xbf16>
    %cst_70 = arith.constant dense<0.000000e+00> : vector<8x384xf32>
    %67 = tpu.matmul %66, %0, %cst_70 {dimension_numbers = #tpu.dot_dimension_numbers<[1], [0], [0], [1], [0, 0, 1, 1], [], []>} : vector<8x128xbf16>, vector<128x384xbf16>, vector<8x384xf32> -> vector<8x384xf32>
    %c1_71 = arith.constant 1 : index
    %c3_72 = arith.constant 3 : index
    %c0_73 = arith.constant 0 : index
    %c0_74 = arith.constant 0 : index
    %68 = vector.load %arg1[%c1_71, %c3_72, %c0_73, %c0_74] : memref<4x13x8x128xbf16, #tpu.memory_space<vmem>>, vector<1x1x8x128xbf16>
    %69 = vector.shape_cast %68 : vector<1x1x8x128xbf16> to vector<8x128xbf16>
    %cst_75 = arith.constant dense<0.000000e+00> : vector<8x384xf32>
    %70 = tpu.matmul %69, %0, %cst_75 {dimension_numbers = #tpu.dot_dimension_numbers<[1], [0], [0], [1], [0, 0, 1, 1], [], []>} : vector<8x128xbf16>, vector<128x384xbf16>, vector<8x384xf32> -> vector<8x384xf32>
    %71 = arith.maximumf %67, %70 : vector<8x384xf32>
    %c2_76 = arith.constant 2 : index
    %c3_77 = arith.constant 3 : index
    %c0_78 = arith.constant 0 : index
    %c0_79 = arith.constant 0 : index
    %72 = vector.load %arg1[%c2_76, %c3_77, %c0_78, %c0_79] : memref<4x13x8x128xbf16, #tpu.memory_space<vmem>>, vector<1x1x8x128xbf16>
    %73 = vector.shape_cast %72 : vector<1x1x8x128xbf16> to vector<8x128xbf16>
    %cst_80 = arith.constant dense<0.000000e+00> : vector<8x384xf32>
    %74 = tpu.matmul %73, %0, %cst_80 {dimension_numbers = #tpu.dot_dimension_numbers<[1], [0], [0], [1], [0, 0, 1, 1], [], []>} : vector<8x128xbf16>, vector<128x384xbf16>, vector<8x384xf32> -> vector<8x384xf32>
    %75 = arith.maximumf %71, %74 : vector<8x384xf32>
    %c3_81 = arith.constant 3 : index
    %c3_82 = arith.constant 3 : index
    %c0_83 = arith.constant 0 : index
    %c0_84 = arith.constant 0 : index
    %76 = vector.load %arg1[%c3_81, %c3_82, %c0_83, %c0_84] : memref<4x13x8x128xbf16, #tpu.memory_space<vmem>>, vector<1x1x8x128xbf16>
    %77 = vector.shape_cast %76 : vector<1x1x8x128xbf16> to vector<8x128xbf16>
    %cst_85 = arith.constant dense<0.000000e+00> : vector<8x384xf32>
    %78 = tpu.matmul %77, %0, %cst_85 {dimension_numbers = #tpu.dot_dimension_numbers<[1], [0], [0], [1], [0, 0, 1, 1], [], []>} : vector<8x128xbf16>, vector<128x384xbf16>, vector<8x384xf32> -> vector<8x384xf32>
    %79 = arith.maximumf %75, %78 : vector<8x384xf32>
    %80 = vector.broadcast %1 : vector<1x384xf32> to vector<8x384xf32>
    %81 = arith.addf %79, %80 : vector<8x384xf32>
    %cst_86 = arith.constant 0.000000e+00 : f32
    %82 = vector.broadcast %cst_86 : f32 to vector<8x384xf32>
    %83 = arith.maximumf %81, %82 : vector<8x384xf32>
    %84 = arith.truncf %83 : vector<8x384xf32> to vector<8x384xbf16>
    %c0_87 = arith.constant 0 : index
    %c1152 = arith.constant 1152 : index
    %85 = vector.load %arg9[%c0_87, %c1152] : memref<8x4992xbf16, #tpu.memory_space<vmem>>, vector<8x384xbf16>
    tpu.vector_store %arg9[%c0_87, %c1152], %84 {strides = array<i32>} : memref<8x4992xbf16, #tpu.memory_space<vmem>>, vector<8x384xbf16>,
    %c0_88 = arith.constant 0 : index
    %c4 = arith.constant 4 : index
    %c0_89 = arith.constant 0 : index
    %c0_90 = arith.constant 0 : index
    %86 = vector.load %arg1[%c0_88, %c4, %c0_89, %c0_90] : memref<4x13x8x128xbf16, #tpu.memory_space<vmem>>, vector<1x1x8x128xbf16>
    %87 = vector.shape_cast %86 : vector<1x1x8x128xbf16> to vector<8x128xbf16>
    %cst_91 = arith.constant dense<0.000000e+00> : vector<8x384xf32>
    %88 = tpu.matmul %87, %0, %cst_91 {dimension_numbers = #tpu.dot_dimension_numbers<[1], [0], [0], [1], [0, 0, 1, 1], [], []>} : vector<8x128xbf16>, vector<128x384xbf16>, vector<8x384xf32> -> vector<8x384xf32>
    %c1_92 = arith.constant 1 : index
    %c4_93 = arith.constant 4 : index
    %c0_94 = arith.constant 0 : index
    %c0_95 = arith.constant 0 : index
    %89 = vector.load %arg1[%c1_92, %c4_93, %c0_94, %c0_95] : memref<4x13x8x128xbf16, #tpu.memory_space<vmem>>, vector<1x1x8x128xbf16>
    %90 = vector.shape_cast %89 : vector<1x1x8x128xbf16> to vector<8x128xbf16>
    %cst_96 = arith.constant dense<0.000000e+00> : vector<8x384xf32>
    %91 = tpu.matmul %90, %0, %cst_96 {dimension_numbers = #tpu.dot_dimension_numbers<[1], [0], [0], [1], [0, 0, 1, 1], [], []>} : vector<8x128xbf16>, vector<128x384xbf16>, vector<8x384xf32> -> vector<8x384xf32>
    %92 = arith.maximumf %88, %91 : vector<8x384xf32>
    %c2_97 = arith.constant 2 : index
    %c4_98 = arith.constant 4 : index
    %c0_99 = arith.constant 0 : index
    %c0_100 = arith.constant 0 : index
    %93 = vector.load %arg1[%c2_97, %c4_98, %c0_99, %c0_100] : memref<4x13x8x128xbf16, #tpu.memory_space<vmem>>, vector<1x1x8x128xbf16>
    %94 = vector.shape_cast %93 : vector<1x1x8x128xbf16> to vector<8x128xbf16>
    %cst_101 = arith.constant dense<0.000000e+00> : vector<8x384xf32>
    %95 = tpu.matmul %94, %0, %cst_101 {dimension_numbers = #tpu.dot_dimension_numbers<[1], [0], [0], [1], [0, 0, 1, 1], [], []>} : vector<8x128xbf16>, vector<128x384xbf16>, vector<8x384xf32> -> vector<8x384xf32>
    %96 = arith.maximumf %92, %95 : vector<8x384xf32>
    %c3_102 = arith.constant 3 : index
    %c4_103 = arith.constant 4 : index
    %c0_104 = arith.constant 0 : index
    %c0_105 = arith.constant 0 : index
    %97 = vector.load %arg1[%c3_102, %c4_103, %c0_104, %c0_105] : memref<4x13x8x128xbf16, #tpu.memory_space<vmem>>, vector<1x1x8x128xbf16>
    %98 = vector.shape_cast %97 : vector<1x1x8x128xbf16> to vector<8x128xbf16>
    %cst_106 = arith.constant dense<0.000000e+00> : vector<8x384xf32>
    %99 = tpu.matmul %98, %0, %cst_106 {dimension_numbers = #tpu.dot_dimension_numbers<[1], [0], [0], [1], [0, 0, 1, 1], [], []>} : vector<8x128xbf16>, vector<128x384xbf16>, vector<8x384xf32> -> vector<8x384xf32>
    %100 = arith.maximumf %96, %99 : vector<8x384xf32>
    %101 = vector.broadcast %1 : vector<1x384xf32> to vector<8x384xf32>
    %102 = arith.addf %100, %101 : vector<8x384xf32>
    %cst_107 = arith.constant 0.000000e+00 : f32
    %103 = vector.broadcast %cst_107 : f32 to vector<8x384xf32>
    %104 = arith.maximumf %102, %103 : vector<8x384xf32>
    %105 = arith.truncf %104 : vector<8x384xf32> to vector<8x384xbf16>
    %c0_108 = arith.constant 0 : index
    %c1536 = arith.constant 1536 : index
    %106 = vector.load %arg9[%c0_108, %c1536] : memref<8x4992xbf16, #tpu.memory_space<vmem>>, vector<8x384xbf16>
    tpu.vector_store %arg9[%c0_108, %c1536], %105 {strides = array<i32>} : memref<8x4992xbf16, #tpu.memory_space<vmem>>, vector<8x384xbf16>,
    %c0_109 = arith.constant 0 : index
    %c5 = arith.constant 5 : index
    %c0_110 = arith.constant 0 : index
    %c0_111 = arith.constant 0 : index
    %107 = vector.load %arg1[%c0_109, %c5, %c0_110, %c0_111] : memref<4x13x8x128xbf16, #tpu.memory_space<vmem>>, vector<1x1x8x128xbf16>
    %108 = vector.shape_cast %107 : vector<1x1x8x128xbf16> to vector<8x128xbf16>
    %cst_112 = arith.constant dense<0.000000e+00> : vector<8x384xf32>
    %109 = tpu.matmul %108, %0, %cst_112 {dimension_numbers = #tpu.dot_dimension_numbers<[1], [0], [0], [1], [0, 0, 1, 1], [], []>} : vector<8x128xbf16>, vector<128x384xbf16>, vector<8x384xf32> -> vector<8x384xf32>
    %c1_113 = arith.constant 1 : index
    %c5_114 = arith.constant 5 : index
    %c0_115 = arith.constant 0 : index
    %c0_116 = arith.constant 0 : index
    %110 = vector.load %arg1[%c1_113, %c5_114, %c0_115, %c0_116] : memref<4x13x8x128xbf16, #tpu.memory_space<vmem>>, vector<1x1x8x128xbf16>
    %111 = vector.shape_cast %110 : vector<1x1x8x128xbf16> to vector<8x128xbf16>
    %cst_117 = arith.constant dense<0.000000e+00> : vector<8x384xf32>
    %112 = tpu.matmul %111, %0, %cst_117 {dimension_numbers = #tpu.dot_dimension_numbers<[1], [0], [0], [1], [0, 0, 1, 1], [], []>} : vector<8x128xbf16>, vector<128x384xbf16>, vector<8x384xf32> -> vector<8x384xf32>
    %113 = arith.maximumf %109, %112 : vector<8x384xf32>
    %c2_118 = arith.constant 2 : index
    %c5_119 = arith.constant 5 : index
    %c0_120 = arith.constant 0 : index
    %c0_121 = arith.constant 0 : index
    %114 = vector.load %arg1[%c2_118, %c5_119, %c0_120, %c0_121] : memref<4x13x8x128xbf16, #tpu.memory_space<vmem>>, vector<1x1x8x128xbf16>
    %115 = vector.shape_cast %114 : vector<1x1x8x128xbf16> to vector<8x128xbf16>
    %cst_122 = arith.constant dense<0.000000e+00> : vector<8x384xf32>
    %116 = tpu.matmul %115, %0, %cst_122 {dimension_numbers = #tpu.dot_dimension_numbers<[1], [0], [0], [1], [0, 0, 1, 1], [], []>} : vector<8x128xbf16>, vector<128x384xbf16>, vector<8x384xf32> -> vector<8x384xf32>
    %117 = arith.maximumf %113, %116 : vector<8x384xf32>
    %c3_123 = arith.constant 3 : index
    %c5_124 = arith.constant 5 : index
    %c0_125 = arith.constant 0 : index
    %c0_126 = arith.constant 0 : index
    %118 = vector.load %arg1[%c3_123, %c5_124, %c0_125, %c0_126] : memref<4x13x8x128xbf16, #tpu.memory_space<vmem>>, vector<1x1x8x128xbf16>
    %119 = vector.shape_cast %118 : vector<1x1x8x128xbf16> to vector<8x128xbf16>
    %cst_127 = arith.constant dense<0.000000e+00> : vector<8x384xf32>
    %120 = tpu.matmul %119, %0, %cst_127 {dimension_numbers = #tpu.dot_dimension_numbers<[1], [0], [0], [1], [0, 0, 1, 1], [], []>} : vector<8x128xbf16>, vector<128x384xbf16>, vector<8x384xf32> -> vector<8x384xf32>
    %121 = arith.maximumf %117, %120 : vector<8x384xf32>
    %122 = vector.broadcast %1 : vector<1x384xf32> to vector<8x384xf32>
    %123 = arith.addf %121, %122 : vector<8x384xf32>
    %cst_128 = arith.constant 0.000000e+00 : f32
    %124 = vector.broadcast %cst_128 : f32 to vector<8x384xf32>
    %125 = arith.maximumf %123, %124 : vector<8x384xf32>
    %126 = arith.truncf %125 : vector<8x384xf32> to vector<8x384xbf16>
    %c0_129 = arith.constant 0 : index
    %c1920 = arith.constant 1920 : index
    %127 = vector.load %arg9[%c0_129, %c1920] : memref<8x4992xbf16, #tpu.memory_space<vmem>>, vector<8x384xbf16>
    tpu.vector_store %arg9[%c0_129, %c1920], %126 {strides = array<i32>} : memref<8x4992xbf16, #tpu.memory_space<vmem>>, vector<8x384xbf16>,
    %c0_130 = arith.constant 0 : index
    %c6 = arith.constant 6 : index
    %c0_131 = arith.constant 0 : index
    %c0_132 = arith.constant 0 : index
    %128 = vector.load %arg1[%c0_130, %c6, %c0_131, %c0_132] : memref<4x13x8x128xbf16, #tpu.memory_space<vmem>>, vector<1x1x8x128xbf16>
    %129 = vector.shape_cast %128 : vector<1x1x8x128xbf16> to vector<8x128xbf16>
    %cst_133 = arith.constant dense<0.000000e+00> : vector<8x384xf32>
    %130 = tpu.matmul %129, %0, %cst_133 {dimension_numbers = #tpu.dot_dimension_numbers<[1], [0], [0], [1], [0, 0, 1, 1], [], []>} : vector<8x128xbf16>, vector<128x384xbf16>, vector<8x384xf32> -> vector<8x384xf32>
    %c1_134 = arith.constant 1 : index
    %c6_135 = arith.constant 6 : index
    %c0_136 = arith.constant 0 : index
    %c0_137 = arith.constant 0 : index
    %131 = vector.load %arg1[%c1_134, %c6_135, %c0_136, %c0_137] : memref<4x13x8x128xbf16, #tpu.memory_space<vmem>>, vector<1x1x8x128xbf16>
    %132 = vector.shape_cast %131 : vector<1x1x8x128xbf16> to vector<8x128xbf16>
    %cst_138 = arith.constant dense<0.000000e+00> : vector<8x384xf32>
    %133 = tpu.matmul %132, %0, %cst_138 {dimension_numbers = #tpu.dot_dimension_numbers<[1], [0], [0], [1], [0, 0, 1, 1], [], []>} : vector<8x128xbf16>, vector<128x384xbf16>, vector<8x384xf32> -> vector<8x384xf32>
    %134 = arith.maximumf %130, %133 : vector<8x384xf32>
    %c2_139 = arith.constant 2 : index
    %c6_140 = arith.constant 6 : index
    %c0_141 = arith.constant 0 : index
    %c0_142 = arith.constant 0 : index
    %135 = vector.load %arg1[%c2_139, %c6_140, %c0_141, %c0_142] : memref<4x13x8x128xbf16, #tpu.memory_space<vmem>>, vector<1x1x8x128xbf16>
    %136 = vector.shape_cast %135 : vector<1x1x8x128xbf16> to vector<8x128xbf16>
    %cst_143 = arith.constant dense<0.000000e+00> : vector<8x384xf32>
    %137 = tpu.matmul %136, %0, %cst_143 {dimension_numbers = #tpu.dot_dimension_numbers<[1], [0], [0], [1], [0, 0, 1, 1], [], []>} : vector<8x128xbf16>, vector<128x384xbf16>, vector<8x384xf32> -> vector<8x384xf32>
    %138 = arith.maximumf %134, %137 : vector<8x384xf32>
    %c3_144 = arith.constant 3 : index
    %c6_145 = arith.constant 6 : index
    %c0_146 = arith.constant 0 : index
    %c0_147 = arith.constant 0 : index
    %139 = vector.load %arg1[%c3_144, %c6_145, %c0_146, %c0_147] : memref<4x13x8x128xbf16, #tpu.memory_space<vmem>>, vector<1x1x8x128xbf16>
    %140 = vector.shape_cast %139 : vector<1x1x8x128xbf16> to vector<8x128xbf16>
    %cst_148 = arith.constant dense<0.000000e+00> : vector<8x384xf32>
    %141 = tpu.matmul %140, %0, %cst_148 {dimension_numbers = #tpu.dot_dimension_numbers<[1], [0], [0], [1], [0, 0, 1, 1], [], []>} : vector<8x128xbf16>, vector<128x384xbf16>, vector<8x384xf32> -> vector<8x384xf32>
    %142 = arith.maximumf %138, %141 : vector<8x384xf32>
    %143 = vector.broadcast %1 : vector<1x384xf32> to vector<8x384xf32>
    %144 = arith.addf %142, %143 : vector<8x384xf32>
    %cst_149 = arith.constant 0.000000e+00 : f32
    %145 = vector.broadcast %cst_149 : f32 to vector<8x384xf32>
    %146 = arith.maximumf %144, %145 : vector<8x384xf32>
    %147 = arith.truncf %146 : vector<8x384xf32> to vector<8x384xbf16>
    %c0_150 = arith.constant 0 : index
    %c2304 = arith.constant 2304 : index
    %148 = vector.load %arg9[%c0_150, %c2304] : memref<8x4992xbf16, #tpu.memory_space<vmem>>, vector<8x384xbf16>
    tpu.vector_store %arg9[%c0_150, %c2304], %147 {strides = array<i32>} : memref<8x4992xbf16, #tpu.memory_space<vmem>>, vector<8x384xbf16>,
    %c0_151 = arith.constant 0 : index
    %c7 = arith.constant 7 : index
    %c0_152 = arith.constant 0 : index
    %c0_153 = arith.constant 0 : index
    %149 = vector.load %arg1[%c0_151, %c7, %c0_152, %c0_153] : memref<4x13x8x128xbf16, #tpu.memory_space<vmem>>, vector<1x1x8x128xbf16>
    %150 = vector.shape_cast %149 : vector<1x1x8x128xbf16> to vector<8x128xbf16>
    %cst_154 = arith.constant dense<0.000000e+00> : vector<8x384xf32>
    %151 = tpu.matmul %150, %0, %cst_154 {dimension_numbers = #tpu.dot_dimension_numbers<[1], [0], [0], [1], [0, 0, 1, 1], [], []>} : vector<8x128xbf16>, vector<128x384xbf16>, vector<8x384xf32> -> vector<8x384xf32>
    %c1_155 = arith.constant 1 : index
    %c7_156 = arith.constant 7 : index
    %c0_157 = arith.constant 0 : index
    %c0_158 = arith.constant 0 : index
    %152 = vector.load %arg1[%c1_155, %c7_156, %c0_157, %c0_158] : memref<4x13x8x128xbf16, #tpu.memory_space<vmem>>, vector<1x1x8x128xbf16>
    %153 = vector.shape_cast %152 : vector<1x1x8x128xbf16> to vector<8x128xbf16>
    %cst_159 = arith.constant dense<0.000000e+00> : vector<8x384xf32>
    %154 = tpu.matmul %153, %0, %cst_159 {dimension_numbers = #tpu.dot_dimension_numbers<[1], [0], [0], [1], [0, 0, 1, 1], [], []>} : vector<8x128xbf16>, vector<128x384xbf16>, vector<8x384xf32> -> vector<8x384xf32>
    %155 = arith.maximumf %151, %154 : vector<8x384xf32>
    %c2_160 = arith.constant 2 : index
    %c7_161 = arith.constant 7 : index
    %c0_162 = arith.constant 0 : index
    %c0_163 = arith.constant 0 : index
    %156 = vector.load %arg1[%c2_160, %c7_161, %c0_162, %c0_163] : memref<4x13x8x128xbf16, #tpu.memory_space<vmem>>, vector<1x1x8x128xbf16>
    %157 = vector.shape_cast %156 : vector<1x1x8x128xbf16> to vector<8x128xbf16>
    %cst_164 = arith.constant dense<0.000000e+00> : vector<8x384xf32>
    %158 = tpu.matmul %157, %0, %cst_164 {dimension_numbers = #tpu.dot_dimension_numbers<[1], [0], [0], [1], [0, 0, 1, 1], [], []>} : vector<8x128xbf16>, vector<128x384xbf16>, vector<8x384xf32> -> vector<8x384xf32>
    %159 = arith.maximumf %155, %158 : vector<8x384xf32>
    %c3_165 = arith.constant 3 : index
    %c7_166 = arith.constant 7 : index
    %c0_167 = arith.constant 0 : index
    %c0_168 = arith.constant 0 : index
    %160 = vector.load %arg1[%c3_165, %c7_166, %c0_167, %c0_168] : memref<4x13x8x128xbf16, #tpu.memory_space<vmem>>, vector<1x1x8x128xbf16>
    %161 = vector.shape_cast %160 : vector<1x1x8x128xbf16> to vector<8x128xbf16>
    %cst_169 = arith.constant dense<0.000000e+00> : vector<8x384xf32>
    %162 = tpu.matmul %161, %0, %cst_169 {dimension_numbers = #tpu.dot_dimension_numbers<[1], [0], [0], [1], [0, 0, 1, 1], [], []>} : vector<8x128xbf16>, vector<128x384xbf16>, vector<8x384xf32> -> vector<8x384xf32>
    %163 = arith.maximumf %159, %162 : vector<8x384xf32>
    %164 = vector.broadcast %1 : vector<1x384xf32> to vector<8x384xf32>
    %165 = arith.addf %163, %164 : vector<8x384xf32>
    %cst_170 = arith.constant 0.000000e+00 : f32
    %166 = vector.broadcast %cst_170 : f32 to vector<8x384xf32>
    %167 = arith.maximumf %165, %166 : vector<8x384xf32>
    %168 = arith.truncf %167 : vector<8x384xf32> to vector<8x384xbf16>
    %c0_171 = arith.constant 0 : index
    %c2688 = arith.constant 2688 : index
    %169 = vector.load %arg9[%c0_171, %c2688] : memref<8x4992xbf16, #tpu.memory_space<vmem>>, vector<8x384xbf16>
    tpu.vector_store %arg9[%c0_171, %c2688], %168 {strides = array<i32>} : memref<8x4992xbf16, #tpu.memory_space<vmem>>, vector<8x384xbf16>,
    %c0_172 = arith.constant 0 : index
    %c8 = arith.constant 8 : index
    %c0_173 = arith.constant 0 : index
    %c0_174 = arith.constant 0 : index
    %170 = vector.load %arg1[%c0_172, %c8, %c0_173, %c0_174] : memref<4x13x8x128xbf16, #tpu.memory_space<vmem>>, vector<1x1x8x128xbf16>
    %171 = vector.shape_cast %170 : vector<1x1x8x128xbf16> to vector<8x128xbf16>
    %cst_175 = arith.constant dense<0.000000e+00> : vector<8x384xf32>
    %172 = tpu.matmul %171, %0, %cst_175 {dimension_numbers = #tpu.dot_dimension_numbers<[1], [0], [0], [1], [0, 0, 1, 1], [], []>} : vector<8x128xbf16>, vector<128x384xbf16>, vector<8x384xf32> -> vector<8x384xf32>
    %c1_176 = arith.constant 1 : index
    %c8_177 = arith.constant 8 : index
    %c0_178 = arith.constant 0 : index
    %c0_179 = arith.constant 0 : index
    %173 = vector.load %arg1[%c1_176, %c8_177, %c0_178, %c0_179] : memref<4x13x8x128xbf16, #tpu.memory_space<vmem>>, vector<1x1x8x128xbf16>
    %174 = vector.shape_cast %173 : vector<1x1x8x128xbf16> to vector<8x128xbf16>
    %cst_180 = arith.constant dense<0.000000e+00> : vector<8x384xf32>
    %175 = tpu.matmul %174, %0, %cst_180 {dimension_numbers = #tpu.dot_dimension_numbers<[1], [0], [0], [1], [0, 0, 1, 1], [], []>} : vector<8x128xbf16>, vector<128x384xbf16>, vector<8x384xf32> -> vector<8x384xf32>
    %176 = arith.maximumf %172, %175 : vector<8x384xf32>
    %c2_181 = arith.constant 2 : index
    %c8_182 = arith.constant 8 : index
    %c0_183 = arith.constant 0 : index
    %c0_184 = arith.constant 0 : index
    %177 = vector.load %arg1[%c2_181, %c8_182, %c0_183, %c0_184] : memref<4x13x8x128xbf16, #tpu.memory_space<vmem>>, vector<1x1x8x128xbf16>
    %178 = vector.shape_cast %177 : vector<1x1x8x128xbf16> to vector<8x128xbf16>
    %cst_185 = arith.constant dense<0.000000e+00> : vector<8x384xf32>
    %179 = tpu.matmul %178, %0, %cst_185 {dimension_numbers = #tpu.dot_dimension_numbers<[1], [0], [0], [1], [0, 0, 1, 1], [], []>} : vector<8x128xbf16>, vector<128x384xbf16>, vector<8x384xf32> -> vector<8x384xf32>
    %180 = arith.maximumf %176, %179 : vector<8x384xf32>
    %c3_186 = arith.constant 3 : index
    %c8_187 = arith.constant 8 : index
    %c0_188 = arith.constant 0 : index
    %c0_189 = arith.constant 0 : index
    %181 = vector.load %arg1[%c3_186, %c8_187, %c0_188, %c0_189] : memref<4x13x8x128xbf16, #tpu.memory_space<vmem>>, vector<1x1x8x128xbf16>
    %182 = vector.shape_cast %181 : vector<1x1x8x128xbf16> to vector<8x128xbf16>
    %cst_190 = arith.constant dense<0.000000e+00> : vector<8x384xf32>
    %183 = tpu.matmul %182, %0, %cst_190 {dimension_numbers = #tpu.dot_dimension_numbers<[1], [0], [0], [1], [0, 0, 1, 1], [], []>} : vector<8x128xbf16>, vector<128x384xbf16>, vector<8x384xf32> -> vector<8x384xf32>
    %184 = arith.maximumf %180, %183 : vector<8x384xf32>
    %185 = vector.broadcast %1 : vector<1x384xf32> to vector<8x384xf32>
    %186 = arith.addf %184, %185 : vector<8x384xf32>
    %cst_191 = arith.constant 0.000000e+00 : f32
    %187 = vector.broadcast %cst_191 : f32 to vector<8x384xf32>
    %188 = arith.maximumf %186, %187 : vector<8x384xf32>
    %189 = arith.truncf %188 : vector<8x384xf32> to vector<8x384xbf16>
    %c0_192 = arith.constant 0 : index
    %c3072 = arith.constant 3072 : index
    %190 = vector.load %arg9[%c0_192, %c3072] : memref<8x4992xbf16, #tpu.memory_space<vmem>>, vector<8x384xbf16>
    tpu.vector_store %arg9[%c0_192, %c3072], %189 {strides = array<i32>} : memref<8x4992xbf16, #tpu.memory_space<vmem>>, vector<8x384xbf16>,
    %c0_193 = arith.constant 0 : index
    %c9 = arith.constant 9 : index
    %c0_194 = arith.constant 0 : index
    %c0_195 = arith.constant 0 : index
    %191 = vector.load %arg1[%c0_193, %c9, %c0_194, %c0_195] : memref<4x13x8x128xbf16, #tpu.memory_space<vmem>>, vector<1x1x8x128xbf16>
    %192 = vector.shape_cast %191 : vector<1x1x8x128xbf16> to vector<8x128xbf16>
    %cst_196 = arith.constant dense<0.000000e+00> : vector<8x384xf32>
    %193 = tpu.matmul %192, %0, %cst_196 {dimension_numbers = #tpu.dot_dimension_numbers<[1], [0], [0], [1], [0, 0, 1, 1], [], []>} : vector<8x128xbf16>, vector<128x384xbf16>, vector<8x384xf32> -> vector<8x384xf32>
    %c1_197 = arith.constant 1 : index
    %c9_198 = arith.constant 9 : index
    %c0_199 = arith.constant 0 : index
    %c0_200 = arith.constant 0 : index
    %194 = vector.load %arg1[%c1_197, %c9_198, %c0_199, %c0_200] : memref<4x13x8x128xbf16, #tpu.memory_space<vmem>>, vector<1x1x8x128xbf16>
    %195 = vector.shape_cast %194 : vector<1x1x8x128xbf16> to vector<8x128xbf16>
    %cst_201 = arith.constant dense<0.000000e+00> : vector<8x384xf32>
    %196 = tpu.matmul %195, %0, %cst_201 {dimension_numbers = #tpu.dot_dimension_numbers<[1], [0], [0], [1], [0, 0, 1, 1], [], []>} : vector<8x128xbf16>, vector<128x384xbf16>, vector<8x384xf32> -> vector<8x384xf32>
    %197 = arith.maximumf %193, %196 : vector<8x384xf32>
    %c2_202 = arith.constant 2 : index
    %c9_203 = arith.constant 9 : index
    %c0_204 = arith.constant 0 : index
    %c0_205 = arith.constant 0 : index
    %198 = vector.load %arg1[%c2_202, %c9_203, %c0_204, %c0_205] : memref<4x13x8x128xbf16, #tpu.memory_space<vmem>>, vector<1x1x8x128xbf16>
    %199 = vector.shape_cast %198 : vector<1x1x8x128xbf16> to vector<8x128xbf16>
    %cst_206 = arith.constant dense<0.000000e+00> : vector<8x384xf32>
    %200 = tpu.matmul %199, %0, %cst_206 {dimension_numbers = #tpu.dot_dimension_numbers<[1], [0], [0], [1], [0, 0, 1, 1], [], []>} : vector<8x128xbf16>, vector<128x384xbf16>, vector<8x384xf32> -> vector<8x384xf32>
    %201 = arith.maximumf %197, %200 : vector<8x384xf32>
    %c3_207 = arith.constant 3 : index
    %c9_208 = arith.constant 9 : index
    %c0_209 = arith.constant 0 : index
    %c0_210 = arith.constant 0 : index
    %202 = vector.load %arg1[%c3_207, %c9_208, %c0_209, %c0_210] : memref<4x13x8x128xbf16, #tpu.memory_space<vmem>>, vector<1x1x8x128xbf16>
    %203 = vector.shape_cast %202 : vector<1x1x8x128xbf16> to vector<8x128xbf16>
    %cst_211 = arith.constant dense<0.000000e+00> : vector<8x384xf32>
    %204 = tpu.matmul %203, %0, %cst_211 {dimension_numbers = #tpu.dot_dimension_numbers<[1], [0], [0], [1], [0, 0, 1, 1], [], []>} : vector<8x128xbf16>, vector<128x384xbf16>, vector<8x384xf32> -> vector<8x384xf32>
    %205 = arith.maximumf %201, %204 : vector<8x384xf32>
    %206 = vector.broadcast %1 : vector<1x384xf32> to vector<8x384xf32>
    %207 = arith.addf %205, %206 : vector<8x384xf32>
    %cst_212 = arith.constant 0.000000e+00 : f32
    %208 = vector.broadcast %cst_212 : f32 to vector<8x384xf32>
    %209 = arith.maximumf %207, %208 : vector<8x384xf32>
    %210 = arith.truncf %209 : vector<8x384xf32> to vector<8x384xbf16>
    %c0_213 = arith.constant 0 : index
    %c3456 = arith.constant 3456 : index
    %211 = vector.load %arg9[%c0_213, %c3456] : memref<8x4992xbf16, #tpu.memory_space<vmem>>, vector<8x384xbf16>
    tpu.vector_store %arg9[%c0_213, %c3456], %210 {strides = array<i32>} : memref<8x4992xbf16, #tpu.memory_space<vmem>>, vector<8x384xbf16>,
    %c0_214 = arith.constant 0 : index
    %c10 = arith.constant 10 : index
    %c0_215 = arith.constant 0 : index
    %c0_216 = arith.constant 0 : index
    %212 = vector.load %arg1[%c0_214, %c10, %c0_215, %c0_216] : memref<4x13x8x128xbf16, #tpu.memory_space<vmem>>, vector<1x1x8x128xbf16>
    %213 = vector.shape_cast %212 : vector<1x1x8x128xbf16> to vector<8x128xbf16>
    %cst_217 = arith.constant dense<0.000000e+00> : vector<8x384xf32>
    %214 = tpu.matmul %213, %0, %cst_217 {dimension_numbers = #tpu.dot_dimension_numbers<[1], [0], [0], [1], [0, 0, 1, 1], [], []>} : vector<8x128xbf16>, vector<128x384xbf16>, vector<8x384xf32> -> vector<8x384xf32>
    %c1_218 = arith.constant 1 : index
    %c10_219 = arith.constant 10 : index
    %c0_220 = arith.constant 0 : index
    %c0_221 = arith.constant 0 : index
    %215 = vector.load %arg1[%c1_218, %c10_219, %c0_220, %c0_221] : memref<4x13x8x128xbf16, #tpu.memory_space<vmem>>, vector<1x1x8x128xbf16>
    %216 = vector.shape_cast %215 : vector<1x1x8x128xbf16> to vector<8x128xbf16>
    %cst_222 = arith.constant dense<0.000000e+00> : vector<8x384xf32>
    %217 = tpu.matmul %216, %0, %cst_222 {dimension_numbers = #tpu.dot_dimension_numbers<[1], [0], [0], [1], [0, 0, 1, 1], [], []>} : vector<8x128xbf16>, vector<128x384xbf16>, vector<8x384xf32> -> vector<8x384xf32>
    %218 = arith.maximumf %214, %217 : vector<8x384xf32>
    %c2_223 = arith.constant 2 : index
    %c10_224 = arith.constant 10 : index
    %c0_225 = arith.constant 0 : index
    %c0_226 = arith.constant 0 : index
    %219 = vector.load %arg1[%c2_223, %c10_224, %c0_225, %c0_226] : memref<4x13x8x128xbf16, #tpu.memory_space<vmem>>, vector<1x1x8x128xbf16>
    %220 = vector.shape_cast %219 : vector<1x1x8x128xbf16> to vector<8x128xbf16>
    %cst_227 = arith.constant dense<0.000000e+00> : vector<8x384xf32>
    %221 = tpu.matmul %220, %0, %cst_227 {dimension_numbers = #tpu.dot_dimension_numbers<[1], [0], [0], [1], [0, 0, 1, 1], [], []>} : vector<8x128xbf16>, vector<128x384xbf16>, vector<8x384xf32> -> vector<8x384xf32>
    %222 = arith.maximumf %218, %221 : vector<8x384xf32>
    %c3_228 = arith.constant 3 : index
    %c10_229 = arith.constant 10 : index
    %c0_230 = arith.constant 0 : index
    %c0_231 = arith.constant 0 : index
    %223 = vector.load %arg1[%c3_228, %c10_229, %c0_230, %c0_231] : memref<4x13x8x128xbf16, #tpu.memory_space<vmem>>, vector<1x1x8x128xbf16>
    %224 = vector.shape_cast %223 : vector<1x1x8x128xbf16> to vector<8x128xbf16>
    %cst_232 = arith.constant dense<0.000000e+00> : vector<8x384xf32>
    %225 = tpu.matmul %224, %0, %cst_232 {dimension_numbers = #tpu.dot_dimension_numbers<[1], [0], [0], [1], [0, 0, 1, 1], [], []>} : vector<8x128xbf16>, vector<128x384xbf16>, vector<8x384xf32> -> vector<8x384xf32>
    %226 = arith.maximumf %222, %225 : vector<8x384xf32>
    %227 = vector.broadcast %1 : vector<1x384xf32> to vector<8x384xf32>
    %228 = arith.addf %226, %227 : vector<8x384xf32>
    %cst_233 = arith.constant 0.000000e+00 : f32
    %229 = vector.broadcast %cst_233 : f32 to vector<8x384xf32>
    %230 = arith.maximumf %228, %229 : vector<8x384xf32>
    %231 = arith.truncf %230 : vector<8x384xf32> to vector<8x384xbf16>
    %c0_234 = arith.constant 0 : index
    %c3840 = arith.constant 3840 : index
    %232 = vector.load %arg9[%c0_234, %c3840] : memref<8x4992xbf16, #tpu.memory_space<vmem>>, vector<8x384xbf16>
    tpu.vector_store %arg9[%c0_234, %c3840], %231 {strides = array<i32>} : memref<8x4992xbf16, #tpu.memory_space<vmem>>, vector<8x384xbf16>,
    %c0_235 = arith.constant 0 : index
    %c11 = arith.constant 11 : index
    %c0_236 = arith.constant 0 : index
    %c0_237 = arith.constant 0 : index
    %233 = vector.load %arg1[%c0_235, %c11, %c0_236, %c0_237] : memref<4x13x8x128xbf16, #tpu.memory_space<vmem>>, vector<1x1x8x128xbf16>
    %234 = vector.shape_cast %233 : vector<1x1x8x128xbf16> to vector<8x128xbf16>
    %cst_238 = arith.constant dense<0.000000e+00> : vector<8x384xf32>
    %235 = tpu.matmul %234, %0, %cst_238 {dimension_numbers = #tpu.dot_dimension_numbers<[1], [0], [0], [1], [0, 0, 1, 1], [], []>} : vector<8x128xbf16>, vector<128x384xbf16>, vector<8x384xf32> -> vector<8x384xf32>
    %c1_239 = arith.constant 1 : index
    %c11_240 = arith.constant 11 : index
    %c0_241 = arith.constant 0 : index
    %c0_242 = arith.constant 0 : index
    %236 = vector.load %arg1[%c1_239, %c11_240, %c0_241, %c0_242] : memref<4x13x8x128xbf16, #tpu.memory_space<vmem>>, vector<1x1x8x128xbf16>
    %237 = vector.shape_cast %236 : vector<1x1x8x128xbf16> to vector<8x128xbf16>
    %cst_243 = arith.constant dense<0.000000e+00> : vector<8x384xf32>
    %238 = tpu.matmul %237, %0, %cst_243 {dimension_numbers = #tpu.dot_dimension_numbers<[1], [0], [0], [1], [0, 0, 1, 1], [], []>} : vector<8x128xbf16>, vector<128x384xbf16>, vector<8x384xf32> -> vector<8x384xf32>
    %239 = arith.maximumf %235, %238 : vector<8x384xf32>
    %c2_244 = arith.constant 2 : index
    %c11_245 = arith.constant 11 : index
    %c0_246 = arith.constant 0 : index
    %c0_247 = arith.constant 0 : index
    %240 = vector.load %arg1[%c2_244, %c11_245, %c0_246, %c0_247] : memref<4x13x8x128xbf16, #tpu.memory_space<vmem>>, vector<1x1x8x128xbf16>
    %241 = vector.shape_cast %240 : vector<1x1x8x128xbf16> to vector<8x128xbf16>
    %cst_248 = arith.constant dense<0.000000e+00> : vector<8x384xf32>
    %242 = tpu.matmul %241, %0, %cst_248 {dimension_numbers = #tpu.dot_dimension_numbers<[1], [0], [0], [1], [0, 0, 1, 1], [], []>} : vector<8x128xbf16>, vector<128x384xbf16>, vector<8x384xf32> -> vector<8x384xf32>
    %243 = arith.maximumf %239, %242 : vector<8x384xf32>
    %c3_249 = arith.constant 3 : index
    %c11_250 = arith.constant 11 : index
    %c0_251 = arith.constant 0 : index
    %c0_252 = arith.constant 0 : index
    %244 = vector.load %arg1[%c3_249, %c11_250, %c0_251, %c0_252] : memref<4x13x8x128xbf16, #tpu.memory_space<vmem>>, vector<1x1x8x128xbf16>
    %245 = vector.shape_cast %244 : vector<1x1x8x128xbf16> to vector<8x128xbf16>
    %cst_253 = arith.constant dense<0.000000e+00> : vector<8x384xf32>
    %246 = tpu.matmul %245, %0, %cst_253 {dimension_numbers = #tpu.dot_dimension_numbers<[1], [0], [0], [1], [0, 0, 1, 1], [], []>} : vector<8x128xbf16>, vector<128x384xbf16>, vector<8x384xf32> -> vector<8x384xf32>
    %247 = arith.maximumf %243, %246 : vector<8x384xf32>
    %248 = vector.broadcast %1 : vector<1x384xf32> to vector<8x384xf32>
    %249 = arith.addf %247, %248 : vector<8x384xf32>
    %cst_254 = arith.constant 0.000000e+00 : f32
    %250 = vector.broadcast %cst_254 : f32 to vector<8x384xf32>
    %251 = arith.maximumf %249, %250 : vector<8x384xf32>
    %252 = arith.truncf %251 : vector<8x384xf32> to vector<8x384xbf16>
    %c0_255 = arith.constant 0 : index
    %c4224 = arith.constant 4224 : index
    %253 = vector.load %arg9[%c0_255, %c4224] : memref<8x4992xbf16, #tpu.memory_space<vmem>>, vector<8x384xbf16>
    tpu.vector_store %arg9[%c0_255, %c4224], %252 {strides = array<i32>} : memref<8x4992xbf16, #tpu.memory_space<vmem>>, vector<8x384xbf16>,
    %c0_256 = arith.constant 0 : index
    %c12 = arith.constant 12 : index
    %c0_257 = arith.constant 0 : index
    %c0_258 = arith.constant 0 : index
    %254 = vector.load %arg1[%c0_256, %c12, %c0_257, %c0_258] : memref<4x13x8x128xbf16, #tpu.memory_space<vmem>>, vector<1x1x8x128xbf16>
    %255 = vector.shape_cast %254 : vector<1x1x8x128xbf16> to vector<8x128xbf16>
    %cst_259 = arith.constant dense<0.000000e+00> : vector<8x384xf32>
    %256 = tpu.matmul %255, %0, %cst_259 {dimension_numbers = #tpu.dot_dimension_numbers<[1], [0], [0], [1], [0, 0, 1, 1], [], []>} : vector<8x128xbf16>, vector<128x384xbf16>, vector<8x384xf32> -> vector<8x384xf32>
    %c1_260 = arith.constant 1 : index
    %c12_261 = arith.constant 12 : index
    %c0_262 = arith.constant 0 : index
    %c0_263 = arith.constant 0 : index
    %257 = vector.load %arg1[%c1_260, %c12_261, %c0_262, %c0_263] : memref<4x13x8x128xbf16, #tpu.memory_space<vmem>>, vector<1x1x8x128xbf16>
    %258 = vector.shape_cast %257 : vector<1x1x8x128xbf16> to vector<8x128xbf16>
    %cst_264 = arith.constant dense<0.000000e+00> : vector<8x384xf32>
    %259 = tpu.matmul %258, %0, %cst_264 {dimension_numbers = #tpu.dot_dimension_numbers<[1], [0], [0], [1], [0, 0, 1, 1], [], []>} : vector<8x128xbf16>, vector<128x384xbf16>, vector<8x384xf32> -> vector<8x384xf32>
    %260 = arith.maximumf %256, %259 : vector<8x384xf32>
    %c2_265 = arith.constant 2 : index
    %c12_266 = arith.constant 12 : index
    %c0_267 = arith.constant 0 : index
    %c0_268 = arith.constant 0 : index
    %261 = vector.load %arg1[%c2_265, %c12_266, %c0_267, %c0_268] : memref<4x13x8x128xbf16, #tpu.memory_space<vmem>>, vector<1x1x8x128xbf16>
    %262 = vector.shape_cast %261 : vector<1x1x8x128xbf16> to vector<8x128xbf16>
    %cst_269 = arith.constant dense<0.000000e+00> : vector<8x384xf32>
    %263 = tpu.matmul %262, %0, %cst_269 {dimension_numbers = #tpu.dot_dimension_numbers<[1], [0], [0], [1], [0, 0, 1, 1], [], []>} : vector<8x128xbf16>, vector<128x384xbf16>, vector<8x384xf32> -> vector<8x384xf32>
    %264 = arith.maximumf %260, %263 : vector<8x384xf32>
    %c3_270 = arith.constant 3 : index
    %c12_271 = arith.constant 12 : index
    %c0_272 = arith.constant 0 : index
    %c0_273 = arith.constant 0 : index
    %265 = vector.load %arg1[%c3_270, %c12_271, %c0_272, %c0_273] : memref<4x13x8x128xbf16, #tpu.memory_space<vmem>>, vector<1x1x8x128xbf16>
    %266 = vector.shape_cast %265 : vector<1x1x8x128xbf16> to vector<8x128xbf16>
    %cst_274 = arith.constant dense<0.000000e+00> : vector<8x384xf32>
    %267 = tpu.matmul %266, %0, %cst_274 {dimension_numbers = #tpu.dot_dimension_numbers<[1], [0], [0], [1], [0, 0, 1, 1], [], []>} : vector<8x128xbf16>, vector<128x384xbf16>, vector<8x384xf32> -> vector<8x384xf32>
    %268 = arith.maximumf %264, %267 : vector<8x384xf32>
    %269 = vector.broadcast %1 : vector<1x384xf32> to vector<8x384xf32>
    %270 = arith.addf %268, %269 : vector<8x384xf32>
    %cst_275 = arith.constant 0.000000e+00 : f32
    %271 = vector.broadcast %cst_275 : f32 to vector<8x384xf32>
    %272 = arith.maximumf %270, %271 : vector<8x384xf32>
    %273 = arith.truncf %272 : vector<8x384xf32> to vector<8x384xbf16>
    %c0_276 = arith.constant 0 : index
    %c4608 = arith.constant 4608 : index
    %274 = vector.load %arg9[%c0_276, %c4608] : memref<8x4992xbf16, #tpu.memory_space<vmem>>, vector<8x384xbf16>
    tpu.vector_store %arg9[%c0_276, %c4608], %273 {strides = array<i32>} : memref<8x4992xbf16, #tpu.memory_space<vmem>>, vector<8x384xbf16>,
    %c0_277 = arith.constant 0 : index
    %c0_278 = arith.constant 0 : index
    %275 = vector.load %arg9[%c0_277, %c0_278] : memref<8x4992xbf16, #tpu.memory_space<vmem>>, vector<8x4992xbf16>
    %c0_279 = arith.constant 0 : index
    %c0_280 = arith.constant 0 : index
    %276 = vector.load %arg4[%c0_279, %c0_280] : memref<4992x128xbf16, #tpu.memory_space<vmem>>, vector<4992x128xbf16>
    %cst_281 = arith.constant dense<0.000000e+00> : vector<8x128xf32>
    %277 = tpu.matmul %275, %276, %cst_281 {dimension_numbers = #tpu.dot_dimension_numbers<[1], [0], [0], [1], [0, 0, 1, 1], [], []>} : vector<8x4992xbf16>, vector<4992x128xbf16>, vector<8x128xf32> -> vector<8x128xf32>
    %c0_282 = arith.constant 0 : index
    %c0_283 = arith.constant 0 : index
    %278 = vector.load %arg5[%c0_282, %c0_283] : memref<1x128xf32, #tpu.memory_space<vmem>>, vector<1x128xf32>
    %279 = vector.broadcast %278 : vector<1x128xf32> to vector<8x128xf32>
    %280 = arith.addf %277, %279 : vector<8x128xf32>
    %cst_284 = arith.constant 0.000000e+00 : f32
    %281 = vector.broadcast %cst_284 : f32 to vector<8x128xf32>
    %282 = arith.maximumf %280, %281 : vector<8x128xf32>
    %283 = arith.truncf %282 : vector<8x128xf32> to vector<8x128xbf16>
    %c0_285 = arith.constant 0 : index
    %c0_286 = arith.constant 0 : index
    %284 = vector.load %arg6[%c0_285, %c0_286] : memref<128x128xbf16, #tpu.memory_space<vmem>>, vector<128x128xbf16>
    %cst_287 = arith.constant dense<0.000000e+00> : vector<8x128xf32>
    %285 = tpu.matmul %283, %284, %cst_287 {dimension_numbers = #tpu.dot_dimension_numbers<[1], [0], [0], [1], [0, 0, 1, 1], [], []>} : vector<8x128xbf16>, vector<128x128xbf16>, vector<8x128xf32> -> vector<8x128xf32>
    %c0_288 = arith.constant 0 : index
    %c0_289 = arith.constant 0 : index
    %286 = vector.load %arg7[%c0_288, %c0_289] : memref<1x128xf32, #tpu.memory_space<vmem>>, vector<1x128xf32>
    %287 = vector.broadcast %286 : vector<1x128xf32> to vector<8x128xf32>
    %288 = arith.addf %285, %287 : vector<8x128xf32>
    %c0_290 = arith.constant 0 : index
    %c0_291 = arith.constant 0 : index
    %289 = vector.load %arg8[%c0_290, %c0_291] : memref<8x128xf32, #tpu.memory_space<vmem>>, vector<8x128xf32>
    tpu.vector_store %arg8[%c0_290, %c0_291], %288 {strides = array<i32>} : memref<8x128xf32, #tpu.memory_space<vmem>>, vector<8x128xf32>,
    return
  }
  func.func @transform_0(%arg0: i32) -> (i32, i32, i32, i32) {
    %c0_i32 = arith.constant 0 : i32
    %c0_i32_0 = arith.constant 0 : i32
    %c0_i32_1 = arith.constant 0 : i32
    %c0_i32_2 = arith.constant 0 : i32
    return %c0_i32, %c0_i32_0, %arg0, %c0_i32_1 : i32, i32, i32, i32
  }
  func.func @transform_1(%arg0: i32) -> (i32, i32) {
    %c0_i32 = arith.constant 0 : i32
    %c0_i32_0 = arith.constant 0 : i32
    %c0_i32_1 = arith.constant 0 : i32
    return %c0_i32, %c0_i32_0 : i32, i32
  }
  func.func @transform_2(%arg0: i32) -> (i32, i32) {
    %c0_i32 = arith.constant 0 : i32
    %c0_i32_0 = arith.constant 0 : i32
    %c0_i32_1 = arith.constant 0 : i32
    return %c0_i32, %c0_i32_0 : i32, i32
  }
  func.func @transform_3(%arg0: i32) -> (i32, i32) {
    %c0_i32 = arith.constant 0 : i32
    %c0_i32_0 = arith.constant 0 : i32
    %c0_i32_1 = arith.constant 0 : i32
    return %c0_i32, %c0_i32_0 : i32, i32
  }
  func.func @transform_4(%arg0: i32) -> (i32, i32) {
    %c0_i32 = arith.constant 0 : i32
    %c0_i32_0 = arith.constant 0 : i32
    %c0_i32_1 = arith.constant 0 : i32
    return %c0_i32, %c0_i32_0 : i32, i32
  }
  func.func @transform_5(%arg0: i32) -> (i32, i32) {
    %c0_i32 = arith.constant 0 : i32
    %c0_i32_0 = arith.constant 0 : i32
    %c0_i32_1 = arith.constant 0 : i32
    return %c0_i32, %c0_i32_0 : i32, i32
  }
  func.func @transform_6(%arg0: i32) -> (i32, i32) {
    %c0_i32 = arith.constant 0 : i32
    %c0_i32_0 = arith.constant 0 : i32
    %c0_i32_1 = arith.constant 0 : i32
    return %c0_i32, %c0_i32_0 : i32, i32
  }
  func.func @transform_7(%arg0: i32) -> (i32, i32) {
    %c0_i32 = arith.constant 0 : i32
    %c0_i32_0 = arith.constant 0 : i32
    return %arg0, %c0_i32 : i32, i32
  }
}

</mosaic_0001>

<bundles_post_ra>
// kernel: mnist_forward.1
= control target key start
LH: loop header
LB: loop body
LE: loop exit
PB: predicated region body
PF: predicated region fallthrough
CT: control target
= control target key end

     0   :  { %s10494_s1 = inlined_call_operand.vmem [shape: bf16[128,384], index: 1, kind: input, shape index: {}]   ;;  %s10495_s0 = inlined_call_operand.vmem [shape: bf16[4,13,8,128], index: 0, kind: input, shape index: {}]   ;;  %s10496_s2 = inlined_call_operand.vmem [shape: f32[1,384], index: 2, kind: input, shape index: {}]   ;;  %s10497_s3 = inlined_call_operand.vmem [shape: bf16[4992,128], index: 3, kind: input, shape index: {}]   ;;  %s10498_s4 = inlined_call_operand.vmem [shape: f32[1,128], index: 4, kind: input, shape index: {}]   ;;  %s10499_s6 = inlined_call_operand.vmem [shape: f32[1,128], index: 6, kind: input, shape index: {}]   ;;  %s10500_s5 = inlined_call_operand.vmem [shape: bf16[128,128], index: 5, kind: input, shape index: {}]   ;;  %s10501_s7 = inlined_call_operand.vmem [shape: f32[8,128], index: 7, kind: output, shape index: {}]  }
   0x1   :  { %v5910_v0 = vld [vmem:[%s10494_s1 + $0xa8] sm:$0xf]  ;;  %v7273_v1 = vld [vmem:[%s10494_s1 + $0xb0] sm:$0xf0]  ;;  %v7272_v2 = vld [vmem:[%s10494_s1 + $0xac] sm:$0xf] }
   0x2   :  { %v7646_v3 = vor.u32 %v7273_v1, %v5910_v0  ;;  %v5912_v4 = vld [vmem:[%s10494_s1 + $0xb4] sm:$0xf0]  ;;  %v5918_v5 = vld [vmem:[%s10494_s1 + $0xb0] sm:$0xf]  ;;  %v7274_v6 = vld [vmem:[%s10494_s1 + $0xb8] sm:$0xf0] }
   0x3   :  { %v7657_v7 = vor.u32 %v7272_v2, %v5912_v4  ;;  %v7659_v8 = vor.u32 %v7274_v6, %v5918_v5  ;;  %v5898_v9 = vld [vmem:[%s10494_s1 + $0x90] sm:$0xf]  ;;  %v7270_v10 = vld [vmem:[%s10494_s1 + $0x98] sm:$0xf0]  ;;  %v7269_v11 = vld [vmem:[%s10494_s1 + $0x94] sm:$0xf] }
   0x4   :  { %188 = vmatpush.bf16.msra.mxu0 %v7646_v3  ;;  %229 = vmatpush.bf16.msra.mxu3 %v7646_v3  ;;  %v7672_v12 = vor.u32 %v7270_v10, %v5898_v9  ;;  %v5900_v13 = vld [vmem:[%s10494_s1 + $0x9c] sm:$0xf0]  ;;  %v5906_v14 = vld [vmem:[%s10494_s1 + $0x98] sm:$0xf]  ;;  %v7271_v15 = vld [vmem:[%s10494_s1 + $0xa0] sm:$0xf0] }
   0x5   :  { %201 = vmatpush.bf16.msra.mxu1 %v7657_v7  ;;  %214 = vmatpush.bf16.msra.mxu2 %v7659_v8  ;;  %v7685_v16 = vor.u32 %v7269_v11, %v5900_v13  ;;  %v7687_v17 = vor.u32 %v7271_v15, %v5906_v14  ;;  %v5886_v18 = vld [vmem:[%s10494_s1 + $0x78] sm:$0xf]  ;;  %v7267_v19 = vld [vmem:[%s10494_s1 + $0x80] sm:$0xf0]  ;;  %v7266_v20 = vld [vmem:[%s10494_s1 + $0x7c] sm:$0xf] }
   0x6   :  { %v5888_v21 = vld [vmem:[%s10494_s1 + $0x84] sm:$0xf0]  ;;  %v5894_v22 = vld [vmem:[%s10494_s1 + $0x80] sm:$0xf]  ;;  %v7268_v23 = vld [vmem:[%s10494_s1 + $0x88] sm:$0xf0]  ;;  %v7709_v24 = vor.u32 %v7267_v19, %v5886_v18 }
   0x7   :  { %v7713_v25 = vor.u32 %v7266_v20, %v5888_v21  ;;  %v7715_v26 = vor.u32 %v7268_v23, %v5894_v22  ;;  %v5874_v27 = vld [vmem:[%s10494_s1 + $0x60] sm:$0xf]  ;;  %v7264_v28 = vld [vmem:[%s10494_s1 + $0x68] sm:$0xf0]  ;;  %v7263_v29 = vld [vmem:[%s10494_s1 + $0x64] sm:$0xf] }
   0x8   :  { %189 = vmatpush.bf16.msra.mxu0 %v7672_v12  ;;  %230 = vmatpush.bf16.msra.mxu3 %v7672_v12  ;;  %v5876_v30 = vld [vmem:[%s10494_s1 + $0x6c] sm:$0xf0]  ;;  %v5882_v31 = vld [vmem:[%s10494_s1 + $0x68] sm:$0xf]  ;;  %v7265_v32 = vld [vmem:[%s10494_s1 + $0x70] sm:$0xf0]  ;;  %v7737_v33 = vor.u32 %v7264_v28, %v5874_v27 }
   0x9   :  { %202 = vmatpush.bf16.msra.mxu1 %v7685_v16  ;;  %215 = vmatpush.bf16.msra.mxu2 %v7687_v17  ;;  %v7741_v34 = vor.u32 %v7263_v29, %v5876_v30  ;;  %v7743_v35 = vor.u32 %v7265_v32, %v5882_v31  ;;  %v5862_v36 = vld [vmem:[%s10494_s1 + $0x48] sm:$0xf]  ;;  %v7261_v37 = vld [vmem:[%s10494_s1 + $0x50] sm:$0xf0]  ;;  %v7260_v38 = vld [vmem:[%s10494_s1 + $0x4c] sm:$0xf] }
   0xa   :  { %v5864_v39 = vld [vmem:[%s10494_s1 + $0x54] sm:$0xf0]  ;;  %v5870_v40 = vld [vmem:[%s10494_s1 + $0x50] sm:$0xf]  ;;  %v7262_v41 = vld [vmem:[%s10494_s1 + $0x58] sm:$0xf0]  ;;  %v7765_v42 = vor.u32 %v7261_v37, %v5862_v36 }
   0xb   :  { %v7769_v43 = vor.u32 %v7260_v38, %v5864_v39  ;;  %v7771_v44 = vor.u32 %v7262_v41, %v5870_v40  ;;  %v5850_v45 = vld [vmem:[%s10494_s1 + $0x30] sm:$0xf]  ;;  %v7258_v46 = vld [vmem:[%s10494_s1 + $0x38] sm:$0xf0]  ;;  %v7257_v47 = vld [vmem:[%s10494_s1 + $0x34] sm:$0xf] }
   0xc   :  { %190 = vmatpush.bf16.msra.mxu0 %v7709_v24  ;;  %231 = vmatpush.bf16.msra.mxu3 %v7709_v24  ;;  %v5852_v48 = vld [vmem:[%s10494_s1 + $0x3c] sm:$0xf0]  ;;  %v5858_v49 = vld [vmem:[%s10494_s1 + $0x38] sm:$0xf]  ;;  %v7259_v50 = vld [vmem:[%s10494_s1 + $0x40] sm:$0xf0]  ;;  %v7793_v51 = vor.u32 %v7258_v46, %v5850_v45 }
   0xd   :  { %203 = vmatpush.bf16.msra.mxu1 %v7713_v25  ;;  %216 = vmatpush.bf16.msra.mxu2 %v7715_v26  ;;  %v7797_v52 = vor.u32 %v7257_v47, %v5852_v48  ;;  %v7799_v53 = vor.u32 %v7259_v50, %v5858_v49  ;;  %v5838_v54 = vld [vmem:[%s10494_s1 + $0x18] sm:$0xf]  ;;  %v7255_v55 = vld [vmem:[%s10494_s1 + $0x20] sm:$0xf0]  ;;  %v7254_v56 = vld [vmem:[%s10494_s1 + $0x1c] sm:$0xf] }
   0xe   :  { %v5840_v57 = vld [vmem:[%s10494_s1 + $0x24] sm:$0xf0]  ;;  %v5846_v58 = vld [vmem:[%s10494_s1 + $0x20] sm:$0xf]  ;;  %v7256_v59 = vld [vmem:[%s10494_s1 + $0x28] sm:$0xf0]  ;;  %v7821_v60 = vor.u32 %v7255_v55, %v5838_v54 }
   0xf   :  { %v7825_v61 = vor.u32 %v7254_v56, %v5840_v57  ;;  %v7827_v62 = vor.u32 %v7256_v59, %v5846_v58  ;;  %v5826_v63 = vld [vmem:[%s10494_s1] sm:$0xf]  ;;  %v7252_v0 = vld [vmem:[%s10494_s1 + $0x8] sm:$0xf0]  ;;  %v7251_v1 = vld [vmem:[%s10494_s1 + $0x4] sm:$0xf] }
  0x10   :  { %191 = vmatpush.bf16.msra.mxu0 %v7737_v33  ;;  %232 = vmatpush.bf16.msra.mxu3 %v7737_v33  ;;  %v5828_v2 = vld [vmem:[%s10494_s1 + $0xc] sm:$0xf0]  ;;  %v5834_v4 = vld [vmem:[%s10494_s1 + $0x8] sm:$0xf]  ;;  %v7253_v5 = vld [vmem:[%s10494_s1 + $0x10] sm:$0xf0]  ;;  %v7849_v6 = vor.u32 %v7252_v0, %v5826_v63 }
  0x11   :  { %204 = vmatpush.bf16.msra.mxu1 %v7741_v34  ;;  %217 = vmatpush.bf16.msra.mxu2 %v7743_v35  ;;  %v7853_v9 = vor.u32 %v7251_v1, %v5828_v2  ;;  %v7855_v10 = vor.u32 %v7253_v5, %v5834_v4  ;;  %v59_v11 = vld [vmem:[%s10495_s0] sm:$0xf]  ;;  %v5920_v13 = vld [vmem:[%s10495_s0 + $0x34] sm:$0xf]  ;;  %v5921_v14 = vld [vmem:[%s10495_s0 + $0x68] sm:$0xf] }
  0x12   :  { %v5922_v15 = vld [vmem:[%s10495_s0 + $0x9c] sm:$0xf]  ;;  %v5923_v18 = vld [vmem:[%s10495_s0 + $0x4] sm:$0xf]  ;;  %v5924_v19 = vld [vmem:[%s10495_s0 + $0x38] sm:$0xf] }
  0x13   :  { %v5925_v20 = vld [vmem:[%s10495_s0 + $0x6c] sm:$0xf]  ;;  %v5926_v32 = vld [vmem:[%s10495_s0 + $0xa0] sm:$0xf]  ;;  %v5927_v47 = vld [vmem:[%s10495_s0 + $0x8] sm:$0xf] }
  0x14   :  { %192 = vmatpush.bf16.msra.mxu0 %v7765_v42  ;;  %233 = vmatpush.bf16.msra.mxu3 %v7765_v42  ;;  %v8091_v48 = vld [vmem:[%s10495_s0 + $0x3c] sm:$0xf]  ;;  %v58_v55 = vld [vmem:[%s10496_s2] sm:$0x7] }
  0x15   :  { %205 = vmatpush.bf16.msra.mxu1 %v7769_v43  ;;  %218 = vmatpush.bf16.msra.mxu2 %v7771_v44  ;;  %v8113_v63 = vperm.slane %v58_v55, 0  ;;  %v8119_v2 = vperm.slane %v58_v55, 1  ;;  %v8121_v4 = vperm.slane %v58_v55, 2 }
  0x18   :  { %193 = vmatpush.bf16.msra.mxu0 %v7793_v51  ;;  %234 = vmatpush.bf16.msra.mxu3 %v7793_v51 }
  0x19   :  { %206 = vmatpush.bf16.msra.mxu1 %v7797_v52  ;;  %219 = vmatpush.bf16.msra.mxu2 %v7799_v53 }
  0x1c   :  { %194 = vmatpush.bf16.msra.mxu0 %v7821_v60  ;;  %235 = vmatpush.bf16.msra.mxu3 %v7821_v60 }
  0x1d   :  { %207 = vmatpush.bf16.msra.mxu1 %v7825_v61  ;;  %220 = vmatpush.bf16.msra.mxu2 %v7827_v62 }
  0x20   :  { %195 = vmatpush.bf16.msra.mxu0 %v7849_v6  ;;  %236 = vmatpush.bf16.msra.mxu3 %v7849_v6 }
  0x21   :  { %208 = vmatpush.bf16.msra.mxu1 %v7853_v9  ;;  %221 = vmatpush.bf16.msra.mxu2 %v7855_v10 }
  0x23   :  { %237 = vmatmul.bf16.vlgmr.msra.gmra.mxu3 %v5920_v13  ;;  %196 = vmatmul.bf16.vlgmr.msra.gmra.mxu0 %v59_v11 }
  0x24   :  { %242 = vmatpush.bf16.msrb.mxu0 %v7657_v7  ;;  %286 = vmatpush.bf16.msrb.mxu3 %v7657_v7 }
  0x25   :  { %255 = vmatpush.bf16.msrb.mxu1 %v7659_v8  ;;  %273 = vmatpush.bf16.msrb.mxu2 %v7646_v3 }
  0x26   :  { %222 = vmatmul.bf16.vlgmr.msra.gmra.mxu2 %v59_v11  ;;  %209 = vmatmul.bf16.vlgmr.msra.gmra.mxu1 %v59_v11 }
  0x28   :  { %243 = vmatpush.bf16.msrb.mxu0 %v7685_v16  ;;  %287 = vmatpush.bf16.msrb.mxu3 %v7685_v16 }
  0x29   :  { %256 = vmatpush.bf16.msrb.mxu1 %v7687_v17  ;;  %274 = vmatpush.bf16.msrb.mxu2 %v7672_v12 }
  0x2c   :  { %244 = vmatpush.bf16.msrb.mxu0 %v7713_v25  ;;  %288 = vmatpush.bf16.msrb.mxu3 %v7713_v25 }
  0x2d   :  { %257 = vmatpush.bf16.msrb.mxu1 %v7715_v26  ;;  %275 = vmatpush.bf16.msrb.mxu2 %v7709_v24 }
  0x30   :  { %245 = vmatpush.bf16.msrb.mxu0 %v7741_v34  ;;  %289 = vmatpush.bf16.msrb.mxu3 %v7741_v34 }
  0x31   :  { %258 = vmatpush.bf16.msrb.mxu1 %v7743_v35  ;;  %276 = vmatpush.bf16.msrb.mxu2 %v7737_v33 }
  0x34   :  { %246 = vmatpush.bf16.msrb.mxu0 %v7769_v43  ;;  %290 = vmatpush.bf16.msrb.mxu3 %v7769_v43 }
  0x35   :  { %259 = vmatpush.bf16.msrb.mxu1 %v7771_v44  ;;  %277 = vmatpush.bf16.msrb.mxu2 %v7765_v42 }
  0x38   :  { %247 = vmatpush.bf16.msrb.mxu0 %v7797_v52  ;;  %291 = vmatpush.bf16.msrb.mxu3 %v7797_v52 }
  0x39   :  { %260 = vmatpush.bf16.msrb.mxu1 %v7799_v53  ;;  %278 = vmatpush.bf16.msrb.mxu2 %v7793_v51 }
  0x3c   :  { %248 = vmatpush.bf16.msrb.mxu0 %v7825_v61  ;;  %292 = vmatpush.bf16.msrb.mxu3 %v7825_v61 }
  0x3d   :  { %261 = vmatpush.bf16.msrb.mxu1 %v7827_v62  ;;  %279 = vmatpush.bf16.msrb.mxu2 %v7821_v60 }
  0x40   :  { %249 = vmatpush.bf16.msrb.mxu0 %v7853_v9  ;;  %293 = vmatpush.bf16.msrb.mxu3 %v7853_v9 }
  0x41   :  { %262 = vmatpush.bf16.msrb.mxu1 %v7855_v10  ;;  %280 = vmatpush.bf16.msrb.mxu2 %v7849_v6 }
  0x43   :  { %294 = vmatmul.bf16.vlgmr.msrb.gmra.mxu3 %v5921_v14  ;;  %250 = vmatmul.bf16.vlgmr.msrb.gmra.mxu0 %v5920_v13 }
  0x44   :  { %299 = vmatpush.bf16.msra.mxu0 %v7659_v8  ;;  %343 = vmatpush.bf16.msra.mxu3 %v7659_v8 }
  0x45   :  { %317 = vmatpush.bf16.msra.mxu1 %v7646_v3  ;;  %330 = vmatpush.bf16.msra.mxu2 %v7657_v7 }
  0x46   :  { %281 = vmatmul.bf16.vlgmr.msrb.gmra.mxu2 %v5921_v14  ;;  %263 = vmatmul.bf16.vlgmr.msrb.gmra.mxu1 %v5920_v13 }
  0x48   :  { %300 = vmatpush.bf16.msra.mxu0 %v7687_v17  ;;  %344 = vmatpush.bf16.msra.mxu3 %v7687_v17 }
  0x49   :  { %318 = vmatpush.bf16.msra.mxu1 %v7672_v12  ;;  %331 = vmatpush.bf16.msra.mxu2 %v7685_v16 }
  0x4c   :  { %301 = vmatpush.bf16.msra.mxu0 %v7715_v26  ;;  %345 = vmatpush.bf16.msra.mxu3 %v7715_v26 }
  0x4d   :  { %319 = vmatpush.bf16.msra.mxu1 %v7709_v24  ;;  %332 = vmatpush.bf16.msra.mxu2 %v7713_v25 }
  0x50   :  { %302 = vmatpush.bf16.msra.mxu0 %v7743_v35  ;;  %346 = vmatpush.bf16.msra.mxu3 %v7743_v35 }
  0x51   :  { %320 = vmatpush.bf16.msra.mxu1 %v7737_v33  ;;  %333 = vmatpush.bf16.msra.mxu2 %v7741_v34 }
  0x54   :  { %303 = vmatpush.bf16.msra.mxu0 %v7771_v44  ;;  %347 = vmatpush.bf16.msra.mxu3 %v7771_v44 }
  0x55   :  { %321 = vmatpush.bf16.msra.mxu1 %v7765_v42  ;;  %334 = vmatpush.bf16.msra.mxu2 %v7769_v43 }
  0x58   :  { %304 = vmatpush.bf16.msra.mxu0 %v7799_v53  ;;  %348 = vmatpush.bf16.msra.mxu3 %v7799_v53 }
  0x59   :  { %322 = vmatpush.bf16.msra.mxu1 %v7793_v51  ;;  %335 = vmatpush.bf16.msra.mxu2 %v7797_v52 }
  0x5c   :  { %305 = vmatpush.bf16.msra.mxu0 %v7827_v62  ;;  %349 = vmatpush.bf16.msra.mxu3 %v7827_v62 }
  0x5d   :  { %323 = vmatpush.bf16.msra.mxu1 %v7821_v60  ;;  %336 = vmatpush.bf16.msra.mxu2 %v7825_v61 }
  0x60   :  { %306 = vmatpush.bf16.msra.mxu0 %v7855_v10  ;;  %350 = vmatpush.bf16.msra.mxu3 %v7855_v10 }
  0x61   :  { %324 = vmatpush.bf16.msra.mxu1 %v7849_v6  ;;  %337 = vmatpush.bf16.msra.mxu2 %v7853_v9 }
  0x63   :  { %307 = vmatmul.bf16.vlgmr.msra.gmra.mxu0 %v5921_v14  ;;  %351 = vmatmul.bf16.vlgmr.msra.gmra.mxu3 %v5922_v15 }
  0x64   :  { %378 = vmatpush.bf16.msrb.mxu0 %v7646_v3  ;;  %419 = vmatpush.bf16.msrb.mxu3 %v7646_v3 }
  0x65   :  { %391 = vmatpush.bf16.msrb.mxu1 %v7657_v7  ;;  %404 = vmatpush.bf16.msrb.mxu2 %v7659_v8 }
  0x66   :  { %325 = vmatmul.bf16.vlgmr.msra.gmra.mxu1 %v5922_v15  ;;  %338 = vmatmul.bf16.vlgmr.msra.gmra.mxu2 %v5922_v15 }
  0x68   :  { %379 = vmatpush.bf16.msrb.mxu0 %v7672_v12  ;;  %420 = vmatpush.bf16.msrb.mxu3 %v7672_v12 }
  0x69   :  { %392 = vmatpush.bf16.msrb.mxu1 %v7685_v16  ;;  %405 = vmatpush.bf16.msrb.mxu2 %v7687_v17 }
  0x6c   :  { %380 = vmatpush.bf16.msrb.mxu0 %v7709_v24  ;;  %421 = vmatpush.bf16.msrb.mxu3 %v7709_v24 }
  0x6d   :  { %393 = vmatpush.bf16.msrb.mxu1 %v7713_v25  ;;  %406 = vmatpush.bf16.msrb.mxu2 %v7715_v26 }
  0x70   :  { %381 = vmatpush.bf16.msrb.mxu0 %v7737_v33  ;;  %422 = vmatpush.bf16.msrb.mxu3 %v7737_v33 }
  0x71   :  { %394 = vmatpush.bf16.msrb.mxu1 %v7741_v34  ;;  %407 = vmatpush.bf16.msrb.mxu2 %v7743_v35 }
  0x74   :  { %382 = vmatpush.bf16.msrb.mxu0 %v7765_v42  ;;  %423 = vmatpush.bf16.msrb.mxu3 %v7765_v42 }
  0x75   :  { %395 = vmatpush.bf16.msrb.mxu1 %v7769_v43  ;;  %408 = vmatpush.bf16.msrb.mxu2 %v7771_v44 }
  0x78   :  { %383 = vmatpush.bf16.msrb.mxu0 %v7793_v51  ;;  %424 = vmatpush.bf16.msrb.mxu3 %v7793_v51 }
  0x79   :  { %396 = vmatpush.bf16.msrb.mxu1 %v7797_v52  ;;  %409 = vmatpush.bf16.msrb.mxu2 %v7799_v53 }
  0x7c   :  { %384 = vmatpush.bf16.msrb.mxu0 %v7821_v60  ;;  %425 = vmatpush.bf16.msrb.mxu3 %v7821_v60 }
  0x7d   :  { %397 = vmatpush.bf16.msrb.mxu1 %v7825_v61  ;;  %410 = vmatpush.bf16.msrb.mxu2 %v7827_v62 }
  0x80   :  { %385 = vmatpush.bf16.msrb.mxu0 %v7849_v6  ;;  %426 = vmatpush.bf16.msrb.mxu3 %v7849_v6 }
  0x81   :  { %398 = vmatpush.bf16.msrb.mxu1 %v7853_v9  ;;  %411 = vmatpush.bf16.msrb.mxu2 %v7855_v10 }
  0x83   :  { %427 = vmatmul.bf16.vlgmr.msrb.gmra.mxu3 %v5924_v19  ;;  %386 = vmatmul.bf16.vlgmr.msrb.gmra.mxu0 %v5923_v18 }
  0x84   :  { %432 = vmatpush.bf16.msra.mxu0 %v7657_v7  ;;  %476 = vmatpush.bf16.msra.mxu3 %v7657_v7 }
  0x85   :  { %445 = vmatpush.bf16.msra.mxu1 %v7659_v8  ;;  %463 = vmatpush.bf16.msra.mxu2 %v7646_v3 }
  0x86   :  { %412 = vmatmul.bf16.vlgmr.msrb.gmra.mxu2 %v5923_v18  ;;  %399 = vmatmul.bf16.vlgmr.msrb.gmra.mxu1 %v5923_v18 }
  0x88   :  { %433 = vmatpush.bf16.msra.mxu0 %v7685_v16  ;;  %477 = vmatpush.bf16.msra.mxu3 %v7685_v16 }
  0x89   :  { %446 = vmatpush.bf16.msra.mxu1 %v7687_v17  ;;  %464 = vmatpush.bf16.msra.mxu2 %v7672_v12 }
  0x8c   :  { %434 = vmatpush.bf16.msra.mxu0 %v7713_v25  ;;  %478 = vmatpush.bf16.msra.mxu3 %v7713_v25 }
  0x8d   :  { %447 = vmatpush.bf16.msra.mxu1 %v7715_v26  ;;  %465 = vmatpush.bf16.msra.mxu2 %v7709_v24 }
  0x90   :  { %435 = vmatpush.bf16.msra.mxu0 %v7741_v34  ;;  %479 = vmatpush.bf16.msra.mxu3 %v7741_v34 }
  0x91   :  { %448 = vmatpush.bf16.msra.mxu1 %v7743_v35  ;;  %466 = vmatpush.bf16.msra.mxu2 %v7737_v33 }
  0x94   :  { %436 = vmatpush.bf16.msra.mxu0 %v7769_v43  ;;  %480 = vmatpush.bf16.msra.mxu3 %v7769_v43 }
  0x95   :  { %449 = vmatpush.bf16.msra.mxu1 %v7771_v44  ;;  %467 = vmatpush.bf16.msra.mxu2 %v7765_v42 }
  0x98   :  { %437 = vmatpush.bf16.msra.mxu0 %v7797_v52  ;;  %481 = vmatpush.bf16.msra.mxu3 %v7797_v52 }
  0x99   :  { %450 = vmatpush.bf16.msra.mxu1 %v7799_v53  ;;  %468 = vmatpush.bf16.msra.mxu2 %v7793_v51 }
  0x9c   :  { %438 = vmatpush.bf16.msra.mxu0 %v7825_v61  ;;  %482 = vmatpush.bf16.msra.mxu3 %v7825_v61 }
  0x9d   :  { %451 = vmatpush.bf16.msra.mxu1 %v7827_v62  ;;  %469 = vmatpush.bf16.msra.mxu2 %v7821_v60 }
  0xa0   :  { %439 = vmatpush.bf16.msra.mxu0 %v7853_v9  ;;  %483 = vmatpush.bf16.msra.mxu3 %v7853_v9  ;;  %v8020_v21 = vpop.f32.mrf.mxu0 }
  0xa1   :  { %452 = vmatpush.bf16.msra.mxu1 %v7855_v10  ;;  %470 = vmatpush.bf16.msra.mxu2 %v7849_v6 }
  0xa3   :  { %484 = vmatmul.bf16.vlgmr.msra.gmra.mxu3 %v5925_v20  ;;  %440 = vmatmul.bf16.vlgmr.msra.gmra.mxu0 %v5924_v19  ;;  %v8022_v22 = vpop.f32.mrf.mxu1 }
  0xa4   :  { %489 = vmatpush.bf16.msrb.mxu0 %v7659_v8  ;;  %533 = vmatpush.bf16.msrb.mxu3 %v7659_v8 }
  0xa5   :  { %507 = vmatpush.bf16.msrb.mxu1 %v7646_v3  ;;  %520 = vmatpush.bf16.msrb.mxu2 %v7657_v7 }
  0xa6   :  { %471 = vmatmul.bf16.vlgmr.msra.gmra.mxu2 %v5925_v20  ;;  %453 = vmatmul.bf16.vlgmr.msra.gmra.mxu1 %v5924_v19  ;;  %v8032_v27 = vpop.f32.mrf.mxu3 }
  0xa7   :  { %v268_v49 = vmax.f32 %v8020_v21, %v8032_v27 }
  0xa8   :  { %490 = vmatpush.bf16.msrb.mxu0 %v7687_v17  ;;  %534 = vmatpush.bf16.msrb.mxu3 %v7687_v17  ;;  %v199_v28 = vpop.f32.mrf.mxu0 }
  0xa9   :  { %508 = vmatpush.bf16.msrb.mxu1 %v7672_v12  ;;  %521 = vmatpush.bf16.msrb.mxu2 %v7685_v16  ;;  %v8030_v23 = vpop.f32.mrf.mxu2 }
  0xab   :  { %v212_v29 = vpop.f32.mrf.mxu1 }
  0xac   :  { %491 = vmatpush.bf16.msrb.mxu0 %v7715_v26  ;;  %535 = vmatpush.bf16.msrb.mxu3 %v7715_v26 }
  0xad   :  { %509 = vmatpush.bf16.msrb.mxu1 %v7709_v24  ;;  %522 = vmatpush.bf16.msrb.mxu2 %v7713_v25 }
  0xae   :  { %v240_v31 = vpop.f32.mrf.mxu3 }
  0xb0   :  { %492 = vmatpush.bf16.msrb.mxu0 %v7743_v35  ;;  %536 = vmatpush.bf16.msrb.mxu3 %v7743_v35 }
  0xb1   :  { %510 = vmatpush.bf16.msrb.mxu1 %v7737_v33  ;;  %523 = vmatpush.bf16.msrb.mxu2 %v7741_v34  ;;  %v225_v30 = vpop.f32.mrf.mxu2 }
  0xb4   :  { %493 = vmatpush.bf16.msrb.mxu0 %v7771_v44  ;;  %537 = vmatpush.bf16.msrb.mxu3 %v7771_v44 }
  0xb5   :  { %511 = vmatpush.bf16.msrb.mxu1 %v7765_v42  ;;  %524 = vmatpush.bf16.msrb.mxu2 %v7769_v43 }
  0xb8   :  { %494 = vmatpush.bf16.msrb.mxu0 %v7799_v53  ;;  %538 = vmatpush.bf16.msrb.mxu3 %v7799_v53 }
  0xb9   :  { %512 = vmatpush.bf16.msrb.mxu1 %v7793_v51  ;;  %525 = vmatpush.bf16.msrb.mxu2 %v7797_v52 }
  0xbc   :  { %495 = vmatpush.bf16.msrb.mxu0 %v7827_v62  ;;  %539 = vmatpush.bf16.msrb.mxu3 %v7827_v62 }
  0xbd   :  { %513 = vmatpush.bf16.msrb.mxu1 %v7821_v60  ;;  %526 = vmatpush.bf16.msrb.mxu2 %v7825_v61 }
  0xc0   :  { %496 = vmatpush.bf16.msrb.mxu0 %v7855_v10  ;;  %540 = vmatpush.bf16.msrb.mxu3 %v7855_v10  ;;  %v251_v36 = vpop.f32.mrf.mxu0 }
  0xc1   :  { %514 = vmatpush.bf16.msrb.mxu1 %v7849_v6  ;;  %527 = vmatpush.bf16.msrb.mxu2 %v7853_v9  ;;  %v269_v57 = vmax.f32 %v8022_v22, %v251_v36 }
  0xc3   :  { %497 = vmatmul.bf16.vlgmr.msrb.gmra.mxu0 %v5925_v20  ;;  %541 = vmatmul.bf16.vlgmr.msrb.gmra.mxu3 %v5926_v32  ;;  %v264_v37 = vpop.f32.mrf.mxu1 }
  0xc4   :  { %561 = vmatpush.bf16.msra.mxu0 %v7646_v3  ;;  %602 = vmatpush.bf16.msra.mxu3 %v7646_v3  ;;  %v270_v58 = vmax.f32 %v8030_v23, %v264_v37 }
  0xc5   :  { %574 = vmatpush.bf16.msra.mxu1 %v7657_v7  ;;  %587 = vmatpush.bf16.msra.mxu2 %v7659_v8 }
  0xc6   :  { %515 = vmatmul.bf16.vlgmr.msrb.gmra.mxu1 %v5926_v32  ;;  %528 = vmatmul.bf16.vlgmr.msrb.gmra.mxu2 %v5926_v32  ;;  %v295_v39 = vpop.f32.mrf.mxu3  ;;  %v5929_v32 = vld [vmem:[%s10495_s0 + $0x70] sm:$0xf] }
  0xc7   :  { %v313_v0 = vmax.f32 %v269_v57, %v295_v39 }
  0xc8   :  { %562 = vmatpush.bf16.msra.mxu0 %v7672_v12  ;;  %603 = vmatpush.bf16.msra.mxu3 %v7672_v12  ;;  %v253_v40 = vpop.f32.mrf.mxu0 }
  0xc9   :  { %575 = vmatpush.bf16.msra.mxu1 %v7685_v16  ;;  %588 = vmatpush.bf16.msra.mxu2 %v7687_v17  ;;  %v282_v38 = vpop.f32.mrf.mxu2 }
  0xca   :  { %v312_v56 = vmax.f32 %v268_v49, %v282_v38 }
  0xcb   :  { %v266_v41 = vpop.f32.mrf.mxu1 }
  0xcc   :  { %563 = vmatpush.bf16.msra.mxu0 %v7709_v24  ;;  %604 = vmatpush.bf16.msra.mxu3 %v7709_v24 }
  0xcd   :  { %576 = vmatpush.bf16.msra.mxu1 %v7713_v25  ;;  %589 = vmatpush.bf16.msra.mxu2 %v7715_v26 }
  0xce   :  { %v297_v46 = vpop.f32.mrf.mxu3 }
  0xd0   :  { %564 = vmatpush.bf16.msra.mxu0 %v7737_v33  ;;  %605 = vmatpush.bf16.msra.mxu3 %v7737_v33 }
  0xd1   :  { %577 = vmatpush.bf16.msra.mxu1 %v7741_v34  ;;  %590 = vmatpush.bf16.msra.mxu2 %v7743_v35  ;;  %v284_v45 = vpop.f32.mrf.mxu2 }
  0xd4   :  { %565 = vmatpush.bf16.msra.mxu0 %v7765_v42  ;;  %606 = vmatpush.bf16.msra.mxu3 %v7765_v42 }
  0xd5   :  { %578 = vmatpush.bf16.msra.mxu1 %v7769_v43  ;;  %591 = vmatpush.bf16.msra.mxu2 %v7771_v44 }
  0xd8   :  { %566 = vmatpush.bf16.msra.mxu0 %v7793_v51  ;;  %607 = vmatpush.bf16.msra.mxu3 %v7793_v51 }
  0xd9   :  { %579 = vmatpush.bf16.msra.mxu1 %v7797_v52  ;;  %592 = vmatpush.bf16.msra.mxu2 %v7799_v53 }
  0xdc   :  { %567 = vmatpush.bf16.msra.mxu0 %v7821_v60  ;;  %608 = vmatpush.bf16.msra.mxu3 %v7821_v60 }
  0xdd   :  { %580 = vmatpush.bf16.msra.mxu1 %v7825_v61  ;;  %593 = vmatpush.bf16.msra.mxu2 %v7827_v62 }
  0xe0   :  { %568 = vmatpush.bf16.msra.mxu0 %v7849_v6  ;;  %609 = vmatpush.bf16.msra.mxu3 %v7849_v6  ;;  %v308_v50 = vpop.f32.mrf.mxu0 }
  0xe1   :  { %581 = vmatpush.bf16.msra.mxu1 %v7853_v9  ;;  %594 = vmatpush.bf16.msra.mxu2 %v7855_v10  ;;  %v314_v1 = vmax.f32 %v270_v58, %v308_v50 }
  0xe3   :  { %610 = vmatmul.bf16.vlgmr.msra.gmra.mxu3 %v8091_v48  ;;  %569 = vmatmul.bf16.vlgmr.msra.gmra.mxu0 %v5927_v47  ;;  %v326_v54 = vpop.f32.mrf.mxu1 }
  0xe4   :  { %615 = vmatpush.bf16.msrb.mxu0 %v7657_v7  ;;  %659 = vmatpush.bf16.msrb.mxu3 %v7657_v7  ;;  %v356_v59 = vmax.f32 %v312_v56, %v326_v54 }
  0xe5   :  { %628 = vmatpush.bf16.msrb.mxu1 %v7659_v8  ;;  %646 = vmatpush.bf16.msrb.mxu2 %v7646_v3 }
  0xe6   :  { %595 = vmatmul.bf16.vlgmr.msra.gmra.mxu2 %v5927_v47  ;;  %582 = vmatmul.bf16.vlgmr.msra.gmra.mxu1 %v5927_v47  ;;  %v352_v11 = vpop.f32.mrf.mxu3  ;;  %v366_v13 = vadd.f32 %v8113_v63, %v356_v59  ;;  %v5930_v47 = vld [vmem:[%s10495_s0 + $0xa4] sm:$0xf]  ;;  %v5931_v59 = vld [vmem:[%s10495_s0 + $0xc] sm:$0xf] }
  0xe7   :  { %v358_v15 = vmax.f32 %v314_v1, %v352_v11 }
  0xe8   :  { %616 = vmatpush.bf16.msrb.mxu0 %v7685_v16  ;;  %660 = vmatpush.bf16.msrb.mxu3 %v7685_v16  ;;  %v310_v18 = vpop.f32.mrf.mxu0  ;;  %v369_v22 = vmax.f32 %v366_v13, 0.0 }
  0xe9   :  { %629 = vmatpush.bf16.msrb.mxu1 %v7687_v17  ;;  %647 = vmatpush.bf16.msrb.mxu2 %v7672_v12  ;;  %v339_v5 = vpop.f32.mrf.mxu2  ;;  %v368_v21 = vadd.f32 %v8121_v4, %v358_v15 }
  0xea   :  { %v357_v14 = vmax.f32 %v313_v0, %v339_v5  ;;  %v8228_v0 = vld [vmem:[%s10495_s0 + $0x40] sm:$0xf] }
  0xeb   :  { %v328_v19 = vpop.f32.mrf.mxu1  ;;  %v371_v27 = vmax.f32 %v368_v21, 0.0 }
  0xec   :  { %617 = vmatpush.bf16.msrb.mxu0 %v7713_v25  ;;  %661 = vmatpush.bf16.msrb.mxu3 %v7713_v25  ;;  %v367_v20 = vadd.f32 %v8119_v2, %v357_v14 }
  0xed   :  { %630 = vmatpush.bf16.msrb.mxu1 %v7715_v26  ;;  %648 = vmatpush.bf16.msrb.mxu2 %v7709_v24  ;;  %v373_v29 = vpack.c.bf16 %v371_v27, %v371_v27 }
  0xee   :  { %v370_v23 = vmax.f32 %v367_v20, 0.0  ;;  %v354_v31 = vpop.f32.mrf.mxu3 }
  0xef   :  { %375 = vst [vmem:[#allocation2 + $0x8] sm:$0xf] %v373_v29 }
  0xf0   :  { %618 = vmatpush.bf16.msrb.mxu0 %v7741_v34  ;;  %662 = vmatpush.bf16.msrb.mxu3 %v7741_v34  ;;  %v372_v28 = vpack.c.bf16 %v370_v23, %v369_v22 }
  0xf1   :  { %631 = vmatpush.bf16.msrb.mxu1 %v7743_v35  ;;  %649 = vmatpush.bf16.msrb.mxu2 %v7737_v33  ;;  %v341_v30 = vpop.f32.mrf.mxu2 }
  0xf2   :  { %374 = vst [vmem:[#allocation2] sm:$0xff] %v372_v28 }
  0xf4   :  { %619 = vmatpush.bf16.msrb.mxu0 %v7769_v43  ;;  %663 = vmatpush.bf16.msrb.mxu3 %v7769_v43 }
  0xf5   :  { %632 = vmatpush.bf16.msrb.mxu1 %v7771_v44  ;;  %650 = vmatpush.bf16.msrb.mxu2 %v7765_v42 }
  0xf8   :  { %620 = vmatpush.bf16.msrb.mxu0 %v7797_v52  ;;  %664 = vmatpush.bf16.msrb.mxu3 %v7797_v52 }
  0xf9   :  { %633 = vmatpush.bf16.msrb.mxu1 %v7799_v53  ;;  %651 = vmatpush.bf16.msrb.mxu2 %v7793_v51 }
  0xfc   :  { %621 = vmatpush.bf16.msrb.mxu0 %v7825_v61  ;;  %665 = vmatpush.bf16.msrb.mxu3 %v7825_v61 }
  0xfd   :  { %634 = vmatpush.bf16.msrb.mxu1 %v7827_v62  ;;  %652 = vmatpush.bf16.msrb.mxu2 %v7821_v60 }
 0x100   :  { %622 = vmatpush.bf16.msrb.mxu0 %v7853_v9  ;;  %666 = vmatpush.bf16.msrb.mxu3 %v7853_v9  ;;  %v8157_v36 = vpop.f32.mrf.mxu0 }
 0x101   :  { %635 = vmatpush.bf16.msrb.mxu1 %v7855_v10  ;;  %653 = vmatpush.bf16.msrb.mxu2 %v7849_v6 }
 0x103   :  { %667 = vmatmul.bf16.vlgmr.msrb.gmra.mxu3 %v5929_v32  ;;  %623 = vmatmul.bf16.vlgmr.msrb.gmra.mxu0 %v8091_v48  ;;  %v8159_v37 = vpop.f32.mrf.mxu1 }
 0x104   :  { %672 = vmatpush.bf16.msra.mxu0 %v7659_v8  ;;  %716 = vmatpush.bf16.msra.mxu3 %v7659_v8 }
 0x105   :  { %690 = vmatpush.bf16.msra.mxu1 %v7646_v3  ;;  %703 = vmatpush.bf16.msra.mxu2 %v7657_v7 }
 0x106   :  { %654 = vmatmul.bf16.vlgmr.msrb.gmra.mxu2 %v5929_v32  ;;  %636 = vmatmul.bf16.vlgmr.msrb.gmra.mxu1 %v8091_v48  ;;  %v8169_v39 = vpop.f32.mrf.mxu3 }
 0x107   :  { %v458_v1 = vmax.f32 %v8157_v36, %v8169_v39 }
 0x108   :  { %673 = vmatpush.bf16.msra.mxu0 %v7687_v17  ;;  %717 = vmatpush.bf16.msra.mxu3 %v7687_v17  ;;  %v389_v40 = vpop.f32.mrf.mxu0 }
 0x109   :  { %691 = vmatpush.bf16.msra.mxu1 %v7672_v12  ;;  %704 = vmatpush.bf16.msra.mxu2 %v7685_v16  ;;  %v8167_v38 = vpop.f32.mrf.mxu2 }
 0x10b   :  { %v402_v41 = vpop.f32.mrf.mxu1 }
 0x10c   :  { %674 = vmatpush.bf16.msra.mxu0 %v7715_v26  ;;  %718 = vmatpush.bf16.msra.mxu3 %v7715_v26 }
 0x10d   :  { %692 = vmatpush.bf16.msra.mxu1 %v7709_v24  ;;  %705 = vmatpush.bf16.msra.mxu2 %v7713_v25 }
 0x10e   :  { %v430_v46 = vpop.f32.mrf.mxu3 }
 0x10f   :  { %v5933_v46 = vld [vmem:[%s10495_s0 + $0x74] sm:$0xf] }
 0x110   :  { %675 = vmatpush.bf16.msra.mxu0 %v7743_v35  ;;  %719 = vmatpush.bf16.msra.mxu3 %v7743_v35 }
 0x111   :  { %693 = vmatpush.bf16.msra.mxu1 %v7737_v33  ;;  %706 = vmatpush.bf16.msra.mxu2 %v7741_v34  ;;  %v415_v45 = vpop.f32.mrf.mxu2 }
 0x114   :  { %676 = vmatpush.bf16.msra.mxu0 %v7771_v44  ;;  %720 = vmatpush.bf16.msra.mxu3 %v7771_v44 }
 0x115   :  { %694 = vmatpush.bf16.msra.mxu1 %v7765_v42  ;;  %707 = vmatpush.bf16.msra.mxu2 %v7769_v43 }
 0x118   :  { %677 = vmatpush.bf16.msra.mxu0 %v7799_v53  ;;  %721 = vmatpush.bf16.msra.mxu3 %v7799_v53 }
 0x119   :  { %695 = vmatpush.bf16.msra.mxu1 %v7793_v51  ;;  %708 = vmatpush.bf16.msra.mxu2 %v7797_v52 }
 0x11c   :  { %678 = vmatpush.bf16.msra.mxu0 %v7827_v62  ;;  %722 = vmatpush.bf16.msra.mxu3 %v7827_v62 }
 0x11d   :  { %696 = vmatpush.bf16.msra.mxu1 %v7821_v60  ;;  %709 = vmatpush.bf16.msra.mxu2 %v7825_v61 }
 0x120   :  { %679 = vmatpush.bf16.msra.mxu0 %v7855_v10  ;;  %723 = vmatpush.bf16.msra.mxu3 %v7855_v10  ;;  %v441_v48 = vpop.f32.mrf.mxu0 }
 0x121   :  { %697 = vmatpush.bf16.msra.mxu1 %v7849_v6  ;;  %710 = vmatpush.bf16.msra.mxu2 %v7853_v9  ;;  %v459_v14 = vmax.f32 %v8159_v37, %v441_v48 }
 0x123   :  { %680 = vmatmul.bf16.vlgmr.msra.gmra.mxu0 %v5929_v32  ;;  %724 = vmatmul.bf16.vlgmr.msra.gmra.mxu3 %v5930_v47  ;;  %v454_v49 = vpop.f32.mrf.mxu1 }
 0x124   :  { %744 = vmatpush.bf16.msrb.mxu0 %v7646_v3  ;;  %785 = vmatpush.bf16.msrb.mxu3 %v7646_v3  ;;  %v460_v15 = vmax.f32 %v8167_v38, %v454_v49 }
 0x125   :  { %757 = vmatpush.bf16.msrb.mxu1 %v7657_v7  ;;  %770 = vmatpush.bf16.msrb.mxu2 %v7659_v8 }
 0x126   :  { %698 = vmatmul.bf16.vlgmr.msra.gmra.mxu1 %v5930_v47  ;;  %711 = vmatmul.bf16.vlgmr.msra.gmra.mxu2 %v5930_v47  ;;  %v485_v54 = vpop.f32.mrf.mxu3 }
 0x127   :  { %v503_v19 = vmax.f32 %v459_v14, %v485_v54 }
 0x128   :  { %745 = vmatpush.bf16.msrb.mxu0 %v7672_v12  ;;  %786 = vmatpush.bf16.msrb.mxu3 %v7672_v12  ;;  %v443_v55 = vpop.f32.mrf.mxu0 }
 0x129   :  { %758 = vmatpush.bf16.msrb.mxu1 %v7685_v16  ;;  %771 = vmatpush.bf16.msrb.mxu2 %v7687_v17  ;;  %v472_v50 = vpop.f32.mrf.mxu2 }
 0x12a   :  { %v502_v13 = vmax.f32 %v458_v1, %v472_v50 }
 0x12b   :  { %v456_v56 = vpop.f32.mrf.mxu1 }
 0x12c   :  { %746 = vmatpush.bf16.msrb.mxu0 %v7709_v24  ;;  %787 = vmatpush.bf16.msrb.mxu3 %v7709_v24 }
 0x12d   :  { %759 = vmatpush.bf16.msrb.mxu1 %v7713_v25  ;;  %772 = vmatpush.bf16.msrb.mxu2 %v7715_v26 }
 0x12e   :  { %v487_v58 = vpop.f32.mrf.mxu3 }
 0x12f   :  { %v5934_v58 = vld [vmem:[%s10495_s0 + $0xa8] sm:$0xf] }
 0x130   :  { %747 = vmatpush.bf16.msrb.mxu0 %v7737_v33  ;;  %788 = vmatpush.bf16.msrb.mxu3 %v7737_v33 }
 0x131   :  { %760 = vmatpush.bf16.msrb.mxu1 %v7741_v34  ;;  %773 = vmatpush.bf16.msrb.mxu2 %v7743_v35  ;;  %v474_v57 = vpop.f32.mrf.mxu2 }
 0x134   :  { %748 = vmatpush.bf16.msrb.mxu0 %v7765_v42  ;;  %789 = vmatpush.bf16.msrb.mxu3 %v7765_v42 }
 0x135   :  { %761 = vmatpush.bf16.msrb.mxu1 %v7769_v43  ;;  %774 = vmatpush.bf16.msrb.mxu2 %v7771_v44 }
 0x138   :  { %749 = vmatpush.bf16.msrb.mxu0 %v7793_v51  ;;  %790 = vmatpush.bf16.msrb.mxu3 %v7793_v51 }
 0x139   :  { %762 = vmatpush.bf16.msrb.mxu1 %v7797_v52  ;;  %775 = vmatpush.bf16.msrb.mxu2 %v7799_v53 }
 0x13c   :  { %750 = vmatpush.bf16.msrb.mxu0 %v7821_v60  ;;  %791 = vmatpush.bf16.msrb.mxu3 %v7821_v60 }
 0x13d   :  { %763 = vmatpush.bf16.msrb.mxu1 %v7825_v61  ;;  %776 = vmatpush.bf16.msrb.mxu2 %v7827_v62 }
 0x140   :  { %751 = vmatpush.bf16.msrb.mxu0 %v7849_v6  ;;  %792 = vmatpush.bf16.msrb.mxu3 %v7849_v6  ;;  %v498_v5 = vpop.f32.mrf.mxu0 }
 0x141   :  { %764 = vmatpush.bf16.msrb.mxu1 %v7853_v9  ;;  %777 = vmatpush.bf16.msrb.mxu2 %v7855_v10  ;;  %v504_v20 = vmax.f32 %v460_v15, %v498_v5 }
 0x143   :  { %793 = vmatmul.bf16.vlgmr.msrb.gmra.mxu3 %v8228_v0  ;;  %752 = vmatmul.bf16.vlgmr.msrb.gmra.mxu0 %v5931_v59  ;;  %v516_v11 = vpop.f32.mrf.mxu1 }
 0x144   :  { %798 = vmatpush.bf16.msra.mxu0 %v7657_v7  ;;  %842 = vmatpush.bf16.msra.mxu3 %v7657_v7  ;;  %v546_v18 = vmax.f32 %v502_v13, %v516_v11 }
 0x145   :  { %811 = vmatpush.bf16.msra.mxu1 %v7659_v8  ;;  %829 = vmatpush.bf16.msra.mxu2 %v7646_v3 }
 0x146   :  { %778 = vmatmul.bf16.vlgmr.msrb.gmra.mxu2 %v5931_v59  ;;  %765 = vmatmul.bf16.vlgmr.msrb.gmra.mxu1 %v5931_v59  ;;  %v542_v22 = vpop.f32.mrf.mxu3  ;;  %v549_v23 = vadd.f32 %v546_v18, %v8113_v63  ;;  %v5935_v18 = vld [vmem:[%s10495_s0 + $0x10] sm:$0xf] }
 0x147   :  { %v548_v28 = vmax.f32 %v504_v20, %v542_v22 }
 0x148   :  { %799 = vmatpush.bf16.msra.mxu0 %v7685_v16  ;;  %843 = vmatpush.bf16.msra.mxu3 %v7685_v16  ;;  %v500_v29 = vpop.f32.mrf.mxu0  ;;  %v552_v36 = vmax.f32 %v549_v23, 0.0 }
 0x149   :  { %812 = vmatpush.bf16.msra.mxu1 %v7687_v17  ;;  %830 = vmatpush.bf16.msra.mxu2 %v7672_v12  ;;  %v529_v21 = vpop.f32.mrf.mxu2  ;;  %v551_v32 = vadd.f32 %v548_v28, %v8121_v4 }
 0x14a   :  { %v547_v27 = vmax.f32 %v503_v19, %v529_v21  ;;  %v8356_v19 = vld [vmem:[%s10495_s0 + $0x44] sm:$0xf] }
 0x14b   :  { %v518_v30 = vpop.f32.mrf.mxu1  ;;  %v554_v38 = vmax.f32 %v551_v32, 0.0 }
 0x14c   :  { %800 = vmatpush.bf16.msra.mxu0 %v7713_v25  ;;  %844 = vmatpush.bf16.msra.mxu3 %v7713_v25  ;;  %v550_v31 = vadd.f32 %v547_v27, %v8119_v2 }
 0x14d   :  { %813 = vmatpush.bf16.msra.mxu1 %v7715_v26  ;;  %831 = vmatpush.bf16.msra.mxu2 %v7709_v24  ;;  %v556_v40 = vpack.c.bf16 %v554_v38, %v554_v38 }
 0x14e   :  { %v553_v37 = vmax.f32 %v550_v31, 0.0  ;;  %v544_v45 = vpop.f32.mrf.mxu3 }
 0x14f   :  { %558 = vst [vmem:[#allocation2 + $0x14] sm:$0xf] %v556_v40 }
 0x150   :  { %801 = vmatpush.bf16.msra.mxu0 %v7741_v34  ;;  %845 = vmatpush.bf16.msra.mxu3 %v7741_v34  ;;  %v555_v39 = vpack.c.bf16 %v553_v37, %v552_v36 }
 0x151   :  { %814 = vmatpush.bf16.msra.mxu1 %v7743_v35  ;;  %832 = vmatpush.bf16.msra.mxu2 %v7737_v33  ;;  %v531_v41 = vpop.f32.mrf.mxu2 }
 0x152   :  { %557 = vst [vmem:[#allocation2 + $0xc] sm:$0xff] %v555_v39 }
 0x154   :  { %802 = vmatpush.bf16.msra.mxu0 %v7769_v43  ;;  %846 = vmatpush.bf16.msra.mxu3 %v7769_v43 }
 0x155   :  { %815 = vmatpush.bf16.msra.mxu1 %v7771_v44  ;;  %833 = vmatpush.bf16.msra.mxu2 %v7765_v42 }
 0x158   :  { %803 = vmatpush.bf16.msra.mxu0 %v7797_v52  ;;  %847 = vmatpush.bf16.msra.mxu3 %v7797_v52 }
 0x159   :  { %816 = vmatpush.bf16.msra.mxu1 %v7799_v53  ;;  %834 = vmatpush.bf16.msra.mxu2 %v7793_v51 }
 0x15c   :  { %804 = vmatpush.bf16.msra.mxu0 %v7825_v61  ;;  %848 = vmatpush.bf16.msra.mxu3 %v7825_v61 }
 0x15d   :  { %817 = vmatpush.bf16.msra.mxu1 %v7827_v62  ;;  %835 = vmatpush.bf16.msra.mxu2 %v7821_v60 }
 0x160   :  { %805 = vmatpush.bf16.msra.mxu0 %v7853_v9  ;;  %849 = vmatpush.bf16.msra.mxu3 %v7853_v9  ;;  %v8285_v47 = vpop.f32.mrf.mxu0 }
 0x161   :  { %818 = vmatpush.bf16.msra.mxu1 %v7855_v10  ;;  %836 = vmatpush.bf16.msra.mxu2 %v7849_v6 }
 0x163   :  { %850 = vmatmul.bf16.vlgmr.msra.gmra.mxu3 %v5933_v46  ;;  %806 = vmatmul.bf16.vlgmr.msra.gmra.mxu0 %v8228_v0  ;;  %v8287_v48 = vpop.f32.mrf.mxu1 }
 0x164   :  { %855 = vmatpush.bf16.msrb.mxu0 %v7659_v8  ;;  %899 = vmatpush.bf16.msrb.mxu3 %v7659_v8 }
 0x165   :  { %873 = vmatpush.bf16.msrb.mxu1 %v7646_v3  ;;  %886 = vmatpush.bf16.msrb.mxu2 %v7657_v7 }
 0x166   :  { %837 = vmatmul.bf16.vlgmr.msra.gmra.mxu2 %v5933_v46  ;;  %819 = vmatmul.bf16.vlgmr.msra.gmra.mxu1 %v8228_v0  ;;  %v8297_v50 = vpop.f32.mrf.mxu3 }
 0x167   :  { %v641_v20 = vmax.f32 %v8285_v47, %v8297_v50 }
 0x168   :  { %856 = vmatpush.bf16.msrb.mxu0 %v7687_v17  ;;  %900 = vmatpush.bf16.msrb.mxu3 %v7687_v17  ;;  %v572_v54 = vpop.f32.mrf.mxu0 }
 0x169   :  { %874 = vmatpush.bf16.msrb.mxu1 %v7672_v12  ;;  %887 = vmatpush.bf16.msrb.mxu2 %v7685_v16  ;;  %v8295_v49 = vpop.f32.mrf.mxu2 }
 0x16b   :  { %v585_v55 = vpop.f32.mrf.mxu1 }
 0x16c   :  { %857 = vmatpush.bf16.msrb.mxu0 %v7715_v26  ;;  %901 = vmatpush.bf16.msrb.mxu3 %v7715_v26 }
 0x16d   :  { %875 = vmatpush.bf16.msrb.mxu1 %v7709_v24  ;;  %888 = vmatpush.bf16.msrb.mxu2 %v7713_v25 }
 0x16e   :  { %v613_v57 = vpop.f32.mrf.mxu3 }
 0x16f   :  { %v5937_v57 = vld [vmem:[%s10495_s0 + $0x78] sm:$0xf] }
 0x170   :  { %858 = vmatpush.bf16.msrb.mxu0 %v7743_v35  ;;  %902 = vmatpush.bf16.msrb.mxu3 %v7743_v35 }
 0x171   :  { %876 = vmatpush.bf16.msrb.mxu1 %v7737_v33  ;;  %889 = vmatpush.bf16.msrb.mxu2 %v7741_v34  ;;  %v598_v56 = vpop.f32.mrf.mxu2 }
 0x174   :  { %859 = vmatpush.bf16.msrb.mxu0 %v7771_v44  ;;  %903 = vmatpush.bf16.msrb.mxu3 %v7771_v44 }
 0x175   :  { %877 = vmatpush.bf16.msrb.mxu1 %v7765_v42  ;;  %890 = vmatpush.bf16.msrb.mxu2 %v7769_v43 }
 0x178   :  { %860 = vmatpush.bf16.msrb.mxu0 %v7799_v53  ;;  %904 = vmatpush.bf16.msrb.mxu3 %v7799_v53 }
 0x179   :  { %878 = vmatpush.bf16.msrb.mxu1 %v7793_v51  ;;  %891 = vmatpush.bf16.msrb.mxu2 %v7797_v52 }
 0x17c   :  { %861 = vmatpush.bf16.msrb.mxu0 %v7827_v62  ;;  %905 = vmatpush.bf16.msrb.mxu3 %v7827_v62 }
 0x17d   :  { %879 = vmatpush.bf16.msrb.mxu1 %v7821_v60  ;;  %892 = vmatpush.bf16.msrb.mxu2 %v7825_v61 }
 0x180   :  { %862 = vmatpush.bf16.msrb.mxu0 %v7855_v10  ;;  %906 = vmatpush.bf16.msrb.mxu3 %v7855_v10  ;;  %v624_v59 = vpop.f32.mrf.mxu0 }
 0x181   :  { %880 = vmatpush.bf16.msrb.mxu1 %v7849_v6  ;;  %893 = vmatpush.bf16.msrb.mxu2 %v7853_v9  ;;  %v642_v27 = vmax.f32 %v8287_v48, %v624_v59 }
 0x183   :  { %863 = vmatmul.bf16.vlgmr.msrb.gmra.mxu0 %v5933_v46  ;;  %907 = vmatmul.bf16.vlgmr.msrb.gmra.mxu3 %v5934_v58  ;;  %v637_v0 = vpop.f32.mrf.mxu1 }
 0x184   :  { %927 = vmatpush.bf16.msra.mxu0 %v7646_v3  ;;  %968 = vmatpush.bf16.msra.mxu3 %v7646_v3  ;;  %v643_v28 = vmax.f32 %v8295_v49, %v637_v0 }
 0x185   :  { %940 = vmatpush.bf16.msra.mxu1 %v7657_v7  ;;  %953 = vmatpush.bf16.msra.mxu2 %v7659_v8 }
 0x186   :  { %881 = vmatmul.bf16.vlgmr.msrb.gmra.mxu1 %v5934_v58  ;;  %894 = vmatmul.bf16.vlgmr.msrb.gmra.mxu2 %v5934_v58  ;;  %v668_v5 = vpop.f32.mrf.mxu3 }
 0x187   :  { %v686_v30 = vmax.f32 %v642_v27, %v668_v5 }
 0x188   :  { %928 = vmatpush.bf16.msra.mxu0 %v7672_v12  ;;  %969 = vmatpush.bf16.msra.mxu3 %v7672_v12  ;;  %v626_v11 = vpop.f32.mrf.mxu0 }
 0x189   :  { %941 = vmatpush.bf16.msra.mxu1 %v7685_v16  ;;  %954 = vmatpush.bf16.msra.mxu2 %v7687_v17  ;;  %v655_v1 = vpop.f32.mrf.mxu2 }
 0x18a   :  { %v685_v23 = vmax.f32 %v641_v20, %v655_v1 }
 0x18b   :  { %v639_v13 = vpop.f32.mrf.mxu1 }
 0x18c   :  { %929 = vmatpush.bf16.msra.mxu0 %v7709_v24  ;;  %970 = vmatpush.bf16.msra.mxu3 %v7709_v24 }
 0x18d   :  { %942 = vmatpush.bf16.msra.mxu1 %v7713_v25  ;;  %955 = vmatpush.bf16.msra.mxu2 %v7715_v26 }
 0x18e   :  { %v670_v15 = vpop.f32.mrf.mxu3 }
 0x18f   :  { %v5938_v15 = vld [vmem:[%s10495_s0 + $0xac] sm:$0xf] }
 0x190   :  { %930 = vmatpush.bf16.msra.mxu0 %v7737_v33  ;;  %971 = vmatpush.bf16.msra.mxu3 %v7737_v33 }
 0x191   :  { %943 = vmatpush.bf16.msra.mxu1 %v7741_v34  ;;  %956 = vmatpush.bf16.msra.mxu2 %v7743_v35  ;;  %v657_v14 = vpop.f32.mrf.mxu2 }
 0x194   :  { %931 = vmatpush.bf16.msra.mxu0 %v7765_v42  ;;  %972 = vmatpush.bf16.msra.mxu3 %v7765_v42 }
 0x195   :  { %944 = vmatpush.bf16.msra.mxu1 %v7769_v43  ;;  %957 = vmatpush.bf16.msra.mxu2 %v7771_v44 }
 0x198   :  { %932 = vmatpush.bf16.msra.mxu0 %v7793_v51  ;;  %973 = vmatpush.bf16.msra.mxu3 %v7793_v51 }
 0x199   :  { %945 = vmatpush.bf16.msra.mxu1 %v7797_v52  ;;  %958 = vmatpush.bf16.msra.mxu2 %v7799_v53 }
 0x19c   :  { %933 = vmatpush.bf16.msra.mxu0 %v7821_v60  ;;  %974 = vmatpush.bf16.msra.mxu3 %v7821_v60 }
 0x19d   :  { %946 = vmatpush.bf16.msra.mxu1 %v7825_v61  ;;  %959 = vmatpush.bf16.msra.mxu2 %v7827_v62 }
 0x1a0   :  { %934 = vmatpush.bf16.msra.mxu0 %v7849_v6  ;;  %975 = vmatpush.bf16.msra.mxu3 %v7849_v6  ;;  %v681_v21 = vpop.f32.mrf.mxu0 }
 0x1a1   :  { %947 = vmatpush.bf16.msra.mxu1 %v7853_v9  ;;  %960 = vmatpush.bf16.msra.mxu2 %v7855_v10  ;;  %v687_v31 = vmax.f32 %v643_v28, %v681_v21 }
 0x1a3   :  { %976 = vmatmul.bf16.vlgmr.msra.gmra.mxu3 %v8356_v19  ;;  %935 = vmatmul.bf16.vlgmr.msra.gmra.mxu0 %v5935_v18  ;;  %v699_v22 = vpop.f32.mrf.mxu1 }
 0x1a4   :  { %981 = vmatpush.bf16.msrb.mxu0 %v7657_v7  ;;  %1025 = vmatpush.bf16.msrb.mxu3 %v7657_v7  ;;  %v729_v29 = vmax.f32 %v685_v23, %v699_v22 }
 0x1a5   :  { %994 = vmatpush.bf16.msrb.mxu1 %v7659_v8  ;;  %1012 = vmatpush.bf16.msrb.mxu2 %v7646_v3 }
 0x1a6   :  { %961 = vmatmul.bf16.vlgmr.msra.gmra.mxu2 %v5935_v18  ;;  %948 = vmatmul.bf16.vlgmr.msra.gmra.mxu1 %v5935_v18  ;;  %v725_v36 = vpop.f32.mrf.mxu3  ;;  %v732_v37 = vadd.f32 %v729_v29, %v8113_v63  ;;  %v5939_v29 = vld [vmem:[%s10495_s0 + $0x14] sm:$0xf] }
 0x1a7   :  { %v731_v39 = vmax.f32 %v687_v31, %v725_v36 }
 0x1a8   :  { %982 = vmatpush.bf16.msrb.mxu0 %v7685_v16  ;;  %1026 = vmatpush.bf16.msrb.mxu3 %v7685_v16  ;;  %v683_v40 = vpop.f32.mrf.mxu0  ;;  %v735_v47 = vmax.f32 %v732_v37, 0.0 }
 0x1a9   :  { %995 = vmatpush.bf16.msrb.mxu1 %v7687_v17  ;;  %1013 = vmatpush.bf16.msrb.mxu2 %v7672_v12  ;;  %v712_v32 = vpop.f32.mrf.mxu2  ;;  %v734_v46 = vadd.f32 %v731_v39, %v8121_v4 }
 0x1aa   :  { %v730_v38 = vmax.f32 %v686_v30, %v712_v32  ;;  %v8484_v30 = vld [vmem:[%s10495_s0 + $0x48] sm:$0xf] }
 0x1ab   :  { %v701_v41 = vpop.f32.mrf.mxu1  ;;  %v737_v49 = vmax.f32 %v734_v46, 0.0 }
 0x1ac   :  { %983 = vmatpush.bf16.msrb.mxu0 %v7713_v25  ;;  %1027 = vmatpush.bf16.msrb.mxu3 %v7713_v25  ;;  %v733_v45 = vadd.f32 %v730_v38, %v8119_v2 }
 0x1ad   :  { %996 = vmatpush.bf16.msrb.mxu1 %v7715_v26  ;;  %1014 = vmatpush.bf16.msrb.mxu2 %v7709_v24  ;;  %v739_v54 = vpack.c.bf16 %v737_v49, %v737_v49 }
 0x1ae   :  { %v736_v48 = vmax.f32 %v733_v45, 0.0  ;;  %v727_v56 = vpop.f32.mrf.mxu3 }
 0x1af   :  { %741 = vst [vmem:[#allocation2 + $0x20] sm:$0xf] %v739_v54 }
 0x1b0   :  { %984 = vmatpush.bf16.msrb.mxu0 %v7741_v34  ;;  %1028 = vmatpush.bf16.msrb.mxu3 %v7741_v34  ;;  %v738_v50 = vpack.c.bf16 %v736_v48, %v735_v47 }
 0x1b1   :  { %997 = vmatpush.bf16.msrb.mxu1 %v7743_v35  ;;  %1015 = vmatpush.bf16.msrb.mxu2 %v7737_v33  ;;  %v714_v55 = vpop.f32.mrf.mxu2 }
 0x1b2   :  { %740 = vst [vmem:[#allocation2 + $0x18] sm:$0xff] %v738_v50 }
 0x1b4   :  { %985 = vmatpush.bf16.msrb.mxu0 %v7769_v43  ;;  %1029 = vmatpush.bf16.msrb.mxu3 %v7769_v43 }
 0x1b5   :  { %998 = vmatpush.bf16.msrb.mxu1 %v7771_v44  ;;  %1016 = vmatpush.bf16.msrb.mxu2 %v7765_v42 }
 0x1b8   :  { %986 = vmatpush.bf16.msrb.mxu0 %v7797_v52  ;;  %1030 = vmatpush.bf16.msrb.mxu3 %v7797_v52 }
 0x1b9   :  { %999 = vmatpush.bf16.msrb.mxu1 %v7799_v53  ;;  %1017 = vmatpush.bf16.msrb.mxu2 %v7793_v51 }
 0x1bc   :  { %987 = vmatpush.bf16.msrb.mxu0 %v7825_v61  ;;  %1031 = vmatpush.bf16.msrb.mxu3 %v7825_v61 }
 0x1bd   :  { %1000 = vmatpush.bf16.msrb.mxu1 %v7827_v62  ;;  %1018 = vmatpush.bf16.msrb.mxu2 %v7821_v60 }
 0x1c0   :  { %988 = vmatpush.bf16.msrb.mxu0 %v7853_v9  ;;  %1032 = vmatpush.bf16.msrb.mxu3 %v7853_v9  ;;  %v8413_v58 = vpop.f32.mrf.mxu0 }
 0x1c1   :  { %1001 = vmatpush.bf16.msrb.mxu1 %v7855_v10  ;;  %1019 = vmatpush.bf16.msrb.mxu2 %v7849_v6 }
 0x1c3   :  { %1033 = vmatmul.bf16.vlgmr.msrb.gmra.mxu3 %v5937_v57  ;;  %989 = vmatmul.bf16.vlgmr.msrb.gmra.mxu0 %v8356_v19  ;;  %v8415_v59 = vpop.f32.mrf.mxu1 }
 0x1c4   :  { %1038 = vmatpush.bf16.msra.mxu0 %v7659_v8  ;;  %1082 = vmatpush.bf16.msra.mxu3 %v7659_v8 }
 0x1c5   :  { %1056 = vmatpush.bf16.msra.mxu1 %v7646_v3  ;;  %1069 = vmatpush.bf16.msra.mxu2 %v7657_v7 }
 0x1c6   :  { %1020 = vmatmul.bf16.vlgmr.msrb.gmra.mxu2 %v5937_v57  ;;  %1002 = vmatmul.bf16.vlgmr.msrb.gmra.mxu1 %v8356_v19  ;;  %v8425_v1 = vpop.f32.mrf.mxu3 }
 0x1c7   :  { %v824_v31 = vmax.f32 %v8413_v58, %v8425_v1 }
 0x1c8   :  { %1039 = vmatpush.bf16.msra.mxu0 %v7687_v17  ;;  %1083 = vmatpush.bf16.msra.mxu3 %v7687_v17  ;;  %v755_v5 = vpop.f32.mrf.mxu0 }
 0x1c9   :  { %1057 = vmatpush.bf16.msra.mxu1 %v7672_v12  ;;  %1070 = vmatpush.bf16.msra.mxu2 %v7685_v16  ;;  %v8423_v0 = vpop.f32.mrf.mxu2 }
 0x1cb   :  { %v768_v11 = vpop.f32.mrf.mxu1 }
 0x1cc   :  { %1040 = vmatpush.bf16.msra.mxu0 %v7715_v26  ;;  %1084 = vmatpush.bf16.msra.mxu3 %v7715_v26 }
 0x1cd   :  { %1058 = vmatpush.bf16.msra.mxu1 %v7709_v24  ;;  %1071 = vmatpush.bf16.msra.mxu2 %v7713_v25 }
 0x1ce   :  { %v796_v14 = vpop.f32.mrf.mxu3 }
 0x1cf   :  { %v5941_v14 = vld [vmem:[%s10495_s0 + $0x7c] sm:$0xf] }
 0x1d0   :  { %1041 = vmatpush.bf16.msra.mxu0 %v7743_v35  ;;  %1085 = vmatpush.bf16.msra.mxu3 %v7743_v35 }
 0x1d1   :  { %1059 = vmatpush.bf16.msra.mxu1 %v7737_v33  ;;  %1072 = vmatpush.bf16.msra.mxu2 %v7741_v34  ;;  %v781_v13 = vpop.f32.mrf.mxu2 }
 0x1d4   :  { %1042 = vmatpush.bf16.msra.mxu0 %v7771_v44  ;;  %1086 = vmatpush.bf16.msra.mxu3 %v7771_v44 }
 0x1d5   :  { %1060 = vmatpush.bf16.msra.mxu1 %v7765_v42  ;;  %1073 = vmatpush.bf16.msra.mxu2 %v7769_v43 }
 0x1d8   :  { %1043 = vmatpush.bf16.msra.mxu0 %v7799_v53  ;;  %1087 = vmatpush.bf16.msra.mxu3 %v7799_v53 }
 0x1d9   :  { %1061 = vmatpush.bf16.msra.mxu1 %v7793_v51  ;;  %1074 = vmatpush.bf16.msra.mxu2 %v7797_v52 }
 0x1dc   :  { %1044 = vmatpush.bf16.msra.mxu0 %v7827_v62  ;;  %1088 = vmatpush.bf16.msra.mxu3 %v7827_v62 }
 0x1dd   :  { %1062 = vmatpush.bf16.msra.mxu1 %v7821_v60  ;;  %1075 = vmatpush.bf16.msra.mxu2 %v7825_v61 }
 0x1e0   :  { %1045 = vmatpush.bf16.msra.mxu0 %v7855_v10  ;;  %1089 = vmatpush.bf16.msra.mxu3 %v7855_v10  ;;  %v807_v18 = vpop.f32.mrf.mxu0 }
 0x1e1   :  { %1063 = vmatpush.bf16.msra.mxu1 %v7849_v6  ;;  %1076 = vmatpush.bf16.msra.mxu2 %v7853_v9  ;;  %v825_v38 = vmax.f32 %v8415_v59, %v807_v18 }
 0x1e3   :  { %1046 = vmatmul.bf16.vlgmr.msra.gmra.mxu0 %v5937_v57  ;;  %1090 = vmatmul.bf16.vlgmr.msra.gmra.mxu3 %v5938_v15  ;;  %v820_v19 = vpop.f32.mrf.mxu1 }
 0x1e4   :  { %1110 = vmatpush.bf16.msrb.mxu0 %v7646_v3  ;;  %1151 = vmatpush.bf16.msrb.mxu3 %v7646_v3  ;;  %v826_v39 = vmax.f32 %v8423_v0, %v820_v19 }
 0x1e5   :  { %1123 = vmatpush.bf16.msrb.mxu1 %v7657_v7  ;;  %1136 = vmatpush.bf16.msrb.mxu2 %v7659_v8 }
 0x1e6   :  { %1064 = vmatmul.bf16.vlgmr.msra.gmra.mxu1 %v5938_v15  ;;  %1077 = vmatmul.bf16.vlgmr.msra.gmra.mxu2 %v5938_v15  ;;  %v851_v21 = vpop.f32.mrf.mxu3 }
 0x1e7   :  { %v869_v41 = vmax.f32 %v825_v38, %v851_v21 }
 0x1e8   :  { %1111 = vmatpush.bf16.msrb.mxu0 %v7672_v12  ;;  %1152 = vmatpush.bf16.msrb.mxu3 %v7672_v12  ;;  %v809_v22 = vpop.f32.mrf.mxu0 }
 0x1e9   :  { %1124 = vmatpush.bf16.msrb.mxu1 %v7685_v16  ;;  %1137 = vmatpush.bf16.msrb.mxu2 %v7687_v17  ;;  %v838_v20 = vpop.f32.mrf.mxu2 }
 0x1ea   :  { %v868_v37 = vmax.f32 %v824_v31, %v838_v20 }
 0x1eb   :  { %v822_v23 = vpop.f32.mrf.mxu1 }
 0x1ec   :  { %1112 = vmatpush.bf16.msrb.mxu0 %v7709_v24  ;;  %1153 = vmatpush.bf16.msrb.mxu3 %v7709_v24 }
 0x1ed   :  { %1125 = vmatpush.bf16.msrb.mxu1 %v7713_v25  ;;  %1138 = vmatpush.bf16.msrb.mxu2 %v7715_v26 }
 0x1ee   :  { %v853_v28 = vpop.f32.mrf.mxu3 }
 0x1ef   :  { %v5942_v28 = vld [vmem:[%s10495_s0 + $0xb0] sm:$0xf] }
 0x1f0   :  { %1113 = vmatpush.bf16.msrb.mxu0 %v7737_v33  ;;  %1154 = vmatpush.bf16.msrb.mxu3 %v7737_v33 }
 0x1f1   :  { %1126 = vmatpush.bf16.msrb.mxu1 %v7741_v34  ;;  %1139 = vmatpush.bf16.msrb.mxu2 %v7743_v35  ;;  %v840_v27 = vpop.f32.mrf.mxu2 }
 0x1f4   :  { %1114 = vmatpush.bf16.msrb.mxu0 %v7765_v42  ;;  %1155 = vmatpush.bf16.msrb.mxu3 %v7765_v42 }
 0x1f5   :  { %1127 = vmatpush.bf16.msrb.mxu1 %v7769_v43  ;;  %1140 = vmatpush.bf16.msrb.mxu2 %v7771_v44 }
 0x1f8   :  { %1115 = vmatpush.bf16.msrb.mxu0 %v7793_v51  ;;  %1156 = vmatpush.bf16.msrb.mxu3 %v7793_v51 }
 0x1f9   :  { %1128 = vmatpush.bf16.msrb.mxu1 %v7797_v52  ;;  %1141 = vmatpush.bf16.msrb.mxu2 %v7799_v53 }
 0x1fc   :  { %1116 = vmatpush.bf16.msrb.mxu0 %v7821_v60  ;;  %1157 = vmatpush.bf16.msrb.mxu3 %v7821_v60 }
 0x1fd   :  { %1129 = vmatpush.bf16.msrb.mxu1 %v7825_v61  ;;  %1142 = vmatpush.bf16.msrb.mxu2 %v7827_v62 }
 0x200   :  { %1117 = vmatpush.bf16.msrb.mxu0 %v7849_v6  ;;  %1158 = vmatpush.bf16.msrb.mxu3 %v7849_v6  ;;  %v864_v32 = vpop.f32.mrf.mxu0 }
 0x201   :  { %1130 = vmatpush.bf16.msrb.mxu1 %v7853_v9  ;;  %1143 = vmatpush.bf16.msrb.mxu2 %v7855_v10  ;;  %v870_v45 = vmax.f32 %v826_v39, %v864_v32 }
 0x203   :  { %1159 = vmatmul.bf16.vlgmr.msrb.gmra.mxu3 %v8484_v30  ;;  %1118 = vmatmul.bf16.vlgmr.msrb.gmra.mxu0 %v5939_v29  ;;  %v882_v36 = vpop.f32.mrf.mxu1 }
 0x204   :  { %1164 = vmatpush.bf16.msra.mxu0 %v7657_v7  ;;  %1208 = vmatpush.bf16.msra.mxu3 %v7657_v7  ;;  %v912_v40 = vmax.f32 %v868_v37, %v882_v36 }
 0x205   :  { %1177 = vmatpush.bf16.msra.mxu1 %v7659_v8  ;;  %1195 = vmatpush.bf16.msra.mxu2 %v7646_v3 }
 0x206   :  { %1144 = vmatmul.bf16.vlgmr.msrb.gmra.mxu2 %v5939_v29  ;;  %1131 = vmatmul.bf16.vlgmr.msrb.gmra.mxu1 %v5939_v29  ;;  %v908_v47 = vpop.f32.mrf.mxu3  ;;  %v915_v48 = vadd.f32 %v912_v40, %v8113_v63  ;;  %v5943_v40 = vld [vmem:[%s10495_s0 + $0x18] sm:$0xf] }
 0x207   :  { %v914_v50 = vmax.f32 %v870_v45, %v908_v47 }
 0x208   :  { %1165 = vmatpush.bf16.msra.mxu0 %v7685_v16  ;;  %1209 = vmatpush.bf16.msra.mxu3 %v7685_v16  ;;  %v866_v54 = vpop.f32.mrf.mxu0  ;;  %v918_v58 = vmax.f32 %v915_v48, 0.0 }
 0x209   :  { %1178 = vmatpush.bf16.msra.mxu1 %v7687_v17  ;;  %1196 = vmatpush.bf16.msra.mxu2 %v7672_v12  ;;  %v895_v46 = vpop.f32.mrf.mxu2  ;;  %v917_v57 = vadd.f32 %v914_v50, %v8121_v4 }
 0x20a   :  { %v913_v49 = vmax.f32 %v869_v41, %v895_v46  ;;  %v8612_v41 = vld [vmem:[%s10495_s0 + $0x4c] sm:$0xf] }
 0x20b   :  { %v884_v55 = vpop.f32.mrf.mxu1  ;;  %v920_v0 = vmax.f32 %v917_v57, 0.0 }
 0x20c   :  { %1166 = vmatpush.bf16.msra.mxu0 %v7713_v25  ;;  %1210 = vmatpush.bf16.msra.mxu3 %v7713_v25  ;;  %v916_v56 = vadd.f32 %v913_v49, %v8119_v2 }
 0x20d   :  { %1179 = vmatpush.bf16.msra.mxu1 %v7715_v26  ;;  %1197 = vmatpush.bf16.msra.mxu2 %v7709_v24  ;;  %v922_v5 = vpack.c.bf16 %v920_v0, %v920_v0 }
 0x20e   :  { %v919_v59 = vmax.f32 %v916_v56, 0.0  ;;  %v910_v13 = vpop.f32.mrf.mxu3 }
 0x20f   :  { %924 = vst [vmem:[#allocation2 + $0x2c] sm:$0xf] %v922_v5 }
 0x210   :  { %1167 = vmatpush.bf16.msra.mxu0 %v7741_v34  ;;  %1211 = vmatpush.bf16.msra.mxu3 %v7741_v34  ;;  %v921_v1 = vpack.c.bf16 %v919_v59, %v918_v58 }
 0x211   :  { %1180 = vmatpush.bf16.msra.mxu1 %v7743_v35  ;;  %1198 = vmatpush.bf16.msra.mxu2 %v7737_v33  ;;  %v897_v11 = vpop.f32.mrf.mxu2 }
 0x212   :  { %923 = vst [vmem:[#allocation2 + $0x24] sm:$0xff] %v921_v1 }
 0x214   :  { %1168 = vmatpush.bf16.msra.mxu0 %v7769_v43  ;;  %1212 = vmatpush.bf16.msra.mxu3 %v7769_v43 }
 0x215   :  { %1181 = vmatpush.bf16.msra.mxu1 %v7771_v44  ;;  %1199 = vmatpush.bf16.msra.mxu2 %v7765_v42 }
 0x218   :  { %1169 = vmatpush.bf16.msra.mxu0 %v7797_v52  ;;  %1213 = vmatpush.bf16.msra.mxu3 %v7797_v52 }
 0x219   :  { %1182 = vmatpush.bf16.msra.mxu1 %v7799_v53  ;;  %1200 = vmatpush.bf16.msra.mxu2 %v7793_v51 }
 0x21c   :  { %1170 = vmatpush.bf16.msra.mxu0 %v7825_v61  ;;  %1214 = vmatpush.bf16.msra.mxu3 %v7825_v61 }
 0x21d   :  { %1183 = vmatpush.bf16.msra.mxu1 %v7827_v62  ;;  %1201 = vmatpush.bf16.msra.mxu2 %v7821_v60 }
 0x220   :  { %1171 = vmatpush.bf16.msra.mxu0 %v7853_v9  ;;  %1215 = vmatpush.bf16.msra.mxu3 %v7853_v9  ;;  %v8541_v15 = vpop.f32.mrf.mxu0 }
 0x221   :  { %1184 = vmatpush.bf16.msra.mxu1 %v7855_v10  ;;  %1202 = vmatpush.bf16.msra.mxu2 %v7849_v6 }
 0x223   :  { %1216 = vmatmul.bf16.vlgmr.msra.gmra.mxu3 %v5941_v14  ;;  %1172 = vmatmul.bf16.vlgmr.msra.gmra.mxu0 %v8484_v30  ;;  %v8543_v18 = vpop.f32.mrf.mxu1 }
 0x224   :  { %1221 = vmatpush.bf16.msrb.mxu0 %v7659_v8  ;;  %1265 = vmatpush.bf16.msrb.mxu3 %v7659_v8 }
 0x225   :  { %1239 = vmatpush.bf16.msrb.mxu1 %v7646_v3  ;;  %1252 = vmatpush.bf16.msrb.mxu2 %v7657_v7 }
 0x226   :  { %1203 = vmatmul.bf16.vlgmr.msra.gmra.mxu2 %v5941_v14  ;;  %1185 = vmatmul.bf16.vlgmr.msra.gmra.mxu1 %v8484_v30  ;;  %v8553_v20 = vpop.f32.mrf.mxu3 }
 0x227   :  { %v1007_v45 = vmax.f32 %v8541_v15, %v8553_v20 }
 0x228   :  { %1222 = vmatpush.bf16.msrb.mxu0 %v7687_v17  ;;  %1266 = vmatpush.bf16.msrb.mxu3 %v7687_v17  ;;  %v938_v21 = vpop.f32.mrf.mxu0 }
 0x229   :  { %1240 = vmatpush.bf16.msrb.mxu1 %v7672_v12  ;;  %1253 = vmatpush.bf16.msrb.mxu2 %v7685_v16  ;;  %v8551_v19 = vpop.f32.mrf.mxu2 }
 0x22b   :  { %v951_v22 = vpop.f32.mrf.mxu1 }
 0x22c   :  { %1223 = vmatpush.bf16.msrb.mxu0 %v7715_v26  ;;  %1267 = vmatpush.bf16.msrb.mxu3 %v7715_v26 }
 0x22d   :  { %1241 = vmatpush.bf16.msrb.mxu1 %v7709_v24  ;;  %1254 = vmatpush.bf16.msrb.mxu2 %v7713_v25 }
 0x22e   :  { %v979_v27 = vpop.f32.mrf.mxu3 }
 0x22f   :  { %v5945_v27 = vld [vmem:[%s10495_s0 + $0x80] sm:$0xf] }
 0x230   :  { %1224 = vmatpush.bf16.msrb.mxu0 %v7743_v35  ;;  %1268 = vmatpush.bf16.msrb.mxu3 %v7743_v35 }
 0x231   :  { %1242 = vmatpush.bf16.msrb.mxu1 %v7737_v33  ;;  %1255 = vmatpush.bf16.msrb.mxu2 %v7741_v34  ;;  %v964_v23 = vpop.f32.mrf.mxu2 }
 0x234   :  { %1225 = vmatpush.bf16.msrb.mxu0 %v7771_v44  ;;  %1269 = vmatpush.bf16.msrb.mxu3 %v7771_v44 }
 0x235   :  { %1243 = vmatpush.bf16.msrb.mxu1 %v7765_v42  ;;  %1256 = vmatpush.bf16.msrb.mxu2 %v7769_v43 }
 0x238   :  { %1226 = vmatpush.bf16.msrb.mxu0 %v7799_v53  ;;  %1270 = vmatpush.bf16.msrb.mxu3 %v7799_v53 }
 0x239   :  { %1244 = vmatpush.bf16.msrb.mxu1 %v7793_v51  ;;  %1257 = vmatpush.bf16.msrb.mxu2 %v7797_v52 }
 0x23c   :  { %1227 = vmatpush.bf16.msrb.mxu0 %v7827_v62  ;;  %1271 = vmatpush.bf16.msrb.mxu3 %v7827_v62 }
 0x23d   :  { %1245 = vmatpush.bf16.msrb.mxu1 %v7821_v60  ;;  %1258 = vmatpush.bf16.msrb.mxu2 %v7825_v61 }
 0x240   :  { %1228 = vmatpush.bf16.msrb.mxu0 %v7855_v10  ;;  %1272 = vmatpush.bf16.msrb.mxu3 %v7855_v10  ;;  %v990_v29 = vpop.f32.mrf.mxu0 }
 0x241   :  { %1246 = vmatpush.bf16.msrb.mxu1 %v7849_v6  ;;  %1259 = vmatpush.bf16.msrb.mxu2 %v7853_v9  ;;  %v1008_v49 = vmax.f32 %v8543_v18, %v990_v29 }
 0x243   :  { %1229 = vmatmul.bf16.vlgmr.msrb.gmra.mxu0 %v5941_v14  ;;  %1273 = vmatmul.bf16.vlgmr.msrb.gmra.mxu3 %v5942_v28  ;;  %v1003_v30 = vpop.f32.mrf.mxu1 }
 0x244   :  { %1293 = vmatpush.bf16.msra.mxu0 %v7646_v3  ;;  %1334 = vmatpush.bf16.msra.mxu3 %v7646_v3  ;;  %v1009_v50 = vmax.f32 %v8551_v19, %v1003_v30 }
 0x245   :  { %1306 = vmatpush.bf16.msra.mxu1 %v7657_v7  ;;  %1319 = vmatpush.bf16.msra.mxu2 %v7659_v8 }
 0x246   :  { %1247 = vmatmul.bf16.vlgmr.msrb.gmra.mxu1 %v5942_v28  ;;  %1260 = vmatmul.bf16.vlgmr.msrb.gmra.mxu2 %v5942_v28  ;;  %v1034_v32 = vpop.f32.mrf.mxu3 }
 0x247   :  { %v1052_v55 = vmax.f32 %v1008_v49, %v1034_v32 }
 0x248   :  { %1294 = vmatpush.bf16.msra.mxu0 %v7672_v12  ;;  %1335 = vmatpush.bf16.msra.mxu3 %v7672_v12  ;;  %v992_v36 = vpop.f32.mrf.mxu0 }
 0x249   :  { %1307 = vmatpush.bf16.msra.mxu1 %v7685_v16  ;;  %1320 = vmatpush.bf16.msra.mxu2 %v7687_v17  ;;  %v1021_v31 = vpop.f32.mrf.mxu2 }
 0x24a   :  { %v1051_v48 = vmax.f32 %v1007_v45, %v1021_v31 }
 0x24b   :  { %v1005_v37 = vpop.f32.mrf.mxu1 }
 0x24c   :  { %1295 = vmatpush.bf16.msra.mxu0 %v7709_v24  ;;  %1336 = vmatpush.bf16.msra.mxu3 %v7709_v24 }
 0x24d   :  { %1308 = vmatpush.bf16.msra.mxu1 %v7713_v25  ;;  %1321 = vmatpush.bf16.msra.mxu2 %v7715_v26 }
 0x24e   :  { %v1036_v39 = vpop.f32.mrf.mxu3 }
 0x24f   :  { %v5946_v39 = vld [vmem:[%s10495_s0 + $0xb4] sm:$0xf] }
 0x250   :  { %1296 = vmatpush.bf16.msra.mxu0 %v7737_v33  ;;  %1337 = vmatpush.bf16.msra.mxu3 %v7737_v33 }
 0x251   :  { %1309 = vmatpush.bf16.msra.mxu1 %v7741_v34  ;;  %1322 = vmatpush.bf16.msra.mxu2 %v7743_v35  ;;  %v1023_v38 = vpop.f32.mrf.mxu2 }
 0x254   :  { %1297 = vmatpush.bf16.msra.mxu0 %v7765_v42  ;;  %1338 = vmatpush.bf16.msra.mxu3 %v7765_v42 }
 0x255   :  { %1310 = vmatpush.bf16.msra.mxu1 %v7769_v43  ;;  %1323 = vmatpush.bf16.msra.mxu2 %v7771_v44 }
 0x258   :  { %1298 = vmatpush.bf16.msra.mxu0 %v7793_v51  ;;  %1339 = vmatpush.bf16.msra.mxu3 %v7793_v51 }
 0x259   :  { %1311 = vmatpush.bf16.msra.mxu1 %v7797_v52  ;;  %1324 = vmatpush.bf16.msra.mxu2 %v7799_v53 }
 0x25c   :  { %1299 = vmatpush.bf16.msra.mxu0 %v7821_v60  ;;  %1340 = vmatpush.bf16.msra.mxu3 %v7821_v60 }
 0x25d   :  { %1312 = vmatpush.bf16.msra.mxu1 %v7825_v61  ;;  %1325 = vmatpush.bf16.msra.mxu2 %v7827_v62 }
 0x260   :  { %1300 = vmatpush.bf16.msra.mxu0 %v7849_v6  ;;  %1341 = vmatpush.bf16.msra.mxu3 %v7849_v6  ;;  %v1047_v46 = vpop.f32.mrf.mxu0 }
 0x261   :  { %1313 = vmatpush.bf16.msra.mxu1 %v7853_v9  ;;  %1326 = vmatpush.bf16.msra.mxu2 %v7855_v10  ;;  %v1053_v56 = vmax.f32 %v1009_v50, %v1047_v46 }
 0x263   :  { %1342 = vmatmul.bf16.vlgmr.msra.gmra.mxu3 %v8612_v41  ;;  %1301 = vmatmul.bf16.vlgmr.msra.gmra.mxu0 %v5943_v40  ;;  %v1065_v47 = vpop.f32.mrf.mxu1 }
 0x264   :  { %1347 = vmatpush.bf16.msrb.mxu0 %v7657_v7  ;;  %1391 = vmatpush.bf16.msrb.mxu3 %v7657_v7  ;;  %v1095_v54 = vmax.f32 %v1051_v48, %v1065_v47 }
 0x265   :  { %1360 = vmatpush.bf16.msrb.mxu1 %v7659_v8  ;;  %1378 = vmatpush.bf16.msrb.mxu2 %v7646_v3 }
 0x266   :  { %1327 = vmatmul.bf16.vlgmr.msra.gmra.mxu2 %v5943_v40  ;;  %1314 = vmatmul.bf16.vlgmr.msra.gmra.mxu1 %v5943_v40  ;;  %v1091_v58 = vpop.f32.mrf.mxu3  ;;  %v1098_v59 = vadd.f32 %v1095_v54, %v8113_v63  ;;  %v5947_v54 = vld [vmem:[%s10495_s0 + $0x1c] sm:$0xf] }
 0x267   :  { %v1097_v1 = vmax.f32 %v1053_v56, %v1091_v58 }
 0x268   :  { %1348 = vmatpush.bf16.msrb.mxu0 %v7685_v16  ;;  %1392 = vmatpush.bf16.msrb.mxu3 %v7685_v16  ;;  %v1049_v5 = vpop.f32.mrf.mxu0  ;;  %v1101_v15 = vmax.f32 %v1098_v59, 0.0 }
 0x269   :  { %1361 = vmatpush.bf16.msrb.mxu1 %v7687_v17  ;;  %1379 = vmatpush.bf16.msrb.mxu2 %v7672_v12  ;;  %v1078_v57 = vpop.f32.mrf.mxu2  ;;  %v1100_v14 = vadd.f32 %v1097_v1, %v8121_v4 }
 0x26a   :  { %v1096_v0 = vmax.f32 %v1052_v55, %v1078_v57  ;;  %v8740_v55 = vld [vmem:[%s10495_s0 + $0x50] sm:$0xf] }
 0x26b   :  { %v1067_v11 = vpop.f32.mrf.mxu1  ;;  %v1103_v19 = vmax.f32 %v1100_v14, 0.0 }
 0x26c   :  { %1349 = vmatpush.bf16.msrb.mxu0 %v7713_v25  ;;  %1393 = vmatpush.bf16.msrb.mxu3 %v7713_v25  ;;  %v1099_v13 = vadd.f32 %v1096_v0, %v8119_v2 }
 0x26d   :  { %1362 = vmatpush.bf16.msrb.mxu1 %v7715_v26  ;;  %1380 = vmatpush.bf16.msrb.mxu2 %v7709_v24  ;;  %v1105_v21 = vpack.c.bf16 %v1103_v19, %v1103_v19 }
 0x26e   :  { %v1102_v18 = vmax.f32 %v1099_v13, 0.0  ;;  %v1093_v23 = vpop.f32.mrf.mxu3 }
 0x26f   :  { %1107 = vst [vmem:[#allocation2 + $0x38] sm:$0xf] %v1105_v21 }
 0x270   :  { %1350 = vmatpush.bf16.msrb.mxu0 %v7741_v34  ;;  %1394 = vmatpush.bf16.msrb.mxu3 %v7741_v34  ;;  %v1104_v20 = vpack.c.bf16 %v1102_v18, %v1101_v15 }
 0x271   :  { %1363 = vmatpush.bf16.msrb.mxu1 %v7743_v35  ;;  %1381 = vmatpush.bf16.msrb.mxu2 %v7737_v33  ;;  %v1080_v22 = vpop.f32.mrf.mxu2 }
 0x272   :  { %1106 = vst [vmem:[#allocation2 + $0x30] sm:$0xff] %v1104_v20 }
 0x274   :  { %1351 = vmatpush.bf16.msrb.mxu0 %v7769_v43  ;;  %1395 = vmatpush.bf16.msrb.mxu3 %v7769_v43 }
 0x275   :  { %1364 = vmatpush.bf16.msrb.mxu1 %v7771_v44  ;;  %1382 = vmatpush.bf16.msrb.mxu2 %v7765_v42 }
 0x278   :  { %1352 = vmatpush.bf16.msrb.mxu0 %v7797_v52  ;;  %1396 = vmatpush.bf16.msrb.mxu3 %v7797_v52 }
 0x279   :  { %1365 = vmatpush.bf16.msrb.mxu1 %v7799_v53  ;;  %1383 = vmatpush.bf16.msrb.mxu2 %v7793_v51 }
 0x27c   :  { %1353 = vmatpush.bf16.msrb.mxu0 %v7825_v61  ;;  %1397 = vmatpush.bf16.msrb.mxu3 %v7825_v61 }
 0x27d   :  { %1366 = vmatpush.bf16.msrb.mxu1 %v7827_v62  ;;  %1384 = vmatpush.bf16.msrb.mxu2 %v7821_v60 }
 0x280   :  { %1354 = vmatpush.bf16.msrb.mxu0 %v7853_v9  ;;  %1398 = vmatpush.bf16.msrb.mxu3 %v7853_v9  ;;  %v8669_v28 = vpop.f32.mrf.mxu0 }
 0x281   :  { %1367 = vmatpush.bf16.msrb.mxu1 %v7855_v10  ;;  %1385 = vmatpush.bf16.msrb.mxu2 %v7849_v6 }
 0x283   :  { %1399 = vmatmul.bf16.vlgmr.msrb.gmra.mxu3 %v5945_v27  ;;  %1355 = vmatmul.bf16.vlgmr.msrb.gmra.mxu0 %v8612_v41  ;;  %v8671_v29 = vpop.f32.mrf.mxu1 }
 0x284   :  { %1404 = vmatpush.bf16.msra.mxu0 %v7659_v8  ;;  %1448 = vmatpush.bf16.msra.mxu3 %v7659_v8 }
 0x285   :  { %1422 = vmatpush.bf16.msra.mxu1 %v7646_v3  ;;  %1435 = vmatpush.bf16.msra.mxu2 %v7657_v7 }
 0x286   :  { %1386 = vmatmul.bf16.vlgmr.msrb.gmra.mxu2 %v5945_v27  ;;  %1368 = vmatmul.bf16.vlgmr.msrb.gmra.mxu1 %v8612_v41  ;;  %v8681_v31 = vpop.f32.mrf.mxu3 }
 0x287   :  { %v1190_v56 = vmax.f32 %v8669_v28, %v8681_v31 }
 0x288   :  { %1405 = vmatpush.bf16.msra.mxu0 %v7687_v17  ;;  %1449 = vmatpush.bf16.msra.mxu3 %v7687_v17  ;;  %v1121_v32 = vpop.f32.mrf.mxu0 }
 0x289   :  { %1423 = vmatpush.bf16.msra.mxu1 %v7672_v12  ;;  %1436 = vmatpush.bf16.msra.mxu2 %v7685_v16  ;;  %v8679_v30 = vpop.f32.mrf.mxu2 }
 0x28b   :  { %v1134_v36 = vpop.f32.mrf.mxu1 }
 0x28c   :  { %1406 = vmatpush.bf16.msra.mxu0 %v7715_v26  ;;  %1450 = vmatpush.bf16.msra.mxu3 %v7715_v26 }
 0x28d   :  { %1424 = vmatpush.bf16.msra.mxu1 %v7709_v24  ;;  %1437 = vmatpush.bf16.msra.mxu2 %v7713_v25 }
 0x28e   :  { %v1162_v38 = vpop.f32.mrf.mxu3 }
 0x28f   :  { %v5949_v38 = vld [vmem:[%s10495_s0 + $0x84] sm:$0xf] }
 0x290   :  { %1407 = vmatpush.bf16.msra.mxu0 %v7743_v35  ;;  %1451 = vmatpush.bf16.msra.mxu3 %v7743_v35 }
 0x291   :  { %1425 = vmatpush.bf16.msra.mxu1 %v7737_v33  ;;  %1438 = vmatpush.bf16.msra.mxu2 %v7741_v34  ;;  %v1147_v37 = vpop.f32.mrf.mxu2 }
 0x294   :  { %1408 = vmatpush.bf16.msra.mxu0 %v7771_v44  ;;  %1452 = vmatpush.bf16.msra.mxu3 %v7771_v44 }
 0x295   :  { %1426 = vmatpush.bf16.msra.mxu1 %v7765_v42  ;;  %1439 = vmatpush.bf16.msra.mxu2 %v7769_v43 }
 0x298   :  { %1409 = vmatpush.bf16.msra.mxu0 %v7799_v53  ;;  %1453 = vmatpush.bf16.msra.mxu3 %v7799_v53 }
 0x299   :  { %1427 = vmatpush.bf16.msra.mxu1 %v7793_v51  ;;  %1440 = vmatpush.bf16.msra.mxu2 %v7797_v52 }
 0x29c   :  { %1410 = vmatpush.bf16.msra.mxu0 %v7827_v62  ;;  %1454 = vmatpush.bf16.msra.mxu3 %v7827_v62 }
 0x29d   :  { %1428 = vmatpush.bf16.msra.mxu1 %v7821_v60  ;;  %1441 = vmatpush.bf16.msra.mxu2 %v7825_v61 }
 0x2a0   :  { %1411 = vmatpush.bf16.msra.mxu0 %v7855_v10  ;;  %1455 = vmatpush.bf16.msra.mxu3 %v7855_v10  ;;  %v1173_v40 = vpop.f32.mrf.mxu0 }
 0x2a1   :  { %1429 = vmatpush.bf16.msra.mxu1 %v7849_v6  ;;  %1442 = vmatpush.bf16.msra.mxu2 %v7853_v9  ;;  %v1191_v0 = vmax.f32 %v8671_v29, %v1173_v40 }
 0x2a3   :  { %1412 = vmatmul.bf16.vlgmr.msra.gmra.mxu0 %v5945_v27  ;;  %1456 = vmatmul.bf16.vlgmr.msra.gmra.mxu3 %v5946_v39  ;;  %v1186_v41 = vpop.f32.mrf.mxu1 }
 0x2a4   :  { %1476 = vmatpush.bf16.msrb.mxu0 %v7646_v3  ;;  %1517 = vmatpush.bf16.msrb.mxu3 %v7646_v3  ;;  %v1192_v1 = vmax.f32 %v8679_v30, %v1186_v41 }
 0x2a5   :  { %1489 = vmatpush.bf16.msrb.mxu1 %v7657_v7  ;;  %1502 = vmatpush.bf16.msrb.mxu2 %v7659_v8 }
 0x2a6   :  { %1430 = vmatmul.bf16.vlgmr.msra.gmra.mxu1 %v5946_v39  ;;  %1443 = vmatmul.bf16.vlgmr.msra.gmra.mxu2 %v5946_v39  ;;  %v1217_v46 = vpop.f32.mrf.mxu3 }
 0x2a7   :  { %v1235_v11 = vmax.f32 %v1191_v0, %v1217_v46 }
 0x2a8   :  { %1477 = vmatpush.bf16.msrb.mxu0 %v7672_v12  ;;  %1518 = vmatpush.bf16.msrb.mxu3 %v7672_v12  ;;  %v1175_v47 = vpop.f32.mrf.mxu0 }
 0x2a9   :  { %1490 = vmatpush.bf16.msrb.mxu1 %v7685_v16  ;;  %1503 = vmatpush.bf16.msrb.mxu2 %v7687_v17  ;;  %v1204_v45 = vpop.f32.mrf.mxu2 }
 0x2aa   :  { %v1234_v59 = vmax.f32 %v1190_v56, %v1204_v45 }
 0x2ab   :  { %v1188_v48 = vpop.f32.mrf.mxu1 }
 0x2ac   :  { %1478 = vmatpush.bf16.msrb.mxu0 %v7709_v24  ;;  %1519 = vmatpush.bf16.msrb.mxu3 %v7709_v24 }
 0x2ad   :  { %1491 = vmatpush.bf16.msrb.mxu1 %v7713_v25  ;;  %1504 = vmatpush.bf16.msrb.mxu2 %v7715_v26 }
 0x2ae   :  { %v1219_v50 = vpop.f32.mrf.mxu3 }
 0x2af   :  { %v5950_v50 = vld [vmem:[%s10495_s0 + $0xb8] sm:$0xf] }
 0x2b0   :  { %1479 = vmatpush.bf16.msrb.mxu0 %v7737_v33  ;;  %1520 = vmatpush.bf16.msrb.mxu3 %v7737_v33 }
 0x2b1   :  { %1492 = vmatpush.bf16.msrb.mxu1 %v7741_v34  ;;  %1505 = vmatpush.bf16.msrb.mxu2 %v7743_v35  ;;  %v1206_v49 = vpop.f32.mrf.mxu2 }
 0x2b4   :  { %1480 = vmatpush.bf16.msrb.mxu0 %v7765_v42  ;;  %1521 = vmatpush.bf16.msrb.mxu3 %v7765_v42 }
 0x2b5   :  { %1493 = vmatpush.bf16.msrb.mxu1 %v7769_v43  ;;  %1506 = vmatpush.bf16.msrb.mxu2 %v7771_v44 }
 0x2b8   :  { %1481 = vmatpush.bf16.msrb.mxu0 %v7793_v51  ;;  %1522 = vmatpush.bf16.msrb.mxu3 %v7793_v51 }
 0x2b9   :  { %1494 = vmatpush.bf16.msrb.mxu1 %v7797_v52  ;;  %1507 = vmatpush.bf16.msrb.mxu2 %v7799_v53 }
 0x2bc   :  { %1482 = vmatpush.bf16.msrb.mxu0 %v7821_v60  ;;  %1523 = vmatpush.bf16.msrb.mxu3 %v7821_v60 }
 0x2bd   :  { %1495 = vmatpush.bf16.msrb.mxu1 %v7825_v61  ;;  %1508 = vmatpush.bf16.msrb.mxu2 %v7827_v62 }
 0x2c0   :  { %1483 = vmatpush.bf16.msrb.mxu0 %v7849_v6  ;;  %1524 = vmatpush.bf16.msrb.mxu3 %v7849_v6  ;;  %v1230_v57 = vpop.f32.mrf.mxu0 }
 0x2c1   :  { %1496 = vmatpush.bf16.msrb.mxu1 %v7853_v9  ;;  %1509 = vmatpush.bf16.msrb.mxu2 %v7855_v10  ;;  %v1236_v13 = vmax.f32 %v1192_v1, %v1230_v57 }
 0x2c3   :  { %1525 = vmatmul.bf16.vlgmr.msrb.gmra.mxu3 %v8740_v55  ;;  %1484 = vmatmul.bf16.vlgmr.msrb.gmra.mxu0 %v5947_v54  ;;  %v1248_v58 = vpop.f32.mrf.mxu1 }
 0x2c4   :  { %1530 = vmatpush.bf16.msra.mxu0 %v7657_v7  ;;  %1574 = vmatpush.bf16.msra.mxu3 %v7657_v7  ;;  %v1278_v5 = vmax.f32 %v1234_v59, %v1248_v58 }
 0x2c5   :  { %1543 = vmatpush.bf16.msra.mxu1 %v7659_v8  ;;  %1561 = vmatpush.bf16.msra.mxu2 %v7646_v3 }
 0x2c6   :  { %1510 = vmatmul.bf16.vlgmr.msrb.gmra.mxu2 %v5947_v54  ;;  %1497 = vmatmul.bf16.vlgmr.msrb.gmra.mxu1 %v5947_v54  ;;  %v1274_v15 = vpop.f32.mrf.mxu3  ;;  %v1281_v18 = vadd.f32 %v1278_v5, %v8113_v63  ;;  %v5951_v5 = vld [vmem:[%s10495_s0 + $0x20] sm:$0xf] }
 0x2c7   :  { %v1280_v20 = vmax.f32 %v1236_v13, %v1274_v15 }
 0x2c8   :  { %1531 = vmatpush.bf16.msra.mxu0 %v7685_v16  ;;  %1575 = vmatpush.bf16.msra.mxu3 %v7685_v16  ;;  %v1232_v21 = vpop.f32.mrf.mxu0  ;;  %v1284_v28 = vmax.f32 %v1281_v18, 0.0 }
 0x2c9   :  { %1544 = vmatpush.bf16.msra.mxu1 %v7687_v17  ;;  %1562 = vmatpush.bf16.msra.mxu2 %v7672_v12  ;;  %v1261_v14 = vpop.f32.mrf.mxu2  ;;  %v1283_v27 = vadd.f32 %v1280_v20, %v8121_v4 }
 0x2ca   :  { %v1279_v19 = vmax.f32 %v1235_v11, %v1261_v14  ;;  %v8868_v11 = vld [vmem:[%s10495_s0 + $0x54] sm:$0xf] }
 0x2cb   :  { %v1250_v22 = vpop.f32.mrf.mxu1  ;;  %v1286_v30 = vmax.f32 %v1283_v27, 0.0 }
 0x2cc   :  { %1532 = vmatpush.bf16.msra.mxu0 %v7713_v25  ;;  %1576 = vmatpush.bf16.msra.mxu3 %v7713_v25  ;;  %v1282_v23 = vadd.f32 %v1279_v19, %v8119_v2 }
 0x2cd   :  { %1545 = vmatpush.bf16.msra.mxu1 %v7715_v26  ;;  %1563 = vmatpush.bf16.msra.mxu2 %v7709_v24  ;;  %v1288_v32 = vpack.c.bf16 %v1286_v30, %v1286_v30 }
 0x2ce   :  { %v1285_v29 = vmax.f32 %v1282_v23, 0.0  ;;  %v1276_v37 = vpop.f32.mrf.mxu3 }
 0x2cf   :  { %1290 = vst [vmem:[#allocation2 + $0x44] sm:$0xf] %v1288_v32 }
 0x2d0   :  { %1533 = vmatpush.bf16.msra.mxu0 %v7741_v34  ;;  %1577 = vmatpush.bf16.msra.mxu3 %v7741_v34  ;;  %v1287_v31 = vpack.c.bf16 %v1285_v29, %v1284_v28 }
 0x2d1   :  { %1546 = vmatpush.bf16.msra.mxu1 %v7743_v35  ;;  %1564 = vmatpush.bf16.msra.mxu2 %v7737_v33  ;;  %v1263_v36 = vpop.f32.mrf.mxu2 }
 0x2d2   :  { %1289 = vst [vmem:[#allocation2 + $0x3c] sm:$0xff] %v1287_v31 }
 0x2d4   :  { %1534 = vmatpush.bf16.msra.mxu0 %v7769_v43  ;;  %1578 = vmatpush.bf16.msra.mxu3 %v7769_v43 }
 0x2d5   :  { %1547 = vmatpush.bf16.msra.mxu1 %v7771_v44  ;;  %1565 = vmatpush.bf16.msra.mxu2 %v7765_v42 }
 0x2d8   :  { %1535 = vmatpush.bf16.msra.mxu0 %v7797_v52  ;;  %1579 = vmatpush.bf16.msra.mxu3 %v7797_v52 }
 0x2d9   :  { %1548 = vmatpush.bf16.msra.mxu1 %v7799_v53  ;;  %1566 = vmatpush.bf16.msra.mxu2 %v7793_v51 }
 0x2dc   :  { %1536 = vmatpush.bf16.msra.mxu0 %v7825_v61  ;;  %1580 = vmatpush.bf16.msra.mxu3 %v7825_v61 }
 0x2dd   :  { %1549 = vmatpush.bf16.msra.mxu1 %v7827_v62  ;;  %1567 = vmatpush.bf16.msra.mxu2 %v7821_v60 }
 0x2e0   :  { %1537 = vmatpush.bf16.msra.mxu0 %v7853_v9  ;;  %1581 = vmatpush.bf16.msra.mxu3 %v7853_v9  ;;  %v8797_v39 = vpop.f32.mrf.mxu0 }
 0x2e1   :  { %1550 = vmatpush.bf16.msra.mxu1 %v7855_v10  ;;  %1568 = vmatpush.bf16.msra.mxu2 %v7849_v6 }
 0x2e3   :  { %1582 = vmatmul.bf16.vlgmr.msra.gmra.mxu3 %v5949_v38  ;;  %1538 = vmatmul.bf16.vlgmr.msra.gmra.mxu0 %v8740_v55  ;;  %v8799_v40 = vpop.f32.mrf.mxu1 }
 0x2e4   :  { %1587 = vmatpush.bf16.msrb.mxu0 %v7659_v8  ;;  %1631 = vmatpush.bf16.msrb.mxu3 %v7659_v8 }
 0x2e5   :  { %1605 = vmatpush.bf16.msrb.mxu1 %v7646_v3  ;;  %1618 = vmatpush.bf16.msrb.mxu2 %v7657_v7 }
 0x2e6   :  { %1569 = vmatmul.bf16.vlgmr.msra.gmra.mxu2 %v5949_v38  ;;  %1551 = vmatmul.bf16.vlgmr.msra.gmra.mxu1 %v8740_v55  ;;  %v8809_v45 = vpop.f32.mrf.mxu3 }
 0x2e7   :  { %v1373_v13 = vmax.f32 %v8797_v39, %v8809_v45 }
 0x2e8   :  { %1588 = vmatpush.bf16.msrb.mxu0 %v7687_v17  ;;  %1632 = vmatpush.bf16.msrb.mxu3 %v7687_v17  ;;  %v1304_v46 = vpop.f32.mrf.mxu0 }
 0x2e9   :  { %1606 = vmatpush.bf16.msrb.mxu1 %v7672_v12  ;;  %1619 = vmatpush.bf16.msrb.mxu2 %v7685_v16  ;;  %v8807_v41 = vpop.f32.mrf.mxu2 }
 0x2eb   :  { %v1317_v47 = vpop.f32.mrf.mxu1 }
 0x2ec   :  { %1589 = vmatpush.bf16.msrb.mxu0 %v7715_v26  ;;  %1633 = vmatpush.bf16.msrb.mxu3 %v7715_v26 }
 0x2ed   :  { %1607 = vmatpush.bf16.msrb.mxu1 %v7709_v24  ;;  %1620 = vmatpush.bf16.msrb.mxu2 %v7713_v25 }
 0x2ee   :  { %v1345_v49 = vpop.f32.mrf.mxu3 }
 0x2ef   :  { %v5953_v49 = vld [vmem:[%s10495_s0 + $0x88] sm:$0xf] }
 0x2f0   :  { %1590 = vmatpush.bf16.msrb.mxu0 %v7743_v35  ;;  %1634 = vmatpush.bf16.msrb.mxu3 %v7743_v35 }
 0x2f1   :  { %1608 = vmatpush.bf16.msrb.mxu1 %v7737_v33  ;;  %1621 = vmatpush.bf16.msrb.mxu2 %v7741_v34  ;;  %v1330_v48 = vpop.f32.mrf.mxu2 }
 0x2f4   :  { %1591 = vmatpush.bf16.msrb.mxu0 %v7771_v44  ;;  %1635 = vmatpush.bf16.msrb.mxu3 %v7771_v44 }
 0x2f5   :  { %1609 = vmatpush.bf16.msrb.mxu1 %v7765_v42  ;;  %1622 = vmatpush.bf16.msrb.mxu2 %v7769_v43 }
 0x2f8   :  { %1592 = vmatpush.bf16.msrb.mxu0 %v7799_v53  ;;  %1636 = vmatpush.bf16.msrb.mxu3 %v7799_v53 }
 0x2f9   :  { %1610 = vmatpush.bf16.msrb.mxu1 %v7793_v51  ;;  %1623 = vmatpush.bf16.msrb.mxu2 %v7797_v52 }
 0x2fc   :  { %1593 = vmatpush.bf16.msrb.mxu0 %v7827_v62  ;;  %1637 = vmatpush.bf16.msrb.mxu3 %v7827_v62 }
 0x2fd   :  { %1611 = vmatpush.bf16.msrb.mxu1 %v7821_v60  ;;  %1624 = vmatpush.bf16.msrb.mxu2 %v7825_v61 }
 0x300   :  { %1594 = vmatpush.bf16.msrb.mxu0 %v7855_v10  ;;  %1638 = vmatpush.bf16.msrb.mxu3 %v7855_v10  ;;  %v1356_v54 = vpop.f32.mrf.mxu0 }
 0x301   :  { %1612 = vmatpush.bf16.msrb.mxu1 %v7849_v6  ;;  %1625 = vmatpush.bf16.msrb.mxu2 %v7853_v9  ;;  %v1374_v19 = vmax.f32 %v8799_v40, %v1356_v54 }
 0x303   :  { %1595 = vmatmul.bf16.vlgmr.msrb.gmra.mxu0 %v5949_v38  ;;  %1639 = vmatmul.bf16.vlgmr.msrb.gmra.mxu3 %v5950_v50  ;;  %v1369_v55 = vpop.f32.mrf.mxu1 }
 0x304   :  { %1659 = vmatpush.bf16.msra.mxu0 %v7646_v3  ;;  %1700 = vmatpush.bf16.msra.mxu3 %v7646_v3  ;;  %v1375_v20 = vmax.f32 %v8807_v41, %v1369_v55 }
 0x305   :  { %1672 = vmatpush.bf16.msra.mxu1 %v7657_v7  ;;  %1685 = vmatpush.bf16.msra.mxu2 %v7659_v8 }
 0x306   :  { %1613 = vmatmul.bf16.vlgmr.msrb.gmra.mxu1 %v5950_v50  ;;  %1626 = vmatmul.bf16.vlgmr.msrb.gmra.mxu2 %v5950_v50  ;;  %v1400_v57 = vpop.f32.mrf.mxu3 }
 0x307   :  { %v1418_v22 = vmax.f32 %v1374_v19, %v1400_v57 }
 0x308   :  { %1660 = vmatpush.bf16.msra.mxu0 %v7672_v12  ;;  %1701 = vmatpush.bf16.msra.mxu3 %v7672_v12  ;;  %v1358_v58 = vpop.f32.mrf.mxu0 }
 0x309   :  { %1673 = vmatpush.bf16.msra.mxu1 %v7685_v16  ;;  %1686 = vmatpush.bf16.msra.mxu2 %v7687_v17  ;;  %v1387_v56 = vpop.f32.mrf.mxu2 }
 0x30a   :  { %v1417_v18 = vmax.f32 %v1373_v13, %v1387_v56 }
 0x30b   :  { %v1371_v59 = vpop.f32.mrf.mxu1 }
 0x30c   :  { %1661 = vmatpush.bf16.msra.mxu0 %v7709_v24  ;;  %1702 = vmatpush.bf16.msra.mxu3 %v7709_v24 }
 0x30d   :  { %1674 = vmatpush.bf16.msra.mxu1 %v7713_v25  ;;  %1687 = vmatpush.bf16.msra.mxu2 %v7715_v26 }
 0x30e   :  { %v1402_v1 = vpop.f32.mrf.mxu3 }
 0x30f   :  { %v5954_v1 = vld [vmem:[%s10495_s0 + $0xbc] sm:$0xf] }
 0x310   :  { %1662 = vmatpush.bf16.msra.mxu0 %v7737_v33  ;;  %1703 = vmatpush.bf16.msra.mxu3 %v7737_v33 }
 0x311   :  { %1675 = vmatpush.bf16.msra.mxu1 %v7741_v34  ;;  %1688 = vmatpush.bf16.msra.mxu2 %v7743_v35  ;;  %v1389_v0 = vpop.f32.mrf.mxu2 }
 0x314   :  { %1663 = vmatpush.bf16.msra.mxu0 %v7765_v42  ;;  %1704 = vmatpush.bf16.msra.mxu3 %v7765_v42 }
 0x315   :  { %1676 = vmatpush.bf16.msra.mxu1 %v7769_v43  ;;  %1689 = vmatpush.bf16.msra.mxu2 %v7771_v44 }
 0x318   :  { %1664 = vmatpush.bf16.msra.mxu0 %v7793_v51  ;;  %1705 = vmatpush.bf16.msra.mxu3 %v7793_v51 }
 0x319   :  { %1677 = vmatpush.bf16.msra.mxu1 %v7797_v52  ;;  %1690 = vmatpush.bf16.msra.mxu2 %v7799_v53 }
 0x31c   :  { %1665 = vmatpush.bf16.msra.mxu0 %v7821_v60  ;;  %1706 = vmatpush.bf16.msra.mxu3 %v7821_v60 }
 0x31d   :  { %1678 = vmatpush.bf16.msra.mxu1 %v7825_v61  ;;  %1691 = vmatpush.bf16.msra.mxu2 %v7827_v62 }
 0x320   :  { %1666 = vmatpush.bf16.msra.mxu0 %v7849_v6  ;;  %1707 = vmatpush.bf16.msra.mxu3 %v7849_v6  ;;  %v1413_v14 = vpop.f32.mrf.mxu0 }
 0x321   :  { %1679 = vmatpush.bf16.msra.mxu1 %v7853_v9  ;;  %1692 = vmatpush.bf16.msra.mxu2 %v7855_v10  ;;  %v1419_v23 = vmax.f32 %v1375_v20, %v1413_v14 }
 0x323   :  { %1708 = vmatmul.bf16.vlgmr.msra.gmra.mxu3 %v8868_v11  ;;  %1667 = vmatmul.bf16.vlgmr.msra.gmra.mxu0 %v5951_v5  ;;  %v1431_v15 = vpop.f32.mrf.mxu1 }
 0x324   :  { %1713 = vmatpush.bf16.msrb.mxu0 %v7657_v7  ;;  %1757 = vmatpush.bf16.msrb.mxu3 %v7657_v7  ;;  %v1461_v21 = vmax.f32 %v1417_v18, %v1431_v15 }
 0x325   :  { %1726 = vmatpush.bf16.msrb.mxu1 %v7659_v8  ;;  %1744 = vmatpush.bf16.msrb.mxu2 %v7646_v3 }
 0x326   :  { %1693 = vmatmul.bf16.vlgmr.msra.gmra.mxu2 %v5951_v5  ;;  %1680 = vmatmul.bf16.vlgmr.msra.gmra.mxu1 %v5951_v5  ;;  %v1457_v28 = vpop.f32.mrf.mxu3  ;;  %v1464_v29 = vadd.f32 %v1461_v21, %v8113_v63  ;;  %v5955_v21 = vld [vmem:[%s10495_s0 + $0x24] sm:$0xf] }
 0x327   :  { %v1463_v31 = vmax.f32 %v1419_v23, %v1457_v28 }
 0x328   :  { %1714 = vmatpush.bf16.msrb.mxu0 %v7685_v16  ;;  %1758 = vmatpush.bf16.msrb.mxu3 %v7685_v16  ;;  %v1415_v32 = vpop.f32.mrf.mxu0  ;;  %v1467_v39 = vmax.f32 %v1464_v29, 0.0 }
 0x329   :  { %1727 = vmatpush.bf16.msrb.mxu1 %v7687_v17  ;;  %1745 = vmatpush.bf16.msrb.mxu2 %v7672_v12  ;;  %v1444_v27 = vpop.f32.mrf.mxu2  ;;  %v1466_v38 = vadd.f32 %v1463_v31, %v8121_v4 }
 0x32a   :  { %v1462_v30 = vmax.f32 %v1418_v22, %v1444_v27  ;;  %v8996_v22 = vld [vmem:[%s10495_s0 + $0x58] sm:$0xf] }
 0x32b   :  { %v1433_v36 = vpop.f32.mrf.mxu1  ;;  %v1469_v41 = vmax.f32 %v1466_v38, 0.0 }
 0x32c   :  { %1715 = vmatpush.bf16.msrb.mxu0 %v7713_v25  ;;  %1759 = vmatpush.bf16.msrb.mxu3 %v7713_v25  ;;  %v1465_v37 = vadd.f32 %v1462_v30, %v8119_v2 }
 0x32d   :  { %1728 = vmatpush.bf16.msrb.mxu1 %v7715_v26  ;;  %1746 = vmatpush.bf16.msrb.mxu2 %v7709_v24  ;;  %v1471_v46 = vpack.c.bf16 %v1469_v41, %v1469_v41 }
 0x32e   :  { %v1468_v40 = vmax.f32 %v1465_v37, 0.0  ;;  %v1459_v48 = vpop.f32.mrf.mxu3 }
 0x32f   :  { %1473 = vst [vmem:[#allocation2 + $0x50] sm:$0xf] %v1471_v46 }
 0x330   :  { %1716 = vmatpush.bf16.msrb.mxu0 %v7741_v34  ;;  %1760 = vmatpush.bf16.msrb.mxu3 %v7741_v34  ;;  %v1470_v45 = vpack.c.bf16 %v1468_v40, %v1467_v39 }
 0x331   :  { %1729 = vmatpush.bf16.msrb.mxu1 %v7743_v35  ;;  %1747 = vmatpush.bf16.msrb.mxu2 %v7737_v33  ;;  %v1446_v47 = vpop.f32.mrf.mxu2 }
 0x332   :  { %1472 = vst [vmem:[#allocation2 + $0x48] sm:$0xff] %v1470_v45 }
 0x334   :  { %1717 = vmatpush.bf16.msrb.mxu0 %v7769_v43  ;;  %1761 = vmatpush.bf16.msrb.mxu3 %v7769_v43 }
 0x335   :  { %1730 = vmatpush.bf16.msrb.mxu1 %v7771_v44  ;;  %1748 = vmatpush.bf16.msrb.mxu2 %v7765_v42 }
 0x338   :  { %1718 = vmatpush.bf16.msrb.mxu0 %v7797_v52  ;;  %1762 = vmatpush.bf16.msrb.mxu3 %v7797_v52 }
 0x339   :  { %1731 = vmatpush.bf16.msrb.mxu1 %v7799_v53  ;;  %1749 = vmatpush.bf16.msrb.mxu2 %v7793_v51 }
 0x33c   :  { %1719 = vmatpush.bf16.msrb.mxu0 %v7825_v61  ;;  %1763 = vmatpush.bf16.msrb.mxu3 %v7825_v61 }
 0x33d   :  { %1732 = vmatpush.bf16.msrb.mxu1 %v7827_v62  ;;  %1750 = vmatpush.bf16.msrb.mxu2 %v7821_v60 }
 0x340   :  { %1720 = vmatpush.bf16.msrb.mxu0 %v7853_v9  ;;  %1764 = vmatpush.bf16.msrb.mxu3 %v7853_v9  ;;  %v8925_v50 = vpop.f32.mrf.mxu0 }
 0x341   :  { %1733 = vmatpush.bf16.msrb.mxu1 %v7855_v10  ;;  %1751 = vmatpush.bf16.msrb.mxu2 %v7849_v6 }
 0x343   :  { %1765 = vmatmul.bf16.vlgmr.msrb.gmra.mxu3 %v5953_v49  ;;  %1721 = vmatmul.bf16.vlgmr.msrb.gmra.mxu0 %v8868_v11  ;;  %v8927_v54 = vpop.f32.mrf.mxu1 }
 0x344   :  { %1770 = vmatpush.bf16.msra.mxu0 %v7659_v8  ;;  %1814 = vmatpush.bf16.msra.mxu3 %v7659_v8 }
 0x345   :  { %1788 = vmatpush.bf16.msra.mxu1 %v7646_v3  ;;  %1801 = vmatpush.bf16.msra.mxu2 %v7657_v7 }
 0x346   :  { %1752 = vmatmul.bf16.vlgmr.msrb.gmra.mxu2 %v5953_v49  ;;  %1734 = vmatmul.bf16.vlgmr.msrb.gmra.mxu1 %v8868_v11  ;;  %v8937_v56 = vpop.f32.mrf.mxu3 }
 0x347   :  { %v1556_v23 = vmax.f32 %v8925_v50, %v8937_v56 }
 0x348   :  { %1771 = vmatpush.bf16.msra.mxu0 %v7687_v17  ;;  %1815 = vmatpush.bf16.msra.mxu3 %v7687_v17  ;;  %v1487_v57 = vpop.f32.mrf.mxu0 }
 0x349   :  { %1789 = vmatpush.bf16.msra.mxu1 %v7672_v12  ;;  %1802 = vmatpush.bf16.msra.mxu2 %v7685_v16  ;;  %v8935_v55 = vpop.f32.mrf.mxu2 }
 0x34b   :  { %v1500_v58 = vpop.f32.mrf.mxu1 }
 0x34c   :  { %1772 = vmatpush.bf16.msra.mxu0 %v7715_v26  ;;  %1816 = vmatpush.bf16.msra.mxu3 %v7715_v26 }
 0x34d   :  { %1790 = vmatpush.bf16.msra.mxu1 %v7709_v24  ;;  %1803 = vmatpush.bf16.msra.mxu2 %v7713_v25 }
 0x34e   :  { %v1528_v0 = vpop.f32.mrf.mxu3 }
 0x34f   :  { %v5957_v0 = vld [vmem:[%s10495_s0 + $0x8c] sm:$0xf] }
 0x350   :  { %1773 = vmatpush.bf16.msra.mxu0 %v7743_v35  ;;  %1817 = vmatpush.bf16.msra.mxu3 %v7743_v35 }
 0x351   :  { %1791 = vmatpush.bf16.msra.mxu1 %v7737_v33  ;;  %1804 = vmatpush.bf16.msra.mxu2 %v7741_v34  ;;  %v1513_v59 = vpop.f32.mrf.mxu2 }
 0x354   :  { %1774 = vmatpush.bf16.msra.mxu0 %v7771_v44  ;;  %1818 = vmatpush.bf16.msra.mxu3 %v7771_v44 }
 0x355   :  { %1792 = vmatpush.bf16.msra.mxu1 %v7765_v42  ;;  %1805 = vmatpush.bf16.msra.mxu2 %v7769_v43 }
 0x358   :  { %1775 = vmatpush.bf16.msra.mxu0 %v7799_v53  ;;  %1819 = vmatpush.bf16.msra.mxu3 %v7799_v53 }
 0x359   :  { %1793 = vmatpush.bf16.msra.mxu1 %v7793_v51  ;;  %1806 = vmatpush.bf16.msra.mxu2 %v7797_v52 }
 0x35c   :  { %1776 = vmatpush.bf16.msra.mxu0 %v7827_v62  ;;  %1820 = vmatpush.bf16.msra.mxu3 %v7827_v62 }
 0x35d   :  { %1794 = vmatpush.bf16.msra.mxu1 %v7821_v60  ;;  %1807 = vmatpush.bf16.msra.mxu2 %v7825_v61 }
 0x360   :  { %1777 = vmatpush.bf16.msra.mxu0 %v7855_v10  ;;  %1821 = vmatpush.bf16.msra.mxu3 %v7855_v10  ;;  %v1539_v5 = vpop.f32.mrf.mxu0 }
 0x361   :  { %1795 = vmatpush.bf16.msra.mxu1 %v7849_v6  ;;  %1808 = vmatpush.bf16.msra.mxu2 %v7853_v9  ;;  %v1557_v30 = vmax.f32 %v8927_v54, %v1539_v5 }
 0x363   :  { %1778 = vmatmul.bf16.vlgmr.msra.gmra.mxu0 %v5953_v49  ;;  %1822 = vmatmul.bf16.vlgmr.msra.gmra.mxu3 %v5954_v1  ;;  %v1552_v11 = vpop.f32.mrf.mxu1 }
 0x364   :  { %1842 = vmatpush.bf16.msrb.mxu0 %v7646_v3  ;;  %1883 = vmatpush.bf16.msrb.mxu3 %v7646_v3  ;;  %v1558_v31 = vmax.f32 %v8935_v55, %v1552_v11 }
 0x365   :  { %1855 = vmatpush.bf16.msrb.mxu1 %v7657_v7  ;;  %1868 = vmatpush.bf16.msrb.mxu2 %v7659_v8 }
 0x366   :  { %1796 = vmatmul.bf16.vlgmr.msra.gmra.mxu1 %v5954_v1  ;;  %1809 = vmatmul.bf16.vlgmr.msra.gmra.mxu2 %v5954_v1  ;;  %v1583_v14 = vpop.f32.mrf.mxu3 }
 0x367   :  { %v1601_v36 = vmax.f32 %v1557_v30, %v1583_v14 }
 0x368   :  { %1843 = vmatpush.bf16.msrb.mxu0 %v7672_v12  ;;  %1884 = vmatpush.bf16.msrb.mxu3 %v7672_v12  ;;  %v1541_v15 = vpop.f32.mrf.mxu0 }
 0x369   :  { %1856 = vmatpush.bf16.msrb.mxu1 %v7685_v16  ;;  %1869 = vmatpush.bf16.msrb.mxu2 %v7687_v17  ;;  %v1570_v13 = vpop.f32.mrf.mxu2 }
 0x36a   :  { %v1600_v29 = vmax.f32 %v1556_v23, %v1570_v13 }
 0x36b   :  { %v1554_v18 = vpop.f32.mrf.mxu1 }
 0x36c   :  { %1844 = vmatpush.bf16.msrb.mxu0 %v7709_v24  ;;  %1885 = vmatpush.bf16.msrb.mxu3 %v7709_v24 }
 0x36d   :  { %1857 = vmatpush.bf16.msrb.mxu1 %v7713_v25  ;;  %1870 = vmatpush.bf16.msrb.mxu2 %v7715_v26 }
 0x36e   :  { %v1585_v20 = vpop.f32.mrf.mxu3 }
 0x36f   :  { %v5958_v20 = vld [vmem:[%s10495_s0 + $0xc0] sm:$0xf] }
 0x370   :  { %1845 = vmatpush.bf16.msrb.mxu0 %v7737_v33  ;;  %1886 = vmatpush.bf16.msrb.mxu3 %v7737_v33 }
 0x371   :  { %1858 = vmatpush.bf16.msrb.mxu1 %v7741_v34  ;;  %1871 = vmatpush.bf16.msrb.mxu2 %v7743_v35  ;;  %v1572_v19 = vpop.f32.mrf.mxu2 }
 0x374   :  { %1846 = vmatpush.bf16.msrb.mxu0 %v7765_v42  ;;  %1887 = vmatpush.bf16.msrb.mxu3 %v7765_v42 }
 0x375   :  { %1859 = vmatpush.bf16.msrb.mxu1 %v7769_v43  ;;  %1872 = vmatpush.bf16.msrb.mxu2 %v7771_v44 }
 0x378   :  { %1847 = vmatpush.bf16.msrb.mxu0 %v7793_v51  ;;  %1888 = vmatpush.bf16.msrb.mxu3 %v7793_v51 }
 0x379   :  { %1860 = vmatpush.bf16.msrb.mxu1 %v7797_v52  ;;  %1873 = vmatpush.bf16.msrb.mxu2 %v7799_v53 }
 0x37c   :  { %1848 = vmatpush.bf16.msrb.mxu0 %v7821_v60  ;;  %1889 = vmatpush.bf16.msrb.mxu3 %v7821_v60 }
 0x37d   :  { %1861 = vmatpush.bf16.msrb.mxu1 %v7825_v61  ;;  %1874 = vmatpush.bf16.msrb.mxu2 %v7827_v62 }
 0x380   :  { %1849 = vmatpush.bf16.msrb.mxu0 %v7849_v6  ;;  %1890 = vmatpush.bf16.msrb.mxu3 %v7849_v6  ;;  %v1596_v27 = vpop.f32.mrf.mxu0 }
 0x381   :  { %1862 = vmatpush.bf16.msrb.mxu1 %v7853_v9  ;;  %1875 = vmatpush.bf16.msrb.mxu2 %v7855_v10  ;;  %v1602_v37 = vmax.f32 %v1558_v31, %v1596_v27 }
 0x383   :  { %1891 = vmatmul.bf16.vlgmr.msrb.gmra.mxu3 %v8996_v22  ;;  %1850 = vmatmul.bf16.vlgmr.msrb.gmra.mxu0 %v5955_v21  ;;  %v1614_v28 = vpop.f32.mrf.mxu1 }
 0x384   :  { %1896 = vmatpush.bf16.msra.mxu0 %v7657_v7  ;;  %1940 = vmatpush.bf16.msra.mxu3 %v7657_v7  ;;  %v1644_v32 = vmax.f32 %v1600_v29, %v1614_v28 }
 0x385   :  { %1909 = vmatpush.bf16.msra.mxu1 %v7659_v8  ;;  %1927 = vmatpush.bf16.msra.mxu2 %v7646_v3 }
 0x386   :  { %1876 = vmatmul.bf16.vlgmr.msrb.gmra.mxu2 %v5955_v21  ;;  %1863 = vmatmul.bf16.vlgmr.msrb.gmra.mxu1 %v5955_v21  ;;  %v1640_v39 = vpop.f32.mrf.mxu3  ;;  %v1647_v40 = vadd.f32 %v1644_v32, %v8113_v63  ;;  %v5959_v32 = vld [vmem:[%s10495_s0 + $0x28] sm:$0xf] }
 0x387   :  { %v1646_v45 = vmax.f32 %v1602_v37, %v1640_v39 }
 0x388   :  { %1897 = vmatpush.bf16.msra.mxu0 %v7685_v16  ;;  %1941 = vmatpush.bf16.msra.mxu3 %v7685_v16  ;;  %v1598_v46 = vpop.f32.mrf.mxu0  ;;  %v1650_v50 = vmax.f32 %v1647_v40, 0.0 }
 0x389   :  { %1910 = vmatpush.bf16.msra.mxu1 %v7687_v17  ;;  %1928 = vmatpush.bf16.msra.mxu2 %v7672_v12  ;;  %v1627_v38 = vpop.f32.mrf.mxu2  ;;  %v1649_v49 = vadd.f32 %v1646_v45, %v8121_v4 }
 0x38a   :  { %v1645_v41 = vmax.f32 %v1601_v36, %v1627_v38  ;;  %v9124_v36 = vld [vmem:[%s10495_s0 + $0x5c] sm:$0xf] }
 0x38b   :  { %v1616_v47 = vpop.f32.mrf.mxu1  ;;  %v1652_v55 = vmax.f32 %v1649_v49, 0.0 }
 0x38c   :  { %1898 = vmatpush.bf16.msra.mxu0 %v7713_v25  ;;  %1942 = vmatpush.bf16.msra.mxu3 %v7713_v25  ;;  %v1648_v48 = vadd.f32 %v1645_v41, %v8119_v2 }
 0x38d   :  { %1911 = vmatpush.bf16.msra.mxu1 %v7715_v26  ;;  %1929 = vmatpush.bf16.msra.mxu2 %v7709_v24  ;;  %v1654_v57 = vpack.c.bf16 %v1652_v55, %v1652_v55 }
 0x38e   :  { %v1651_v54 = vmax.f32 %v1648_v48, 0.0  ;;  %v1642_v59 = vpop.f32.mrf.mxu3 }
 0x38f   :  { %1656 = vst [vmem:[#allocation2 + $0x5c] sm:$0xf] %v1654_v57 }
 0x390   :  { %1899 = vmatpush.bf16.msra.mxu0 %v7741_v34  ;;  %1943 = vmatpush.bf16.msra.mxu3 %v7741_v34  ;;  %v1653_v56 = vpack.c.bf16 %v1651_v54, %v1650_v50 }
 0x391   :  { %1912 = vmatpush.bf16.msra.mxu1 %v7743_v35  ;;  %1930 = vmatpush.bf16.msra.mxu2 %v7737_v33  ;;  %v1629_v58 = vpop.f32.mrf.mxu2 }
 0x392   :  { %1655 = vst [vmem:[#allocation2 + $0x54] sm:$0xff] %v1653_v56 }
 0x394   :  { %1900 = vmatpush.bf16.msra.mxu0 %v7769_v43  ;;  %1944 = vmatpush.bf16.msra.mxu3 %v7769_v43 }
 0x395   :  { %1913 = vmatpush.bf16.msra.mxu1 %v7771_v44  ;;  %1931 = vmatpush.bf16.msra.mxu2 %v7765_v42 }
 0x398   :  { %1901 = vmatpush.bf16.msra.mxu0 %v7797_v52  ;;  %1945 = vmatpush.bf16.msra.mxu3 %v7797_v52 }
 0x399   :  { %1914 = vmatpush.bf16.msra.mxu1 %v7799_v53  ;;  %1932 = vmatpush.bf16.msra.mxu2 %v7793_v51 }
 0x39c   :  { %1902 = vmatpush.bf16.msra.mxu0 %v7825_v61  ;;  %1946 = vmatpush.bf16.msra.mxu3 %v7825_v61 }
 0x39d   :  { %1915 = vmatpush.bf16.msra.mxu1 %v7827_v62  ;;  %1933 = vmatpush.bf16.msra.mxu2 %v7821_v60 }
 0x3a0   :  { %1903 = vmatpush.bf16.msra.mxu0 %v7853_v9  ;;  %1947 = vmatpush.bf16.msra.mxu3 %v7853_v9  ;;  %v9053_v1 = vpop.f32.mrf.mxu0 }
 0x3a1   :  { %1916 = vmatpush.bf16.msra.mxu1 %v7855_v10  ;;  %1934 = vmatpush.bf16.msra.mxu2 %v7849_v6 }
 0x3a3   :  { %1948 = vmatmul.bf16.vlgmr.msra.gmra.mxu3 %v5957_v0  ;;  %1904 = vmatmul.bf16.vlgmr.msra.gmra.mxu0 %v8996_v22  ;;  %v9055_v5 = vpop.f32.mrf.mxu1 }
 0x3a4   :  { %1953 = vmatpush.bf16.msrb.mxu0 %v7659_v8  ;;  %1997 = vmatpush.bf16.msrb.mxu3 %v7659_v8 }
 0x3a5   :  { %1971 = vmatpush.bf16.msrb.mxu1 %v7646_v3  ;;  %1984 = vmatpush.bf16.msrb.mxu2 %v7657_v7 }
 0x3a6   :  { %1935 = vmatmul.bf16.vlgmr.msra.gmra.mxu2 %v5957_v0  ;;  %1917 = vmatmul.bf16.vlgmr.msra.gmra.mxu1 %v8996_v22  ;;  %v9065_v13 = vpop.f32.mrf.mxu3 }
 0x3a7   :  { %v1739_v37 = vmax.f32 %v9053_v1, %v9065_v13 }
 0x3a8   :  { %1954 = vmatpush.bf16.msrb.mxu0 %v7687_v17  ;;  %1998 = vmatpush.bf16.msrb.mxu3 %v7687_v17  ;;  %v1670_v14 = vpop.f32.mrf.mxu0 }
 0x3a9   :  { %1972 = vmatpush.bf16.msrb.mxu1 %v7672_v12  ;;  %1985 = vmatpush.bf16.msrb.mxu2 %v7685_v16  ;;  %v9063_v11 = vpop.f32.mrf.mxu2 }
 0x3ab   :  { %v1683_v15 = vpop.f32.mrf.mxu1 }
 0x3ac   :  { %1955 = vmatpush.bf16.msrb.mxu0 %v7715_v26  ;;  %1999 = vmatpush.bf16.msrb.mxu3 %v7715_v26 }
 0x3ad   :  { %1973 = vmatpush.bf16.msrb.mxu1 %v7709_v24  ;;  %1986 = vmatpush.bf16.msrb.mxu2 %v7713_v25 }
 0x3ae   :  { %v1711_v19 = vpop.f32.mrf.mxu3 }
 0x3af   :  { %v5961_v19 = vld [vmem:[%s10495_s0 + $0x90] sm:$0xf] }
 0x3b0   :  { %1956 = vmatpush.bf16.msrb.mxu0 %v7743_v35  ;;  %2000 = vmatpush.bf16.msrb.mxu3 %v7743_v35 }
 0x3b1   :  { %1974 = vmatpush.bf16.msrb.mxu1 %v7737_v33  ;;  %1987 = vmatpush.bf16.msrb.mxu2 %v7741_v34  ;;  %v1696_v18 = vpop.f32.mrf.mxu2 }
 0x3b4   :  { %1957 = vmatpush.bf16.msrb.mxu0 %v7771_v44  ;;  %2001 = vmatpush.bf16.msrb.mxu3 %v7771_v44 }
 0x3b5   :  { %1975 = vmatpush.bf16.msrb.mxu1 %v7765_v42  ;;  %1988 = vmatpush.bf16.msrb.mxu2 %v7769_v43 }
 0x3b8   :  { %1958 = vmatpush.bf16.msrb.mxu0 %v7799_v53  ;;  %2002 = vmatpush.bf16.msrb.mxu3 %v7799_v53 }
 0x3b9   :  { %1976 = vmatpush.bf16.msrb.mxu1 %v7793_v51  ;;  %1989 = vmatpush.bf16.msrb.mxu2 %v7797_v52 }
 0x3bc   :  { %1959 = vmatpush.bf16.msrb.mxu0 %v7827_v62  ;;  %2003 = vmatpush.bf16.msrb.mxu3 %v7827_v62 }
 0x3bd   :  { %1977 = vmatpush.bf16.msrb.mxu1 %v7821_v60  ;;  %1990 = vmatpush.bf16.msrb.mxu2 %v7825_v61 }
 0x3c0   :  { %1960 = vmatpush.bf16.msrb.mxu0 %v7855_v10  ;;  %2004 = vmatpush.bf16.msrb.mxu3 %v7855_v10  ;;  %v1722_v21 = vpop.f32.mrf.mxu0 }
 0x3c1   :  { %1978 = vmatpush.bf16.msrb.mxu1 %v7849_v6  ;;  %1991 = vmatpush.bf16.msrb.mxu2 %v7853_v9  ;;  %v1740_v41 = vmax.f32 %v9055_v5, %v1722_v21 }
 0x3c3   :  { %1961 = vmatmul.bf16.vlgmr.msrb.gmra.mxu0 %v5957_v0  ;;  %2005 = vmatmul.bf16.vlgmr.msrb.gmra.mxu3 %v5958_v20  ;;  %v1735_v22 = vpop.f32.mrf.mxu1 }
 0x3c4   :  { %2025 = vmatpush.bf16.msra.mxu0 %v7646_v3  ;;  %2066 = vmatpush.bf16.msra.mxu3 %v7646_v3  ;;  %v1741_v45 = vmax.f32 %v9063_v11, %v1735_v22 }
 0x3c5   :  { %2038 = vmatpush.bf16.msra.mxu1 %v7657_v7  ;;  %2051 = vmatpush.bf16.msra.mxu2 %v7659_v8 }
 0x3c6   :  { %1979 = vmatmul.bf16.vlgmr.msrb.gmra.mxu1 %v5958_v20  ;;  %1992 = vmatmul.bf16.vlgmr.msrb.gmra.mxu2 %v5958_v20  ;;  %v1766_v27 = vpop.f32.mrf.mxu3 }
 0x3c7   :  { %v1784_v47 = vmax.f32 %v1740_v41, %v1766_v27 }
 0x3c8   :  { %2026 = vmatpush.bf16.msra.mxu0 %v7672_v12  ;;  %2067 = vmatpush.bf16.msra.mxu3 %v7672_v12  ;;  %v1724_v28 = vpop.f32.mrf.mxu0 }
 0x3c9   :  { %2039 = vmatpush.bf16.msra.mxu1 %v7685_v16  ;;  %2052 = vmatpush.bf16.msra.mxu2 %v7687_v17  ;;  %v1753_v23 = vpop.f32.mrf.mxu2 }
 0x3ca   :  { %v1783_v40 = vmax.f32 %v1739_v37, %v1753_v23 }
 0x3cb   :  { %v1737_v29 = vpop.f32.mrf.mxu1 }
 0x3cc   :  { %2027 = vmatpush.bf16.msra.mxu0 %v7709_v24  ;;  %2068 = vmatpush.bf16.msra.mxu3 %v7709_v24 }
 0x3cd   :  { %2040 = vmatpush.bf16.msra.mxu1 %v7713_v25  ;;  %2053 = vmatpush.bf16.msra.mxu2 %v7715_v26 }
 0x3ce   :  { %v1768_v31 = vpop.f32.mrf.mxu3 }
 0x3cf   :  { %v5962_v31 = vld [vmem:[%s10495_s0 + $0xc4] sm:$0xf] }
 0x3d0   :  { %2028 = vmatpush.bf16.msra.mxu0 %v7737_v33  ;;  %2069 = vmatpush.bf16.msra.mxu3 %v7737_v33 }
 0x3d1   :  { %2041 = vmatpush.bf16.msra.mxu1 %v7741_v34  ;;  %2054 = vmatpush.bf16.msra.mxu2 %v7743_v35  ;;  %v1755_v30 = vpop.f32.mrf.mxu2 }
 0x3d4   :  { %2029 = vmatpush.bf16.msra.mxu0 %v7765_v42  ;;  %2070 = vmatpush.bf16.msra.mxu3 %v7765_v42 }
 0x3d5   :  { %2042 = vmatpush.bf16.msra.mxu1 %v7769_v43  ;;  %2055 = vmatpush.bf16.msra.mxu2 %v7771_v44 }
 0x3d8   :  { %2030 = vmatpush.bf16.msra.mxu0 %v7793_v51  ;;  %2071 = vmatpush.bf16.msra.mxu3 %v7793_v51 }
 0x3d9   :  { %2043 = vmatpush.bf16.msra.mxu1 %v7797_v52  ;;  %2056 = vmatpush.bf16.msra.mxu2 %v7799_v53 }
 0x3dc   :  { %2031 = vmatpush.bf16.msra.mxu0 %v7821_v60  ;;  %2072 = vmatpush.bf16.msra.mxu3 %v7821_v60 }
 0x3dd   :  { %2044 = vmatpush.bf16.msra.mxu1 %v7825_v61  ;;  %2057 = vmatpush.bf16.msra.mxu2 %v7827_v62 }
 0x3e0   :  { %2032 = vmatpush.bf16.msra.mxu0 %v7849_v6  ;;  %2073 = vmatpush.bf16.msra.mxu3 %v7849_v6  ;;  %v1779_v38 = vpop.f32.mrf.mxu0 }
 0x3e1   :  { %2045 = vmatpush.bf16.msra.mxu1 %v7853_v9  ;;  %2058 = vmatpush.bf16.msra.mxu2 %v7855_v10  ;;  %v1785_v48 = vmax.f32 %v1741_v45, %v1779_v38 }
 0x3e3   :  { %2074 = vmatmul.bf16.vlgmr.msra.gmra.mxu3 %v9124_v36  ;;  %2033 = vmatmul.bf16.vlgmr.msra.gmra.mxu0 %v5959_v32  ;;  %v1797_v39 = vpop.f32.mrf.mxu1 }
 0x3e4   :  { %2079 = vmatpush.bf16.msrb.mxu0 %v7657_v7  ;;  %2123 = vmatpush.bf16.msrb.mxu3 %v7657_v7  ;;  %v1827_v46 = vmax.f32 %v1783_v40, %v1797_v39 }
 0x3e5   :  { %2092 = vmatpush.bf16.msrb.mxu1 %v7659_v8  ;;  %2110 = vmatpush.bf16.msrb.mxu2 %v7646_v3 }
 0x3e6   :  { %2059 = vmatmul.bf16.vlgmr.msra.gmra.mxu2 %v5959_v32  ;;  %2046 = vmatmul.bf16.vlgmr.msra.gmra.mxu1 %v5959_v32  ;;  %v1823_v50 = vpop.f32.mrf.mxu3  ;;  %v1830_v54 = vadd.f32 %v1827_v46, %v8113_v63  ;;  %v5963_v46 = vld [vmem:[%s10495_s0 + $0x2c] sm:$0xf] }
 0x3e7   :  { %v1829_v56 = vmax.f32 %v1785_v48, %v1823_v50 }
 0x3e8   :  { %2080 = vmatpush.bf16.msrb.mxu0 %v7685_v16  ;;  %2124 = vmatpush.bf16.msrb.mxu3 %v7685_v16  ;;  %v1781_v57 = vpop.f32.mrf.mxu0  ;;  %v1833_v1 = vmax.f32 %v1830_v54, 0.0 }
 0x3e9   :  { %2093 = vmatpush.bf16.msrb.mxu1 %v7687_v17  ;;  %2111 = vmatpush.bf16.msrb.mxu2 %v7672_v12  ;;  %v1810_v49 = vpop.f32.mrf.mxu2  ;;  %v1832_v0 = vadd.f32 %v1829_v56, %v8121_v4 }
 0x3ea   :  { %v1828_v55 = vmax.f32 %v1784_v47, %v1810_v49  ;;  %v9252_v47 = vld [vmem:[%s10495_s0 + $0x60] sm:$0xf] }
 0x3eb   :  { %v1799_v58 = vpop.f32.mrf.mxu1  ;;  %v1835_v11 = vmax.f32 %v1832_v0, 0.0 }
 0x3ec   :  { %2081 = vmatpush.bf16.msrb.mxu0 %v7713_v25  ;;  %2125 = vmatpush.bf16.msrb.mxu3 %v7713_v25  ;;  %v1831_v59 = vadd.f32 %v1828_v55, %v8119_v2 }
 0x3ed   :  { %2094 = vmatpush.bf16.msrb.mxu1 %v7715_v26  ;;  %2112 = vmatpush.bf16.msrb.mxu2 %v7709_v24  ;;  %v1837_v14 = vpack.c.bf16 %v1835_v11, %v1835_v11 }
 0x3ee   :  { %v1834_v5 = vmax.f32 %v1831_v59, 0.0  ;;  %v1825_v18 = vpop.f32.mrf.mxu3 }
 0x3ef   :  { %1839 = vst [vmem:[#allocation2 + $0x68] sm:$0xf] %v1837_v14 }
 0x3f0   :  { %2082 = vmatpush.bf16.msrb.mxu0 %v7741_v34  ;;  %2126 = vmatpush.bf16.msrb.mxu3 %v7741_v34  ;;  %v1836_v13 = vpack.c.bf16 %v1834_v5, %v1833_v1 }
 0x3f1   :  { %2095 = vmatpush.bf16.msrb.mxu1 %v7743_v35  ;;  %2113 = vmatpush.bf16.msrb.mxu2 %v7737_v33  ;;  %v1812_v15 = vpop.f32.mrf.mxu2 }
 0x3f2   :  { %1838 = vst [vmem:[#allocation2 + $0x60] sm:$0xff] %v1836_v13 }
 0x3f4   :  { %2083 = vmatpush.bf16.msrb.mxu0 %v7769_v43  ;;  %2127 = vmatpush.bf16.msrb.mxu3 %v7769_v43 }
 0x3f5   :  { %2096 = vmatpush.bf16.msrb.mxu1 %v7771_v44  ;;  %2114 = vmatpush.bf16.msrb.mxu2 %v7765_v42 }
 0x3f8   :  { %2084 = vmatpush.bf16.msrb.mxu0 %v7797_v52  ;;  %2128 = vmatpush.bf16.msrb.mxu3 %v7797_v52 }
 0x3f9   :  { %2097 = vmatpush.bf16.msrb.mxu1 %v7799_v53  ;;  %2115 = vmatpush.bf16.msrb.mxu2 %v7793_v51 }
 0x3fc   :  { %2085 = vmatpush.bf16.msrb.mxu0 %v7825_v61  ;;  %2129 = vmatpush.bf16.msrb.mxu3 %v7825_v61 }
 0x3fd   :  { %2098 = vmatpush.bf16.msrb.mxu1 %v7827_v62  ;;  %2116 = vmatpush.bf16.msrb.mxu2 %v7821_v60 }
 0x400   :  { %2086 = vmatpush.bf16.msrb.mxu0 %v7853_v9  ;;  %2130 = vmatpush.bf16.msrb.mxu3 %v7853_v9  ;;  %v9181_v20 = vpop.f32.mrf.mxu0 }
 0x401   :  { %2099 = vmatpush.bf16.msrb.mxu1 %v7855_v10  ;;  %2117 = vmatpush.bf16.msrb.mxu2 %v7849_v6 }
 0x403   :  { %2131 = vmatmul.bf16.vlgmr.msrb.gmra.mxu3 %v5961_v19  ;;  %2087 = vmatmul.bf16.vlgmr.msrb.gmra.mxu0 %v9124_v36  ;;  %v9183_v21 = vpop.f32.mrf.mxu1 }
 0x404   :  { %2136 = vmatpush.bf16.msra.mxu0 %v7659_v8  ;;  %2180 = vmatpush.bf16.msra.mxu3 %v7659_v8 }
 0x405   :  { %2154 = vmatpush.bf16.msra.mxu1 %v7646_v3  ;;  %2167 = vmatpush.bf16.msra.mxu2 %v7657_v7 }
 0x406   :  { %2118 = vmatmul.bf16.vlgmr.msrb.gmra.mxu2 %v5961_v19  ;;  %2100 = vmatmul.bf16.vlgmr.msrb.gmra.mxu1 %v9124_v36  ;;  %v9193_v23 = vpop.f32.mrf.mxu3 }
 0x407   :  { %v1922_v48 = vmax.f32 %v9181_v20, %v9193_v23 }
 0x408   :  { %2137 = vmatpush.bf16.msra.mxu0 %v7687_v17  ;;  %2181 = vmatpush.bf16.msra.mxu3 %v7687_v17  ;;  %v1853_v27 = vpop.f32.mrf.mxu0 }
 0x409   :  { %2155 = vmatpush.bf16.msra.mxu1 %v7672_v12  ;;  %2168 = vmatpush.bf16.msra.mxu2 %v7685_v16  ;;  %v9191_v22 = vpop.f32.mrf.mxu2 }
 0x40b   :  { %v1866_v28 = vpop.f32.mrf.mxu1 }
 0x40c   :  { %2138 = vmatpush.bf16.msra.mxu0 %v7715_v26  ;;  %2182 = vmatpush.bf16.msra.mxu3 %v7715_v26 }
 0x40d   :  { %2156 = vmatpush.bf16.msra.mxu1 %v7709_v24  ;;  %2169 = vmatpush.bf16.msra.mxu2 %v7713_v25 }
 0x40e   :  { %v1894_v30 = vpop.f32.mrf.mxu3 }
 0x40f   :  { %v5965_v30 = vld [vmem:[%s10495_s0 + $0x94] sm:$0xf] }
 0x410   :  { %2139 = vmatpush.bf16.msra.mxu0 %v7743_v35  ;;  %2183 = vmatpush.bf16.msra.mxu3 %v7743_v35 }
 0x411   :  { %2157 = vmatpush.bf16.msra.mxu1 %v7737_v33  ;;  %2170 = vmatpush.bf16.msra.mxu2 %v7741_v34  ;;  %v1879_v29 = vpop.f32.mrf.mxu2 }
 0x414   :  { %2140 = vmatpush.bf16.msra.mxu0 %v7771_v44  ;;  %2184 = vmatpush.bf16.msra.mxu3 %v7771_v44 }
 0x415   :  { %2158 = vmatpush.bf16.msra.mxu1 %v7765_v42  ;;  %2171 = vmatpush.bf16.msra.mxu2 %v7769_v43 }
 0x418   :  { %2141 = vmatpush.bf16.msra.mxu0 %v7799_v53  ;;  %2185 = vmatpush.bf16.msra.mxu3 %v7799_v53 }
 0x419   :  { %2159 = vmatpush.bf16.msra.mxu1 %v7793_v51  ;;  %2172 = vmatpush.bf16.msra.mxu2 %v7797_v52 }
 0x41c   :  { %2142 = vmatpush.bf16.msra.mxu0 %v7827_v62  ;;  %2186 = vmatpush.bf16.msra.mxu3 %v7827_v62 }
 0x41d   :  { %2160 = vmatpush.bf16.msra.mxu1 %v7821_v60  ;;  %2173 = vmatpush.bf16.msra.mxu2 %v7825_v61 }
 0x420   :  { %2143 = vmatpush.bf16.msra.mxu0 %v7855_v10  ;;  %2187 = vmatpush.bf16.msra.mxu3 %v7855_v10  ;;  %v1905_v32 = vpop.f32.mrf.mxu0 }
 0x421   :  { %2161 = vmatpush.bf16.msra.mxu1 %v7849_v6  ;;  %2174 = vmatpush.bf16.msra.mxu2 %v7853_v9  ;;  %v1923_v55 = vmax.f32 %v9183_v21, %v1905_v32 }
 0x423   :  { %2144 = vmatmul.bf16.vlgmr.msra.gmra.mxu0 %v5961_v19  ;;  %2188 = vmatmul.bf16.vlgmr.msra.gmra.mxu3 %v5962_v31  ;;  %v1918_v36 = vpop.f32.mrf.mxu1 }
 0x424   :  { %2208 = vmatpush.bf16.msrb.mxu0 %v7646_v3  ;;  %2249 = vmatpush.bf16.msrb.mxu3 %v7646_v3  ;;  %v1924_v56 = vmax.f32 %v9191_v22, %v1918_v36 }
 0x425   :  { %2221 = vmatpush.bf16.msrb.mxu1 %v7657_v7  ;;  %2234 = vmatpush.bf16.msrb.mxu2 %v7659_v8 }
 0x426   :  { %2162 = vmatmul.bf16.vlgmr.msra.gmra.mxu1 %v5962_v31  ;;  %2175 = vmatmul.bf16.vlgmr.msra.gmra.mxu2 %v5962_v31  ;;  %v1949_v38 = vpop.f32.mrf.mxu3 }
 0x427   :  { %v1967_v58 = vmax.f32 %v1923_v55, %v1949_v38 }
 0x428   :  { %2209 = vmatpush.bf16.msrb.mxu0 %v7672_v12  ;;  %2250 = vmatpush.bf16.msrb.mxu3 %v7672_v12  ;;  %v1907_v39 = vpop.f32.mrf.mxu0 }
 0x429   :  { %2222 = vmatpush.bf16.msrb.mxu1 %v7685_v16  ;;  %2235 = vmatpush.bf16.msrb.mxu2 %v7687_v17  ;;  %v1936_v37 = vpop.f32.mrf.mxu2 }
 0x42a   :  { %v1966_v54 = vmax.f32 %v1922_v48, %v1936_v37 }
 0x42b   :  { %v1920_v40 = vpop.f32.mrf.mxu1 }
 0x42c   :  { %2210 = vmatpush.bf16.msrb.mxu0 %v7709_v24  ;;  %2251 = vmatpush.bf16.msrb.mxu3 %v7709_v24 }
 0x42d   :  { %2223 = vmatpush.bf16.msrb.mxu1 %v7713_v25  ;;  %2236 = vmatpush.bf16.msrb.mxu2 %v7715_v26 }
 0x42e   :  { %v1951_v45 = vpop.f32.mrf.mxu3 }
 0x42f   :  { %v5966_v45 = vld [vmem:[%s10495_s0 + $0xc8] sm:$0xf] }
 0x430   :  { %2211 = vmatpush.bf16.msrb.mxu0 %v7737_v33  ;;  %2252 = vmatpush.bf16.msrb.mxu3 %v7737_v33 }
 0x431   :  { %2224 = vmatpush.bf16.msrb.mxu1 %v7741_v34  ;;  %2237 = vmatpush.bf16.msrb.mxu2 %v7743_v35  ;;  %v1938_v41 = vpop.f32.mrf.mxu2 }
 0x434   :  { %2212 = vmatpush.bf16.msrb.mxu0 %v7765_v42  ;;  %2253 = vmatpush.bf16.msrb.mxu3 %v7765_v42 }
 0x435   :  { %2225 = vmatpush.bf16.msrb.mxu1 %v7769_v43  ;;  %2238 = vmatpush.bf16.msrb.mxu2 %v7771_v44 }
 0x438   :  { %2213 = vmatpush.bf16.msrb.mxu0 %v7793_v51  ;;  %2254 = vmatpush.bf16.msrb.mxu3 %v7793_v51 }
 0x439   :  { %2226 = vmatpush.bf16.msrb.mxu1 %v7797_v52  ;;  %2239 = vmatpush.bf16.msrb.mxu2 %v7799_v53 }
 0x43c   :  { %2214 = vmatpush.bf16.msrb.mxu0 %v7821_v60  ;;  %2255 = vmatpush.bf16.msrb.mxu3 %v7821_v60 }
 0x43d   :  { %2227 = vmatpush.bf16.msrb.mxu1 %v7825_v61  ;;  %2240 = vmatpush.bf16.msrb.mxu2 %v7827_v62 }
 0x440   :  { %2215 = vmatpush.bf16.msrb.mxu0 %v7849_v6  ;;  %2256 = vmatpush.bf16.msrb.mxu3 %v7849_v6  ;;  %v1962_v49 = vpop.f32.mrf.mxu0 }
 0x441   :  { %2228 = vmatpush.bf16.msrb.mxu1 %v7853_v9  ;;  %2241 = vmatpush.bf16.msrb.mxu2 %v7855_v10  ;;  %v1968_v59 = vmax.f32 %v1924_v56, %v1962_v49 }
 0x443   :  { %2257 = vmatmul.bf16.vlgmr.msrb.gmra.mxu3 %v9252_v47  ;;  %2216 = vmatmul.bf16.vlgmr.msrb.gmra.mxu0 %v5963_v46  ;;  %v1980_v50 = vpop.f32.mrf.mxu1 }
 0x444   :  { %2262 = vmatpush.bf16.msra.mxu0 %v7657_v7  ;;  %2306 = vmatpush.bf16.msra.mxu3 %v7657_v7  ;;  %v2010_v57 = vmax.f32 %v1966_v54, %v1980_v50 }
 0x445   :  { %2275 = vmatpush.bf16.msra.mxu1 %v7659_v8  ;;  %2293 = vmatpush.bf16.msra.mxu2 %v7646_v3 }
 0x446   :  { %2242 = vmatmul.bf16.vlgmr.msrb.gmra.mxu2 %v5963_v46  ;;  %2229 = vmatmul.bf16.vlgmr.msrb.gmra.mxu1 %v5963_v46  ;;  %v2006_v1 = vpop.f32.mrf.mxu3  ;;  %v2013_v5 = vadd.f32 %v2010_v57, %v8113_v63  ;;  %v5967_v57 = vld [vmem:[%s10495_s0 + $0x30] sm:$0xf] }
 0x447   :  { %v2012_v13 = vmax.f32 %v1968_v59, %v2006_v1 }
 0x448   :  { %2263 = vmatpush.bf16.msra.mxu0 %v7685_v16  ;;  %2307 = vmatpush.bf16.msra.mxu3 %v7685_v16  ;;  %v1964_v14 = vpop.f32.mrf.mxu0  ;;  %v2016_v20 = vmax.f32 %v2013_v5, 0.0 }
 0x449   :  { %2276 = vmatpush.bf16.msra.mxu1 %v7687_v17  ;;  %2294 = vmatpush.bf16.msra.mxu2 %v7672_v12  ;;  %v1993_v0 = vpop.f32.mrf.mxu2  ;;  %v2015_v19 = vadd.f32 %v2012_v13, %v8121_v4 }
 0x44a   :  { %v2011_v11 = vmax.f32 %v1967_v58, %v1993_v0  ;;  %v9380_v58 = vld [vmem:[%s10495_s0 + $0x64] sm:$0xf] }
 0x44b   :  { %v1982_v15 = vpop.f32.mrf.mxu1  ;;  %v2018_v22 = vmax.f32 %v2015_v19, 0.0 }
 0x44c   :  { %2264 = vmatpush.bf16.msra.mxu0 %v7713_v25  ;;  %2308 = vmatpush.bf16.msra.mxu3 %v7713_v25  ;;  %v2014_v18 = vadd.f32 %v2011_v11, %v8119_v2 }
 0x44d   :  { %2277 = vmatpush.bf16.msra.mxu1 %v7715_v26  ;;  %2295 = vmatpush.bf16.msra.mxu2 %v7709_v24  ;;  %v2020_v27 = vpack.c.bf16 %v2018_v22, %v2018_v22 }
 0x44e   :  { %v2017_v21 = vmax.f32 %v2014_v18, 0.0  ;;  %v2008_v29 = vpop.f32.mrf.mxu3 }
 0x44f   :  { %2022 = vst [vmem:[#allocation2 + $0x74] sm:$0xf] %v2020_v27 }
 0x450   :  { %2265 = vmatpush.bf16.msra.mxu0 %v7741_v34  ;;  %2309 = vmatpush.bf16.msra.mxu3 %v7741_v34  ;;  %v2019_v23 = vpack.c.bf16 %v2017_v21, %v2016_v20 }
 0x451   :  { %2278 = vmatpush.bf16.msra.mxu1 %v7743_v35  ;;  %2296 = vmatpush.bf16.msra.mxu2 %v7737_v33  ;;  %v1995_v28 = vpop.f32.mrf.mxu2 }
 0x452   :  { %2021 = vst [vmem:[#allocation2 + $0x6c] sm:$0xff] %v2019_v23 }
 0x454   :  { %2266 = vmatpush.bf16.msra.mxu0 %v7769_v43  ;;  %2310 = vmatpush.bf16.msra.mxu3 %v7769_v43 }
 0x455   :  { %2279 = vmatpush.bf16.msra.mxu1 %v7771_v44  ;;  %2297 = vmatpush.bf16.msra.mxu2 %v7765_v42 }
 0x458   :  { %2267 = vmatpush.bf16.msra.mxu0 %v7797_v52  ;;  %2311 = vmatpush.bf16.msra.mxu3 %v7797_v52 }
 0x459   :  { %2280 = vmatpush.bf16.msra.mxu1 %v7799_v53  ;;  %2298 = vmatpush.bf16.msra.mxu2 %v7793_v51 }
 0x45c   :  { %2268 = vmatpush.bf16.msra.mxu0 %v7825_v61  ;;  %2312 = vmatpush.bf16.msra.mxu3 %v7825_v61 }
 0x45d   :  { %2281 = vmatpush.bf16.msra.mxu1 %v7827_v62  ;;  %2299 = vmatpush.bf16.msra.mxu2 %v7821_v60 }
 0x460   :  { %2269 = vmatpush.bf16.msra.mxu0 %v7853_v9  ;;  %2313 = vmatpush.bf16.msra.mxu3 %v7853_v9  ;;  %v9309_v31 = vpop.f32.mrf.mxu0 }
 0x461   :  { %2282 = vmatpush.bf16.msra.mxu1 %v7855_v10  ;;  %2300 = vmatpush.bf16.msra.mxu2 %v7849_v6 }
 0x463   :  { %2314 = vmatmul.bf16.vlgmr.msra.gmra.mxu3 %v5965_v30  ;;  %2270 = vmatmul.bf16.vlgmr.msra.gmra.mxu0 %v9252_v47  ;;  %v9311_v32 = vpop.f32.mrf.mxu1 }
 0x464   :  { %2319 = vmatpush.bf16.msrb.mxu0 %v7659_v8  ;;  %2363 = vmatpush.bf16.msrb.mxu3 %v7659_v8 }
 0x465   :  { %2337 = vmatpush.bf16.msrb.mxu1 %v7646_v3  ;;  %2350 = vmatpush.bf16.msrb.mxu2 %v7657_v7 }
 0x466   :  { %2301 = vmatmul.bf16.vlgmr.msra.gmra.mxu2 %v5965_v30  ;;  %2283 = vmatmul.bf16.vlgmr.msra.gmra.mxu1 %v9252_v47  ;;  %v9321_v37 = vpop.f32.mrf.mxu3 }
 0x467   :  { %v2105_v59 = vmax.f32 %v9309_v31, %v9321_v37 }
 0x468   :  { %2320 = vmatpush.bf16.msrb.mxu0 %v7687_v17  ;;  %2364 = vmatpush.bf16.msrb.mxu3 %v7687_v17  ;;  %v2036_v38 = vpop.f32.mrf.mxu0 }
 0x469   :  { %2338 = vmatpush.bf16.msrb.mxu1 %v7672_v12  ;;  %2351 = vmatpush.bf16.msrb.mxu2 %v7685_v16  ;;  %v9319_v36 = vpop.f32.mrf.mxu2 }
 0x46b   :  { %v2049_v39 = vpop.f32.mrf.mxu1 }
 0x46c   :  { %2321 = vmatpush.bf16.msrb.mxu0 %v7715_v26  ;;  %2365 = vmatpush.bf16.msrb.mxu3 %v7715_v26 }
 0x46d   :  { %2339 = vmatpush.bf16.msrb.mxu1 %v7709_v24  ;;  %2352 = vmatpush.bf16.msrb.mxu2 %v7713_v25 }
 0x46e   :  { %v2077_v41 = vpop.f32.mrf.mxu3 }
 0x46f   :  { %v5969_v41 = vld [vmem:[%s10495_s0 + $0x98] sm:$0xf] }
 0x470   :  { %2322 = vmatpush.bf16.msrb.mxu0 %v7743_v35  ;;  %2366 = vmatpush.bf16.msrb.mxu3 %v7743_v35 }
 0x471   :  { %2340 = vmatpush.bf16.msrb.mxu1 %v7737_v33  ;;  %2353 = vmatpush.bf16.msrb.mxu2 %v7741_v34  ;;  %v2062_v40 = vpop.f32.mrf.mxu2 }
 0x474   :  { %2323 = vmatpush.bf16.msrb.mxu0 %v7771_v44  ;;  %2367 = vmatpush.bf16.msrb.mxu3 %v7771_v44 }
 0x475   :  { %2341 = vmatpush.bf16.msrb.mxu1 %v7765_v42  ;;  %2354 = vmatpush.bf16.msrb.mxu2 %v7769_v43 }
 0x478   :  { %2324 = vmatpush.bf16.msrb.mxu0 %v7799_v53  ;;  %2368 = vmatpush.bf16.msrb.mxu3 %v7799_v53 }
 0x479   :  { %2342 = vmatpush.bf16.msrb.mxu1 %v7793_v51  ;;  %2355 = vmatpush.bf16.msrb.mxu2 %v7797_v52 }
 0x47c   :  { %2325 = vmatpush.bf16.msrb.mxu0 %v7827_v62  ;;  %2369 = vmatpush.bf16.msrb.mxu3 %v7827_v62 }
 0x47d   :  { %2343 = vmatpush.bf16.msrb.mxu1 %v7821_v60  ;;  %2356 = vmatpush.bf16.msrb.mxu2 %v7825_v61 }
 0x480   :  { %2326 = vmatpush.bf16.msrb.mxu0 %v7855_v10  ;;  %2370 = vmatpush.bf16.msrb.mxu3 %v7855_v10  ;;  %v2088_v46 = vpop.f32.mrf.mxu0 }
 0x481   :  { %2344 = vmatpush.bf16.msrb.mxu1 %v7849_v6  ;;  %2357 = vmatpush.bf16.msrb.mxu2 %v7853_v9  ;;  %v2106_v11 = vmax.f32 %v9311_v32, %v2088_v46  ;;  %v7295_v46 = vld [vmem:[%s10497_s3 + $0xa0] sm:$0xff] }
 0x483   :  { %2327 = vmatmul.bf16.vlgmr.msrb.gmra.mxu0 %v5965_v30  ;;  %2371 = vmatmul.bf16.vlgmr.msrb.gmra.mxu3 %v5966_v45  ;;  %v2101_v47 = vpop.f32.mrf.mxu1 }
 0x484   :  { %2391 = vmatpush.bf16.msra.mxu0 %v7646_v3  ;;  %2432 = vmatpush.bf16.msra.mxu3 %v7646_v3  ;;  %v2107_v13 = vmax.f32 %v9319_v36, %v2101_v47  ;;  %v7303_v47 = vld [vmem:[%s10497_s3 + $0xe0] sm:$0xff] }
 0x485   :  { %2404 = vmatpush.bf16.msra.mxu1 %v7657_v7  ;;  %2417 = vmatpush.bf16.msra.mxu2 %v7659_v8 }
 0x486   :  { %2345 = vmatmul.bf16.vlgmr.msrb.gmra.mxu1 %v5966_v45  ;;  %2358 = vmatmul.bf16.vlgmr.msrb.gmra.mxu2 %v5966_v45  ;;  %v2132_v49 = vpop.f32.mrf.mxu3 }
 0x487   :  { %v2150_v15 = vmax.f32 %v2106_v11, %v2132_v49  ;;  %v7286_v49 = vld [vmem:[%s10497_s3 + $0x58] sm:$0xff]  ;;  %v7276_v11 = vld [vmem:[%s10497_s3 + $0x8] sm:$0xff] }
 0x488   :  { %2392 = vmatpush.bf16.msra.mxu0 %v7672_v12  ;;  %2433 = vmatpush.bf16.msra.mxu3 %v7672_v12  ;;  %v2090_v50 = vpop.f32.mrf.mxu0 }
 0x489   :  { %2405 = vmatpush.bf16.msra.mxu1 %v7685_v16  ;;  %2418 = vmatpush.bf16.msra.mxu2 %v7687_v17  ;;  %v2119_v48 = vpop.f32.mrf.mxu2  ;;  %v7294_v50 = vld [vmem:[%s10497_s3 + $0x98] sm:$0xff] }
 0x48a   :  { %v2149_v5 = vmax.f32 %v2105_v59, %v2119_v48  ;;  %v7278_v48 = vld [vmem:[%s10497_s3 + $0x18] sm:$0xff] }
 0x48b   :  { %v2103_v54 = vpop.f32.mrf.mxu1 }
 0x48c   :  { %2393 = vmatpush.bf16.msra.mxu0 %v7709_v24  ;;  %2434 = vmatpush.bf16.msra.mxu3 %v7709_v24  ;;  %v7302_v54 = vld [vmem:[%s10497_s3 + $0xd8] sm:$0xff] }
 0x48d   :  { %2406 = vmatpush.bf16.msra.mxu1 %v7713_v25  ;;  %2419 = vmatpush.bf16.msra.mxu2 %v7715_v26 }
 0x48e   :  { %v2134_v56 = vpop.f32.mrf.mxu3 }
 0x490   :  { %2394 = vmatpush.bf16.msra.mxu0 %v7737_v33  ;;  %2435 = vmatpush.bf16.msra.mxu3 %v7737_v33 }
 0x491   :  { %2407 = vmatpush.bf16.msra.mxu1 %v7741_v34  ;;  %2420 = vmatpush.bf16.msra.mxu2 %v7743_v35  ;;  %v2121_v55 = vpop.f32.mrf.mxu2 }
 0x494   :  { %2395 = vmatpush.bf16.msra.mxu0 %v7765_v42  ;;  %2436 = vmatpush.bf16.msra.mxu3 %v7765_v42 }
 0x495   :  { %2408 = vmatpush.bf16.msra.mxu1 %v7769_v43  ;;  %2421 = vmatpush.bf16.msra.mxu2 %v7771_v44 }
 0x498   :  { %2396 = vmatpush.bf16.msra.mxu0 %v7793_v51  ;;  %2437 = vmatpush.bf16.msra.mxu3 %v7793_v51 }
 0x499   :  { %2409 = vmatpush.bf16.msra.mxu1 %v7797_v52  ;;  %2422 = vmatpush.bf16.msra.mxu2 %v7799_v53 }
 0x49c   :  { %2397 = vmatpush.bf16.msra.mxu0 %v7821_v60  ;;  %2438 = vmatpush.bf16.msra.mxu3 %v7821_v60 }
 0x49d   :  { %2410 = vmatpush.bf16.msra.mxu1 %v7825_v61  ;;  %2423 = vmatpush.bf16.msra.mxu2 %v7827_v62 }
 0x4a0   :  { %2398 = vmatpush.bf16.msra.mxu0 %v7849_v6  ;;  %2439 = vmatpush.bf16.msra.mxu3 %v7849_v6  ;;  %v2145_v0 = vpop.f32.mrf.mxu0 }
 0x4a1   :  { %2411 = vmatpush.bf16.msra.mxu1 %v7853_v9  ;;  %2424 = vmatpush.bf16.msra.mxu2 %v7855_v10  ;;  %v2151_v18 = vmax.f32 %v2107_v13, %v2145_v0  ;;  %v7284_v13 = vld [vmem:[%s10497_s3 + $0x48] sm:$0xff] }
 0x4a3   :  { %2440 = vmatmul.bf16.vlgmr.msra.gmra.mxu3 %v9380_v58  ;;  %2399 = vmatmul.bf16.vlgmr.msra.gmra.mxu0 %v5967_v57  ;;  %v2163_v1 = vpop.f32.mrf.mxu1 }
 0x4a4   :  { %2445 = vmatpush.bf16.msrb.mxu0 %v7657_v7  ;;  %2489 = vmatpush.bf16.msrb.mxu3 %v7657_v7  ;;  %v2193_v14 = vmax.f32 %v2149_v5, %v2163_v1  ;;  %v7293_v1 = vld [vmem:[%s10497_s3 + $0x90] sm:$0xff] }
 0x4a5   :  { %2458 = vmatpush.bf16.msrb.mxu1 %v7659_v8  ;;  %2476 = vmatpush.bf16.msrb.mxu2 %v7646_v3  ;;  %v7301_v5 = vld [vmem:[%s10497_s3 + $0xd0] sm:$0xff] }
 0x4a6   :  { %2425 = vmatmul.bf16.vlgmr.msra.gmra.mxu2 %v5967_v57  ;;  %2412 = vmatmul.bf16.vlgmr.msra.gmra.mxu1 %v5967_v57  ;;  %v2189_v20 = vpop.f32.mrf.mxu3  ;;  %v2196_v21 = vadd.f32 %v2193_v14, %v8113_v63  ;;  %v7277_v57 = vld [vmem:[%s10497_s3 + $0x10] sm:$0xff]  ;;  %v7292_v14 = vld [vmem:[%s10497_s3 + $0x88] sm:$0xff] }
 0x4a7   :  { %v2195_v23 = vmax.f32 %v2151_v18, %v2189_v20  ;;  %v2572_v20 = vld [vmem:[#allocation2] sm:$0xff] }
 0x4a8   :  { %2446 = vmatpush.bf16.msrb.mxu0 %v7685_v16  ;;  %2490 = vmatpush.bf16.msrb.mxu3 %v7685_v16  ;;  %v2147_v27 = vpop.f32.mrf.mxu0  ;;  %v2199_v31 = vmax.f32 %v2196_v21, 0.0  ;;  %v7275_v21 = vld [vmem:[%s10497_s3] sm:$0xff] }
 0x4a9   :  { %2459 = vmatpush.bf16.msrb.mxu1 %v7687_v17  ;;  %2477 = vmatpush.bf16.msrb.mxu2 %v7672_v12  ;;  %v2176_v19 = vpop.f32.mrf.mxu2  ;;  %v2198_v30 = vadd.f32 %v2195_v23, %v8121_v4  ;;  %v2573_v23 = vld [vmem:[#allocation2 + $0x8] sm:$0xff]  ;;  %v7291_v27 = vld [vmem:[%s10497_s3 + $0x80] sm:$0xff] }
 0x4aa   :  { %v2194_v22 = vmax.f32 %v2150_v15, %v2176_v19  ;;  %v7300_v15 = vld [vmem:[%s10497_s3 + $0xc8] sm:$0xff] }
 0x4ab   :  { %v2165_v28 = vpop.f32.mrf.mxu1  ;;  %v2201_v36 = vmax.f32 %v2198_v30, 0.0  ;;  %v7322_v30 = vld [vmem:[%s10497_s3 + $0x178] sm:$0xff] }
 0x4ac   :  { %2447 = vmatpush.bf16.msrb.mxu0 %v7713_v25  ;;  %2491 = vmatpush.bf16.msrb.mxu3 %v7713_v25  ;;  %v2197_v29 = vadd.f32 %v2194_v22, %v8119_v2  ;;  %v7283_v22 = vld [vmem:[%s10497_s3 + $0x40] sm:$0xff] }
 0x4ad   :  { %2460 = vmatpush.bf16.msrb.mxu1 %v7715_v26  ;;  %2478 = vmatpush.bf16.msrb.mxu2 %v7709_v24  ;;  %v2203_v38 = vpack.c.bf16 %v2201_v36, %v2201_v36  ;;  %v7299_v28 = vld [vmem:[%s10497_s3 + $0xc0] sm:$0xff]  ;;  %v7330_v36 = vld [vmem:[%s10497_s3 + $0x1b8] sm:$0xff] }
 0x4ae   :  { %v2200_v32 = vmax.f32 %v2197_v29, 0.0  ;;  %v2191_v40 = vpop.f32.mrf.mxu3  ;;  %v7314_v29 = vld [vmem:[%s10497_s3 + $0x138] sm:$0xff] }
 0x4af   :  { %2205 = vst [vmem:[#allocation2 + $0x80] sm:$0xf] %v2203_v38  ;;  %v3242_v38 = vunpack.c.l.b16 %v2573_v23 }
 0x4b0   :  { %2448 = vmatpush.bf16.msrb.mxu0 %v7741_v34  ;;  %2492 = vmatpush.bf16.msrb.mxu3 %v7741_v34  ;;  %v2202_v37 = vpack.c.bf16 %v2200_v32, %v2199_v31  ;;  %v3240_v31 = vunpack.c.l.b16 %v2572_v20  ;;  %v3241_v32 = vunpack.c.h.b16 %v2572_v20 }
 0x4b1   :  { %2461 = vmatpush.bf16.msrb.mxu1 %v7743_v35  ;;  %2479 = vmatpush.bf16.msrb.mxu2 %v7737_v33  ;;  %v2178_v39 = vpop.f32.mrf.mxu2 }
 0x4b2   :  { %2204 = vst [vmem:[#allocation2 + $0x78] sm:$0xff] %v2202_v37  ;;  %v7338_v37 = vld [vmem:[%s10497_s3 + $0x1f8] sm:$0xff]  ;;  %v3243_v39 = vunpack.c.h.b16 %v2573_v23  ;;  %v3279_v40 = vpack.c.b16 %v3240_v31, %v3240_v31  ;;  %v7332_v23 = vld [vmem:[%s10497_s3 + $0x1c8] sm:$0xff]  ;;  %v7315_v31 = vld [vmem:[%s10497_s3 + $0x140] sm:$0xff] }
 0x4b4   :  { %2449 = vmatpush.bf16.msrb.mxu0 %v7769_v43  ;;  %2493 = vmatpush.bf16.msrb.mxu3 %v7769_v43 }
 0x4b5   :  { %2462 = vmatpush.bf16.msrb.mxu1 %v7771_v44  ;;  %2480 = vmatpush.bf16.msrb.mxu2 %v7765_v42 }
 0x4b8   :  { %2450 = vmatpush.bf16.msrb.mxu0 %v7797_v52  ;;  %2494 = vmatpush.bf16.msrb.mxu3 %v7797_v52 }
 0x4b9   :  { %2463 = vmatpush.bf16.msrb.mxu1 %v7799_v53  ;;  %2481 = vmatpush.bf16.msrb.mxu2 %v7793_v51 }
 0x4bc   :  { %2451 = vmatpush.bf16.msrb.mxu0 %v7825_v61  ;;  %2495 = vmatpush.bf16.msrb.mxu3 %v7825_v61 }
 0x4bd   :  { %2464 = vmatpush.bf16.msrb.mxu1 %v7827_v62  ;;  %2482 = vmatpush.bf16.msrb.mxu2 %v7821_v60 }
 0x4c0   :  { %2452 = vmatpush.bf16.msrb.mxu0 %v7853_v9  ;;  %2496 = vmatpush.bf16.msrb.mxu3 %v7853_v9 }
 0x4c1   :  { %2465 = vmatpush.bf16.msrb.mxu1 %v7855_v10  ;;  %2483 = vmatpush.bf16.msrb.mxu2 %v7849_v6 }
 0x4c3   :  { %2497 = vmatmul.bf16.vlgmr.msrb.gmra.mxu3 %v5969_v41  ;;  %2453 = vmatmul.bf16.vlgmr.msrb.gmra.mxu0 %v9380_v58 }
 0x4c4   :  { %2502 = vmatpush.bf16.msra.mxu0 %v7659_v8  ;;  %2546 = vmatpush.bf16.msra.mxu3 %v7659_v8 }
 0x4c5   :  { %2520 = vmatpush.bf16.msra.mxu1 %v7646_v3  ;;  %2533 = vmatpush.bf16.msra.mxu2 %v7657_v7  ;;  %v9437_v3 = vpop.f32.mrf.mxu0  ;;  %v9439_v7 = vpop.f32.mrf.mxu1 }
 0x4c6   :  { %2484 = vmatmul.bf16.vlgmr.msrb.gmra.mxu2 %v5969_v41  ;;  %2466 = vmatmul.bf16.vlgmr.msrb.gmra.mxu1 %v9380_v58  ;;  %v7285_v58 = vld [vmem:[%s10497_s3 + $0x50] sm:$0xff] }
 0x4c8   :  { %2503 = vmatpush.bf16.msra.mxu0 %v7687_v17  ;;  %2547 = vmatpush.bf16.msra.mxu3 %v7687_v17 }
 0x4c9   :  { %2521 = vmatpush.bf16.msra.mxu1 %v7672_v12  ;;  %2534 = vmatpush.bf16.msra.mxu2 %v7685_v16  ;;  %v9447_v8 = vpop.f32.mrf.mxu2  ;;  %v9449_v12 = vpop.f32.mrf.mxu3 }
 0x4cc   :  { %2504 = vmatpush.bf16.msra.mxu0 %v7715_v26  ;;  %2548 = vmatpush.bf16.msra.mxu3 %v7715_v26  ;;  %v7282_v26 = vld [vmem:[%s10497_s3 + $0x38] sm:$0xff] }
 0x4cd   :  { %2522 = vmatpush.bf16.msra.mxu1 %v7709_v24  ;;  %2535 = vmatpush.bf16.msra.mxu2 %v7713_v25  ;;  %v2219_v16 = vpop.f32.mrf.mxu0  ;;  %v2232_v17 = vpop.f32.mrf.mxu1 }
 0x4ce   :  { %v7313_v16 = vld [vmem:[%s10497_s3 + $0x130] sm:$0xff] }
 0x4cf   :  { %v7321_v17 = vld [vmem:[%s10497_s3 + $0x170] sm:$0xff] }
 0x4d0   :  { %2505 = vmatpush.bf16.msra.mxu0 %v7743_v35  ;;  %2549 = vmatpush.bf16.msra.mxu3 %v7743_v35  ;;  %v7306_v35 = vld [vmem:[%s10497_s3 + $0xf8] sm:$0xff] }
 0x4d1   :  { %2523 = vmatpush.bf16.msra.mxu1 %v7737_v33  ;;  %2536 = vmatpush.bf16.msra.mxu2 %v7741_v34  ;;  %v2245_v24 = vpop.f32.mrf.mxu2  ;;  %v2260_v25 = vpop.f32.mrf.mxu3  ;;  %v7290_v33 = vld [vmem:[%s10497_s3 + $0x78] sm:$0xff] }
 0x4d2   :  { %v7298_v34 = vld [vmem:[%s10497_s3 + $0xb8] sm:$0xff]  ;;  %v3281_v24 = vpack.c.b16 %v3242_v38, %v3242_v38  ;;  %v3282_v25 = vpack.c.b16 %v3243_v39, %v3243_v39 }
 0x4d3   :  { %v7346_v38 = vld [vmem:[%s10497_s3 + $0x238] sm:$0xff] }
 0x4d4   :  { %2506 = vmatpush.bf16.msra.mxu0 %v7771_v44  ;;  %2550 = vmatpush.bf16.msra.mxu3 %v7771_v44  ;;  %v7289_v44 = vld [vmem:[%s10497_s3 + $0x70] sm:$0xff]  ;;  %v7354_v39 = vld [vmem:[%s10497_s3 + $0x278] sm:$0xff] }
 0x4d5   :  { %2524 = vmatpush.bf16.msra.mxu1 %v7765_v42  ;;  %2537 = vmatpush.bf16.msra.mxu2 %v7769_v43  ;;  %v5970_v42 = vld [vmem:[%s10495_s0 + $0xcc] sm:$0xf]  ;;  %v7281_v43 = vld [vmem:[%s10497_s3 + $0x30] sm:$0xff] }
 0x4d8   :  { %2507 = vmatpush.bf16.msra.mxu0 %v7799_v53  ;;  %2551 = vmatpush.bf16.msra.mxu3 %v7799_v53  ;;  %v7280_v53 = vld [vmem:[%s10497_s3 + $0x28] sm:$0xff] }
 0x4d9   :  { %2525 = vmatpush.bf16.msra.mxu1 %v7793_v51  ;;  %2538 = vmatpush.bf16.msra.mxu2 %v7797_v52  ;;  %v7297_v51 = vld [vmem:[%s10497_s3 + $0xb0] sm:$0xff] }
 0x4da   :  { %v7305_v52 = vld [vmem:[%s10497_s3 + $0xf0] sm:$0xff] }
 0x4dc   :  { %2508 = vmatpush.bf16.msra.mxu0 %v7827_v62  ;;  %2552 = vmatpush.bf16.msra.mxu3 %v7827_v62  ;;  %v7304_v62 = vld [vmem:[%s10497_s3 + $0xe8] sm:$0xff] }
 0x4dd   :  { %2526 = vmatpush.bf16.msra.mxu1 %v7821_v60  ;;  %2539 = vmatpush.bf16.msra.mxu2 %v7825_v61  ;;  %v7288_v60 = vld [vmem:[%s10497_s3 + $0x68] sm:$0xff] }
 0x4de   :  { %v7296_v61 = vld [vmem:[%s10497_s3 + $0xa8] sm:$0xff] }
 0x4e0   :  { %2509 = vmatpush.bf16.msra.mxu0 %v7855_v10  ;;  %2553 = vmatpush.bf16.msra.mxu3 %v7855_v10  ;;  %v9512_v10 = vpop.f32.mrf.mxu0 }
 0x4e1   :  { %2527 = vmatpush.bf16.msra.mxu1 %v7849_v6  ;;  %2540 = vmatpush.bf16.msra.mxu2 %v7853_v9  ;;  %v7279_v6 = vld [vmem:[%s10497_s3 + $0x20] sm:$0xff] }
 0x4e2   :  { %v7287_v9 = vld [vmem:[%s10497_s3 + $0x60] sm:$0xff] }
 0x4e3   :  { %2510 = vmatmul.bf16.vlgmr.msra.gmra.mxu0 %v5969_v41  ;;  %2554 = vmatmul.bf16.vlgmr.msra.gmra.mxu3 %v5970_v42  ;;  %v9514_v45 = vpop.f32.mrf.mxu1  ;;  %v3280_v41 = vpack.c.b16 %v3241_v32, %v3241_v32  ;;  %v2575_v32 = vld [vmem:[#allocation2 + $0x18] sm:$0xff] }
 0x4e4   :  { %5229 = vmatpush.bf16.msrb.mxu0 %v7282_v26  ;;  %5268 = vmatpush.bf16.msrb.mxu3 %v7306_v35  ;;  %v7329_v26 = vld [vmem:[%s10497_s3 + $0x1b0] sm:$0xff]  ;;  %v7320_v35 = vld [vmem:[%s10497_s3 + $0x168] sm:$0xff] }
 0x4e5   :  { %5242 = vmatpush.bf16.msrb.mxu1 %v7290_v33  ;;  %5255 = vmatpush.bf16.msrb.mxu2 %v7298_v34  ;;  %v7337_v33 = vld [vmem:[%s10497_s3 + $0x1f0] sm:$0xff]  ;;  %v7312_v34 = vld [vmem:[%s10497_s3 + $0x128] sm:$0xff] }
 0x4e6   :  { %2528 = vmatmul.bf16.vlgmr.msra.gmra.mxu1 %v5970_v42  ;;  %2541 = vmatmul.bf16.vlgmr.msra.gmra.mxu2 %v5970_v42  ;;  %v9536_v56 = vpop.f32.mrf.mxu3  ;;  %v7328_v42 = vld [vmem:[%s10497_s3 + $0x1a8] sm:$0xff] }
 0x4e8   :  { %5230 = vmatpush.bf16.msrb.mxu0 %v7281_v43  ;;  %5269 = vmatpush.bf16.msrb.mxu3 %v7305_v52  ;;  %v2273_v59 = vpop.f32.mrf.mxu0  ;;  %v7336_v43 = vld [vmem:[%s10497_s3 + $0x1e8] sm:$0xff] }
 0x4e9   :  { %5243 = vmatpush.bf16.msrb.mxu1 %v7289_v44  ;;  %5256 = vmatpush.bf16.msrb.mxu2 %v7297_v51  ;;  %v9534_v55 = vpop.f32.mrf.mxu2  ;;  %v2288_v44 = vmax.f32 %v9437_v3, %v9449_v12  ;;  %v7327_v3 = vld [vmem:[%s10497_s3 + $0x1a0] sm:$0xff]  ;;  %v7317_v59 = vld [vmem:[%s10497_s3 + $0x150] sm:$0xff] }
 0x4ea   :  { %v7335_v12 = vld [vmem:[%s10497_s3 + $0x1e0] sm:$0xff] }
 0x4eb   :  { %v2286_v0 = vpop.f32.mrf.mxu1 }
 0x4ec   :  { %5231 = vmatpush.bf16.msrb.mxu0 %v7280_v53  ;;  %5270 = vmatpush.bf16.msrb.mxu3 %v7304_v62  ;;  %v7311_v53 = vld [vmem:[%s10497_s3 + $0x120] sm:$0xff]  ;;  %v2289_v62 = vmax.f32 %v9439_v7, %v9512_v10  ;;  %v7326_v7 = vld [vmem:[%s10497_s3 + $0x198] sm:$0xff] }
 0x4ed   :  { %5244 = vmatpush.bf16.msrb.mxu1 %v7288_v60  ;;  %5257 = vmatpush.bf16.msrb.mxu2 %v7296_v61  ;;  %v7319_v60 = vld [vmem:[%s10497_s3 + $0x160] sm:$0xff]  ;;  %v2332_v61 = vmax.f32 %v2288_v44, %v9534_v55  ;;  %v7361_v44 = vld [vmem:[%s10497_s3 + $0x2b0] sm:$0xff] }
 0x4ee   :  { %v2317_v19 = vpop.f32.mrf.mxu3 }
 0x4ef   :  { %v7316_v19 = vld [vmem:[%s10497_s3 + $0x148] sm:$0xff] }
 0x4f0   :  { %5232 = vmatpush.bf16.msrb.mxu0 %v7279_v6  ;;  %5271 = vmatpush.bf16.msrb.mxu3 %v7303_v47  ;;  %v2290_v6 = vmax.f32 %v9447_v8, %v9514_v45  ;;  %v7318_v47 = vld [vmem:[%s10497_s3 + $0x158] sm:$0xff] }
 0x4f1   :  { %5245 = vmatpush.bf16.msrb.mxu1 %v7287_v9  ;;  %5258 = vmatpush.bf16.msrb.mxu2 %v7295_v46  ;;  %v2304_v18 = vpop.f32.mrf.mxu2  ;;  %v7310_v46 = vld [vmem:[%s10497_s3 + $0x118] sm:$0xff] }
 0x4f2   :  { %v7334_v8 = vld [vmem:[%s10497_s3 + $0x1d8] sm:$0xff]  ;;  %v7308_v18 = vld [vmem:[%s10497_s3 + $0x108] sm:$0xff] }
 0x4f4   :  { %5233 = vmatpush.bf16.msrb.mxu0 %v7278_v48  ;;  %5272 = vmatpush.bf16.msrb.mxu3 %v7302_v54  ;;  %v2333_v48 = vmax.f32 %v2289_v62, %v9536_v56  ;;  %v7309_v56 = vld [vmem:[%s10497_s3 + $0x110] sm:$0xff] }
 0x4f5   :  { %5246 = vmatpush.bf16.msrb.mxu1 %v7286_v49  ;;  %5259 = vmatpush.bf16.msrb.mxu2 %v7294_v50 }
 0x4f8   :  { %5234 = vmatpush.bf16.msrb.mxu0 %v7277_v57  ;;  %5273 = vmatpush.bf16.msrb.mxu3 %v7301_v5  ;;  %v7325_v5 = vld [vmem:[%s10497_s3 + $0x190] sm:$0xff] }
 0x4f9   :  { %5247 = vmatpush.bf16.msrb.mxu1 %v7285_v58  ;;  %5260 = vmatpush.bf16.msrb.mxu2 %v7293_v1 }
 0x4fc   :  { %5235 = vmatpush.bf16.msrb.mxu0 %v7276_v11  ;;  %5274 = vmatpush.bf16.msrb.mxu3 %v7300_v15  ;;  %v7333_v11 = vld [vmem:[%s10497_s3 + $0x1d0] sm:$0xff] }
 0x4fd   :  { %5248 = vmatpush.bf16.msrb.mxu1 %v7284_v13  ;;  %5261 = vmatpush.bf16.msrb.mxu2 %v7292_v14 }
 0x500   :  { %5236 = vmatpush.bf16.msrb.mxu0 %v7275_v21  ;;  %5275 = vmatpush.bf16.msrb.mxu3 %v7299_v28  ;;  %v2328_v51 = vpop.f32.mrf.mxu0 }
 0x501   :  { %5249 = vmatpush.bf16.msrb.mxu1 %v7283_v22  ;;  %5262 = vmatpush.bf16.msrb.mxu2 %v7291_v27  ;;  %v2334_v49 = vmax.f32 %v2290_v6, %v2328_v51  ;;  %v7324_v22 = vld [vmem:[%s10497_s3 + $0x188] sm:$0xff]  ;;  %v7369_v51 = vld [vmem:[%s10497_s3 + $0x2f0] sm:$0xff] }
 0x503   :  { %5237 = vmatmul.bf16.vlgmr.msrb.gmra.mxu0 %v3279_v40  ;;  %5276 = vmatmul.bf16.vlgmr.msrb.gmra.mxu3 %v3282_v25  ;;  %v2346_v52 = vpop.f32.mrf.mxu1  ;;  %v3247_v25 = vunpack.c.h.b16 %v2575_v32 }
 0x504   :  { %5281 = vmatpush.bf16.msra.mxu0 %v7314_v29  ;;  %5320 = vmatpush.bf16.msra.mxu3 %v7338_v37  ;;  %v2376_v9 = vmax.f32 %v2332_v61, %v2346_v52  ;;  %v2574_v29 = vld [vmem:[#allocation2 + $0x10] sm:$0xff]  ;;  %v7331_v37 = vld [vmem:[%s10497_s3 + $0x1c0] sm:$0xff]  ;;  %v7344_v52 = vld [vmem:[%s10497_s3 + $0x228] sm:$0xff] }
 0x505   :  { %5294 = vmatpush.bf16.msra.mxu1 %v7322_v30  ;;  %5307 = vmatpush.bf16.msra.mxu2 %v7330_v36  ;;  %v7307_v30 = vld [vmem:[%s10497_s3 + $0x100] sm:$0xff]  ;;  %v3244_v40 = vunpack.c.l.b16 %v2574_v29  ;;  %v7368_v61 = vld [vmem:[%s10497_s3 + $0x2e8] sm:$0xff] }
 0x506   :  { %5250 = vmatmul.bf16.vlgmr.msrb.gmra.mxu1 %v3280_v41  ;;  %5263 = vmatmul.bf16.vlgmr.msrb.gmra.mxu2 %v3281_v24  ;;  %v2372_v45 = vpop.f32.mrf.mxu3  ;;  %v2379_v50 = vadd.f32 %v2376_v9, %v8113_v63  ;;  %v7323_v36 = vld [vmem:[%s10497_s3 + $0x180] sm:$0xff]  ;;  %v3245_v41 = vunpack.c.h.b16 %v2574_v29  ;;  %v3246_v24 = vunpack.c.l.b16 %v2575_v32  ;;  %v7402_v29 = vld [vmem:[%s10497_s3 + $0x3f8] sm:$0xff] }
 0x507   :  { %v2378_v55 = vmax.f32 %v2334_v49, %v2372_v45  ;;  %v7359_v9 = vld [vmem:[%s10497_s3 + $0x2a0] sm:$0xff]  ;;  %v7358_v49 = vld [vmem:[%s10497_s3 + $0x298] sm:$0xff]  ;;  %v7341_v45 = vld [vmem:[%s10497_s3 + $0x210] sm:$0xff] }
 0x508   :  { %5282 = vmatpush.bf16.msra.mxu0 %v7313_v16  ;;  %5321 = vmatpush.bf16.msra.mxu3 %v7337_v33  ;;  %v2330_v57 = vpop.f32.mrf.mxu0  ;;  %v2382_v13 = vmax.f32 %v2379_v50, 0.0  ;;  %v7362_v16 = vld [vmem:[%s10497_s3 + $0x2b8] sm:$0xff]  ;;  %v3284_v33 = vpack.c.b16 %v3245_v41, %v3245_v41  ;;  %v7349_v50 = vld [vmem:[%s10497_s3 + $0x250] sm:$0xff] }
 0x509   :  { %5295 = vmatpush.bf16.msra.mxu1 %v7321_v17  ;;  %5308 = vmatpush.bf16.msra.mxu2 %v7329_v26  ;;  %v2359_v10 = vpop.f32.mrf.mxu2  ;;  %v2381_v1 = vadd.f32 %v2378_v55, %v8121_v4  ;;  %v7370_v17 = vld [vmem:[%s10497_s3 + $0x2f8] sm:$0xff]  ;;  %v3283_v26 = vpack.c.b16 %v3244_v40, %v3244_v40  ;;  %v7357_v57 = vld [vmem:[%s10497_s3 + $0x290] sm:$0xff] }
 0x50a   :  { %v2377_v54 = vmax.f32 %v2333_v48, %v2359_v10  ;;  %v7350_v48 = vld [vmem:[%s10497_s3 + $0x258] sm:$0xff]  ;;  %v7393_v41 = vld [vmem:[%s10497_s3 + $0x3b0] sm:$0xff] }
 0x50b   :  { %v2348_v58 = vpop.f32.mrf.mxu1  ;;  %v2384_v15 = vmax.f32 %v2381_v1, 0.0  ;;  %v7364_v1 = vld [vmem:[%s10497_s3 + $0x2c8] sm:$0xff] }
 0x50c   :  { %5283 = vmatpush.bf16.msra.mxu0 %v7312_v34  ;;  %5322 = vmatpush.bf16.msra.mxu3 %v7336_v43  ;;  %v2380_v0 = vadd.f32 %v2377_v54, %v8119_v2  ;;  %v7345_v34 = vld [vmem:[%s10497_s3 + $0x230] sm:$0xff]  ;;  %v3286_v43 = vpack.c.b16 %v3247_v25, %v3247_v25  ;;  %v7392_v25 = vld [vmem:[%s10497_s3 + $0x3a8] sm:$0xff] }
 0x50d   :  { %5296 = vmatpush.bf16.msra.mxu1 %v7320_v35  ;;  %5309 = vmatpush.bf16.msra.mxu2 %v7328_v42  ;;  %v2386_v21 = vpack.c.bf16 %v2384_v15, %v2384_v15  ;;  %v7353_v35 = vld [vmem:[%s10497_s3 + $0x270] sm:$0xff]  ;;  %v3285_v42 = vpack.c.b16 %v3246_v24, %v3246_v24  ;;  %v7347_v15 = vld [vmem:[%s10497_s3 + $0x240] sm:$0xff]  ;;  %v7384_v24 = vld [vmem:[%s10497_s3 + $0x368] sm:$0xff] }
 0x50e   :  { %v2383_v14 = vmax.f32 %v2380_v0, 0.0  ;;  %v2374_v28 = vpop.f32.mrf.mxu3  ;;  %v7365_v58 = vld [vmem:[%s10497_s3 + $0x2d0] sm:$0xff]  ;;  %v7356_v0 = vld [vmem:[%s10497_s3 + $0x288] sm:$0xff] }
 0x50f   :  { %2388 = vst [vmem:[#allocation2 + $0x8c] sm:$0xf] %v2386_v21  ;;  %v7378_v21 = vld [vmem:[%s10497_s3 + $0x338] sm:$0xff] }
 0x510   :  { %5284 = vmatpush.bf16.msra.mxu0 %v7311_v53  ;;  %5323 = vmatpush.bf16.msra.mxu3 %v7335_v12  ;;  %v2385_v20 = vpack.c.bf16 %v2383_v14, %v2382_v13  ;;  %v7352_v53 = vld [vmem:[%s10497_s3 + $0x268] sm:$0xff]  ;;  %v7351_v12 = vld [vmem:[%s10497_s3 + $0x260] sm:$0xff]  ;;  %v7394_v28 = vld [vmem:[%s10497_s3 + $0x3b8] sm:$0xff] }
 0x511   :  { %5297 = vmatpush.bf16.msra.mxu1 %v7319_v60  ;;  %5310 = vmatpush.bf16.msra.mxu2 %v7327_v3  ;;  %v2361_v27 = vpop.f32.mrf.mxu2  ;;  %v7360_v60 = vld [vmem:[%s10497_s3 + $0x2a8] sm:$0xff]  ;;  %v7343_v3 = vld [vmem:[%s10497_s3 + $0x220] sm:$0xff] }
 0x512   :  { %2387 = vst [vmem:[#allocation2 + $0x84] sm:$0xff] %v2385_v20  ;;  %v2576_v13 = vld [vmem:[#allocation2 + $0x20] sm:$0xff] }
 0x513   :  { %v7339_v14 = vld [vmem:[%s10497_s3 + $0x200] sm:$0xff]  ;;  %v3249_v27 = vunpack.c.h.b16 %v2576_v13 }
 0x514   :  { %5285 = vmatpush.bf16.msra.mxu0 %v7310_v46  ;;  %5324 = vmatpush.bf16.msra.mxu3 %v7334_v8  ;;  %v7367_v46 = vld [vmem:[%s10497_s3 + $0x2e0] sm:$0xff] }
 0x515   :  { %5298 = vmatpush.bf16.msra.mxu1 %v7318_v47  ;;  %5311 = vmatpush.bf16.msra.mxu2 %v7326_v7  ;;  %v7342_v47 = vld [vmem:[%s10497_s3 + $0x218] sm:$0xff]  ;;  %v7363_v20 = vld [vmem:[%s10497_s3 + $0x2c0] sm:$0xff] }
 0x516   :  { %v7366_v7 = vld [vmem:[%s10497_s3 + $0x2d8] sm:$0xff] }
 0x518   :  { %5286 = vmatpush.bf16.msra.mxu0 %v7309_v56  ;;  %5325 = vmatpush.bf16.msra.mxu3 %v7333_v11  ;;  %v7340_v56 = vld [vmem:[%s10497_s3 + $0x208] sm:$0xff] }
 0x519   :  { %5299 = vmatpush.bf16.msra.mxu1 %v7317_v59  ;;  %5312 = vmatpush.bf16.msra.mxu2 %v7325_v5  ;;  %v7348_v59 = vld [vmem:[%s10497_s3 + $0x248] sm:$0xff] }
 0x51c   :  { %5287 = vmatpush.bf16.msra.mxu0 %v7308_v18  ;;  %5326 = vmatpush.bf16.msra.mxu3 %v7332_v23  ;;  %v2577_v18 = vld [vmem:[#allocation2 + $0x28] sm:$0xff]  ;;  %v3248_v23 = vunpack.c.l.b16 %v2576_v13  ;;  %v7418_v13 = vld [vmem:[%s10497_s3 + $0x478] sm:$0xff] }
 0x51d   :  { %5300 = vmatpush.bf16.msra.mxu1 %v7316_v19  ;;  %5313 = vmatpush.bf16.msra.mxu2 %v7324_v22  ;;  %v7355_v19 = vld [vmem:[%s10497_s3 + $0x280] sm:$0xff]  ;;  %v7386_v22 = vld [vmem:[%s10497_s3 + $0x378] sm:$0xff] }
 0x51e   :  { %v3287_v32 = vpack.c.b16 %v3248_v23, %v3248_v23 }
 0x520   :  { %5288 = vmatpush.bf16.msra.mxu0 %v7307_v30  ;;  %5327 = vmatpush.bf16.msra.mxu3 %v7331_v37  ;;  %v9723_v62 = vpop.f32.mrf.mxu0  ;;  %v3250_v30 = vunpack.c.l.b16 %v2577_v18  ;;  %v7377_v37 = vld [vmem:[%s10497_s3 + $0x330] sm:$0xff] }
 0x521   :  { %5301 = vmatpush.bf16.msra.mxu1 %v7315_v31  ;;  %5314 = vmatpush.bf16.msra.mxu2 %v7323_v36  ;;  %v3251_v31 = vunpack.c.h.b16 %v2577_v18  ;;  %v3288_v36 = vpack.c.b16 %v3249_v27, %v3249_v27  ;;  %v7426_v18 = vld [vmem:[%s10497_s3 + $0x4b8] sm:$0xff]  ;;  %v7409_v27 = vld [vmem:[%s10497_s3 + $0x430] sm:$0xff] }
 0x523   :  { %5289 = vmatmul.bf16.vlgmr.msra.gmra.mxu0 %v3283_v26  ;;  %5328 = vmatmul.bf16.vlgmr.msra.gmra.mxu3 %v3286_v43  ;;  %v9725_v6 = vpop.f32.mrf.mxu1  ;;  %v3290_v40 = vpack.c.b16 %v3251_v31, %v3251_v31  ;;  %v7400_v26 = vld [vmem:[%s10497_s3 + $0x3e8] sm:$0xff]  ;;  %v7391_v43 = vld [vmem:[%s10497_s3 + $0x3a0] sm:$0xff]  ;;  %v7425_v31 = vld [vmem:[%s10497_s3 + $0x4b0] sm:$0xff] }
 0x524   :  { %5333 = vmatpush.bf16.msrb.mxu0 %v7346_v38  ;;  %5372 = vmatpush.bf16.msrb.mxu3 %v7370_v17  ;;  %v7385_v38 = vld [vmem:[%s10497_s3 + $0x370] sm:$0xff]  ;;  %v7376_v17 = vld [vmem:[%s10497_s3 + $0x328] sm:$0xff] }
 0x525   :  { %5346 = vmatpush.bf16.msrb.mxu1 %v7354_v39  ;;  %5359 = vmatpush.bf16.msrb.mxu2 %v7362_v16  ;;  %v3289_v39 = vpack.c.b16 %v3250_v30, %v3250_v30  ;;  %v7401_v16 = vld [vmem:[%s10497_s3 + $0x3f0] sm:$0xff] }
 0x526   :  { %5302 = vmatmul.bf16.vlgmr.msra.gmra.mxu1 %v3284_v33  ;;  %5315 = vmatmul.bf16.vlgmr.msra.gmra.mxu2 %v3285_v42  ;;  %v9747_v10 = vpop.f32.mrf.mxu3  ;;  %v7375_v33 = vld [vmem:[%s10497_s3 + $0x320] sm:$0xff] }
 0x528   :  { %5334 = vmatpush.bf16.msrb.mxu0 %v7345_v34  ;;  %5373 = vmatpush.bf16.msrb.mxu3 %v7369_v51  ;;  %v2402_v54 = vpop.f32.mrf.mxu0  ;;  %v7383_v34 = vld [vmem:[%s10497_s3 + $0x360] sm:$0xff]  ;;  %v7374_v51 = vld [vmem:[%s10497_s3 + $0x318] sm:$0xff] }
 0x529   :  { %5347 = vmatpush.bf16.msrb.mxu1 %v7353_v35  ;;  %5360 = vmatpush.bf16.msrb.mxu2 %v7361_v44  ;;  %v9745_v8 = vpop.f32.mrf.mxu2  ;;  %v7399_v44 = vld [vmem:[%s10497_s3 + $0x3e0] sm:$0xff]  ;;  %v7396_v54 = vld [vmem:[%s10497_s3 + $0x3c8] sm:$0xff] }
 0x52b   :  { %v2415_v55 = vpop.f32.mrf.mxu1 }
 0x52c   :  { %5335 = vmatpush.bf16.msrb.mxu0 %v7344_v52  ;;  %5374 = vmatpush.bf16.msrb.mxu3 %v7368_v61  ;;  %v7382_v52 = vld [vmem:[%s10497_s3 + $0x358] sm:$0xff] }
 0x52d   :  { %5348 = vmatpush.bf16.msrb.mxu1 %v7352_v53  ;;  %5361 = vmatpush.bf16.msrb.mxu2 %v7360_v60  ;;  %v7390_v53 = vld [vmem:[%s10497_s3 + $0x398] sm:$0xff] }
 0x52e   :  { %v2443_v11 = vpop.f32.mrf.mxu3  ;;  %v7398_v60 = vld [vmem:[%s10497_s3 + $0x3d8] sm:$0xff] }
 0x52f   :  { %v7410_v11 = vld [vmem:[%s10497_s3 + $0x438] sm:$0xff] }
 0x530   :  { %5336 = vmatpush.bf16.msrb.mxu0 %v7343_v3  ;;  %5375 = vmatpush.bf16.msrb.mxu3 %v7367_v46 }
 0x531   :  { %5349 = vmatpush.bf16.msrb.mxu1 %v7351_v12  ;;  %5362 = vmatpush.bf16.msrb.mxu2 %v7359_v9  ;;  %v2428_v5 = vpop.f32.mrf.mxu2  ;;  %v7373_v12 = vld [vmem:[%s10497_s3 + $0x310] sm:$0xff] }
 0x532   :  { %v7381_v9 = vld [vmem:[%s10497_s3 + $0x350] sm:$0xff]  ;;  %v7395_v5 = vld [vmem:[%s10497_s3 + $0x3c0] sm:$0xff] }
 0x534   :  { %5337 = vmatpush.bf16.msrb.mxu0 %v7342_v47  ;;  %5376 = vmatpush.bf16.msrb.mxu3 %v7366_v7  ;;  %v7372_v7 = vld [vmem:[%s10497_s3 + $0x308] sm:$0xff] }
 0x535   :  { %5350 = vmatpush.bf16.msrb.mxu1 %v7350_v48  ;;  %5363 = vmatpush.bf16.msrb.mxu2 %v7358_v49  ;;  %v7389_v48 = vld [vmem:[%s10497_s3 + $0x390] sm:$0xff] }
 0x536   :  { %v7397_v49 = vld [vmem:[%s10497_s3 + $0x3d0] sm:$0xff] }
 0x538   :  { %5338 = vmatpush.bf16.msrb.mxu0 %v7341_v45  ;;  %5377 = vmatpush.bf16.msrb.mxu3 %v7365_v58  ;;  %v7380_v45 = vld [vmem:[%s10497_s3 + $0x348] sm:$0xff]  ;;  %v2578_v58 = vld [vmem:[#allocation2 + $0x30] sm:$0xff] }
 0x539   :  { %5351 = vmatpush.bf16.msrb.mxu1 %v7349_v50  ;;  %5364 = vmatpush.bf16.msrb.mxu2 %v7357_v57  ;;  %v7388_v50 = vld [vmem:[%s10497_s3 + $0x388] sm:$0xff] }
 0x53c   :  { %5339 = vmatpush.bf16.msrb.mxu0 %v7340_v56  ;;  %5378 = vmatpush.bf16.msrb.mxu3 %v7364_v1  ;;  %v7371_v56 = vld [vmem:[%s10497_s3 + $0x300] sm:$0xff] }
 0x53d   :  { %5352 = vmatpush.bf16.msrb.mxu1 %v7348_v59  ;;  %5365 = vmatpush.bf16.msrb.mxu2 %v7356_v0  ;;  %v7379_v59 = vld [vmem:[%s10497_s3 + $0x340] sm:$0xff]  ;;  %v2579_v0 = vld [vmem:[#allocation2 + $0x38] sm:$0xff] }
 0x53e   :  { %v7387_v1 = vld [vmem:[%s10497_s3 + $0x380] sm:$0xff] }
 0x540   :  { %5340 = vmatpush.bf16.msrb.mxu0 %v7339_v14  ;;  %5379 = vmatpush.bf16.msrb.mxu3 %v7363_v20  ;;  %v9827_v35 = vpop.f32.mrf.mxu0  ;;  %v3252_v14 = vunpack.c.l.b16 %v2578_v58  ;;  %v3254_v20 = vunpack.c.l.b16 %v2579_v0 }
 0x541   :  { %5353 = vmatpush.bf16.msrb.mxu1 %v7347_v15  ;;  %5366 = vmatpush.bf16.msrb.mxu2 %v7355_v19  ;;  %v3253_v15 = vunpack.c.h.b16 %v2578_v58  ;;  %v7434_v19 = vld [vmem:[%s10497_s3 + $0x4f8] sm:$0xff]  ;;  %v7428_v58 = vld [vmem:[%s10497_s3 + $0x4c8] sm:$0xff] }
 0x543   :  { %5341 = vmatmul.bf16.vlgmr.msrb.gmra.mxu0 %v3287_v32  ;;  %5380 = vmatmul.bf16.vlgmr.msrb.gmra.mxu3 %v3290_v40  ;;  %v9829_v42 = vpop.f32.mrf.mxu1  ;;  %v3292_v23 = vpack.c.b16 %v3253_v15, %v3253_v15  ;;  %v7433_v32 = vld [vmem:[%s10497_s3 + $0x4f0] sm:$0xff]  ;;  %v2471_v40 = vmax.f32 %v9723_v62, %v9747_v10  ;;  %v7423_v62 = vld [vmem:[%s10497_s3 + $0x4a0] sm:$0xff]  ;;  %v7442_v15 = vld [vmem:[%s10497_s3 + $0x538] sm:$0xff] }
 0x544   :  { %5385 = vmatpush.bf16.msra.mxu0 %v7378_v21  ;;  %5424 = vmatpush.bf16.msra.mxu3 %v7402_v29  ;;  %v3255_v21 = vunpack.c.h.b16 %v2579_v0  ;;  %v3293_v29 = vpack.c.b16 %v3254_v20, %v3254_v20  ;;  %v7431_v10 = vld [vmem:[%s10497_s3 + $0x4e0] sm:$0xff] }
 0x545   :  { %5398 = vmatpush.bf16.msra.mxu1 %v7386_v22  ;;  %5411 = vmatpush.bf16.msra.mxu2 %v7394_v28  ;;  %v3291_v22 = vpack.c.b16 %v3252_v14, %v3252_v14  ;;  %v7417_v28 = vld [vmem:[%s10497_s3 + $0x470] sm:$0xff]  ;;  %v2580_v0 = vld [vmem:[#allocation2 + $0x40] sm:$0xff] }
 0x546   :  { %5354 = vmatmul.bf16.vlgmr.msrb.gmra.mxu1 %v3288_v36  ;;  %5367 = vmatmul.bf16.vlgmr.msrb.gmra.mxu2 %v3289_v39  ;;  %v9851_v3 = vpop.f32.mrf.mxu3  ;;  %v3294_v30 = vpack.c.b16 %v3255_v21, %v3255_v21  ;;  %v7408_v36 = vld [vmem:[%s10497_s3 + $0x428] sm:$0xff]  ;;  %v7427_v14 = vld [vmem:[%s10497_s3 + $0x4c0] sm:$0xff]  ;;  %v3257_v20 = vunpack.c.h.b16 %v2580_v0  ;;  %v7458_v21 = vld [vmem:[%s10497_s3 + $0x5b8] sm:$0xff] }
 0x547   :  { %v7432_v39 = vld [vmem:[%s10497_s3 + $0x4e8] sm:$0xff] }
 0x548   :  { %5386 = vmatpush.bf16.msra.mxu0 %v7377_v37  ;;  %5425 = vmatpush.bf16.msra.mxu3 %v7401_v16  ;;  %v2456_v46 = vpop.f32.mrf.mxu0  ;;  %v7416_v37 = vld [vmem:[%s10497_s3 + $0x468] sm:$0xff] }
 0x549   :  { %5399 = vmatpush.bf16.msra.mxu1 %v7385_v38  ;;  %5412 = vmatpush.bf16.msra.mxu2 %v7393_v41  ;;  %v9849_v61 = vpop.f32.mrf.mxu2  ;;  %v7424_v38 = vld [vmem:[%s10497_s3 + $0x4a8] sm:$0xff]  ;;  %v7413_v46 = vld [vmem:[%s10497_s3 + $0x450] sm:$0xff] }
 0x54b   :  { %v2469_v47 = vpop.f32.mrf.mxu1 }
 0x54c   :  { %5387 = vmatpush.bf16.msra.mxu0 %v7376_v17  ;;  %5426 = vmatpush.bf16.msra.mxu3 %v7400_v26  ;;  %v7407_v17 = vld [vmem:[%s10497_s3 + $0x420] sm:$0xff]  ;;  %v2472_v26 = vmax.f32 %v9725_v6, %v9827_v35  ;;  %v7422_v6 = vld [vmem:[%s10497_s3 + $0x498] sm:$0xff] }
 0x54d   :  { %5400 = vmatpush.bf16.msra.mxu1 %v7384_v24  ;;  %5413 = vmatpush.bf16.msra.mxu2 %v7392_v25  ;;  %v7415_v24 = vld [vmem:[%s10497_s3 + $0x460] sm:$0xff]  ;;  %v2515_v25 = vmax.f32 %v2471_v40, %v9849_v61  ;;  %v7448_v40 = vld [vmem:[%s10497_s3 + $0x568] sm:$0xff] }
 0x54e   :  { %v2500_v57 = vpop.f32.mrf.mxu3 }
 0x54f   :  { %v7420_v57 = vld [vmem:[%s10497_s3 + $0x488] sm:$0xff] }
 0x550   :  { %5388 = vmatpush.bf16.msra.mxu0 %v7375_v33  ;;  %5427 = vmatpush.bf16.msra.mxu3 %v7399_v44  ;;  %v2473_v33 = vmax.f32 %v9745_v8, %v9829_v42  ;;  %v7414_v44 = vld [vmem:[%s10497_s3 + $0x458] sm:$0xff] }
 0x551   :  { %5401 = vmatpush.bf16.msra.mxu1 %v7383_v34  ;;  %5414 = vmatpush.bf16.msra.mxu2 %v7391_v43  ;;  %v2487_v55 = vpop.f32.mrf.mxu2  ;;  %v7406_v43 = vld [vmem:[%s10497_s3 + $0x418] sm:$0xff] }
 0x552   :  { %v7430_v8 = vld [vmem:[%s10497_s3 + $0x4d8] sm:$0xff] }
 0x554   :  { %5389 = vmatpush.bf16.msra.mxu0 %v7374_v51  ;;  %5428 = vmatpush.bf16.msra.mxu3 %v7398_v60  ;;  %v2516_v51 = vmax.f32 %v2472_v26, %v9851_v3  ;;  %v7405_v3 = vld [vmem:[%s10497_s3 + $0x410] sm:$0xff]  ;;  %v7447_v26 = vld [vmem:[%s10497_s3 + $0x560] sm:$0xff] }
 0x555   :  { %5402 = vmatpush.bf16.msra.mxu1 %v7382_v52  ;;  %5415 = vmatpush.bf16.msra.mxu2 %v7390_v53 }
 0x558   :  { %5390 = vmatpush.bf16.msra.mxu0 %v7373_v12  ;;  %5429 = vmatpush.bf16.msra.mxu3 %v7397_v49  ;;  %v7429_v49 = vld [vmem:[%s10497_s3 + $0x4d0] sm:$0xff] }
 0x559   :  { %5403 = vmatpush.bf16.msra.mxu1 %v7381_v9  ;;  %5416 = vmatpush.bf16.msra.mxu2 %v7389_v48  ;;  %v7421_v48 = vld [vmem:[%s10497_s3 + $0x490] sm:$0xff] }
 0x55c   :  { %5391 = vmatpush.bf16.msra.mxu0 %v7372_v7  ;;  %5430 = vmatpush.bf16.msra.mxu3 %v7396_v54  ;;  %v7404_v54 = vld [vmem:[%s10497_s3 + $0x408] sm:$0xff] }
 0x55d   :  { %5404 = vmatpush.bf16.msra.mxu1 %v7380_v45  ;;  %5417 = vmatpush.bf16.msra.mxu2 %v7388_v50 }
 0x560   :  { %5392 = vmatpush.bf16.msra.mxu0 %v7371_v56  ;;  %5431 = vmatpush.bf16.msra.mxu3 %v7395_v5  ;;  %v2511_v41 = vpop.f32.mrf.mxu0  ;;  %v7411_v5 = vld [vmem:[%s10497_s3 + $0x440] sm:$0xff] }
 0x561   :  { %5405 = vmatpush.bf16.msra.mxu1 %v7379_v59  ;;  %5418 = vmatpush.bf16.msra.mxu2 %v7387_v1  ;;  %v2517_v52 = vmax.f32 %v2473_v33, %v2511_v41  ;;  %v7403_v1 = vld [vmem:[%s10497_s3 + $0x400] sm:$0xff] }
 0x562   :  { %v7595_v41 = vld [vmem:[%s10498_s4] ss:$0 sm:$0xff] }
 0x563   :  { %5393 = vmatmul.bf16.vlgmr.msra.gmra.mxu0 %v3291_v22  ;;  %5432 = vmatmul.bf16.vlgmr.msra.gmra.mxu3 %v3294_v30  ;;  %v2529_v16 = vpop.f32.mrf.mxu1  ;;  %v7466_v22 = vld [vmem:[%s10497_s3 + $0x5f8] sm:$0xff]  ;;  %v7441_v30 = vld [vmem:[%s10497_s3 + $0x530] sm:$0xff]  ;;  %v7455_v33 = vld [vmem:[%s10497_s3 + $0x5a0] sm:$0xff] }
 0x564   :  { %5437 = vmatpush.bf16.msrb.mxu0 %v7410_v11  ;;  %5476 = vmatpush.bf16.msrb.mxu3 %v7434_v19  ;;  %v2559_v34 = vmax.f32 %v2515_v25, %v2529_v16  ;;  %v2581_v11 = vld [vmem:[#allocation2 + $0x48] sm:$0xff]  ;;  %v3256_v19 = vunpack.c.l.b16 %v2580_v0 }
 0x565   :  { %5450 = vmatpush.bf16.msrb.mxu1 %v7418_v13  ;;  %5463 = vmatpush.bf16.msrb.mxu2 %v7426_v18  ;;  %v7419_v13 = vld [vmem:[%s10497_s3 + $0x480] sm:$0xff]  ;;  %v7450_v18 = vld [vmem:[%s10497_s3 + $0x578] sm:$0xff]  ;;  %v7456_v16 = vld [vmem:[%s10497_s3 + $0x5a8] sm:$0xff] }
 0x566   :  { %5406 = vmatmul.bf16.vlgmr.msra.gmra.mxu1 %v3292_v23  ;;  %5419 = vmatmul.bf16.vlgmr.msra.gmra.mxu2 %v3293_v29  ;;  %v2555_v42 = vpop.f32.mrf.mxu3  ;;  %v2562_v53 = vadd.f32 %v2559_v34, %v8113_v63  ;;  %v3258_v23 = vunpack.c.l.b16 %v2581_v11  ;;  %v3296_v29 = vpack.c.b16 %v3257_v20, %v3257_v20  ;;  %v7463_v34 = vld [vmem:[%s10497_s3 + $0x5e0] sm:$0xff] }
 0x567   :  { %v2561_v61 = vmax.f32 %v2517_v52, %v2555_v42  ;;  %v7454_v52 = vld [vmem:[%s10497_s3 + $0x598] sm:$0xff] }
 0x568   :  { %5438 = vmatpush.bf16.msrb.mxu0 %v7409_v27  ;;  %5477 = vmatpush.bf16.msrb.mxu3 %v7433_v32  ;;  %v2513_v12 = vpop.f32.mrf.mxu0  ;;  %v2565_v7 = vmax.f32 %v2562_v53, 0.0  ;;  %v3259_v27 = vunpack.c.h.b16 %v2581_v11  ;;  %v3297_v32 = vpack.c.b16 %v3258_v23, %v3258_v23  ;;  %v7497_v23 = vld [vmem:[%s10497_s3 + $0x6f0] sm:$0xff] }
 0x569   :  { %5451 = vmatpush.bf16.msrb.mxu1 %v7417_v28  ;;  %5464 = vmatpush.bf16.msrb.mxu2 %v7425_v31  ;;  %v2542_v35 = vpop.f32.mrf.mxu2  ;;  %v2564_v63 = vadd.f32 %v2561_v61, %v8121_v4  ;;  %v3295_v28 = vpack.c.b16 %v3256_v19, %v3256_v19  ;;  %v7449_v31 = vld [vmem:[%s10497_s3 + $0x570] sm:$0xff] }
 0x56a   :  { %v2560_v60 = vmax.f32 %v2516_v51, %v2542_v35  ;;  %v7446_v51 = vld [vmem:[%s10497_s3 + $0x558] sm:$0xff]  ;;  %v7437_v61 = vld [vmem:[%s10497_s3 + $0x510] sm:$0xff] }
 0x56b   :  { %v2531_v9 = vpop.f32.mrf.mxu1  ;;  %v2567_v50 = vmax.f32 %v2564_v63, 0.0  ;;  %v7445_v12 = vld [vmem:[%s10497_s3 + $0x550] sm:$0xff]  ;;  %v7444_v63 = vld [vmem:[%s10497_s3 + $0x548] sm:$0xff] }
 0x56c   :  { %5439 = vmatpush.bf16.msrb.mxu0 %v7408_v36  ;;  %5478 = vmatpush.bf16.msrb.mxu3 %v7432_v39  ;;  %v2563_v47 = vadd.f32 %v2560_v60, %v8119_v2  ;;  %v7412_v2 = vld [vmem:[%s10497_s3 + $0x448] sm:$0xff]  ;;  %v3298_v36 = vpack.c.b16 %v3259_v27, %v3259_v27  ;;  %v7481_v19 = vld [vmem:[%s10497_s3 + $0x670] sm:$0xff] }
 0x56d   :  { %5452 = vmatpush.bf16.msrb.mxu1 %v7416_v37  ;;  %5465 = vmatpush.bf16.msrb.mxu2 %v7424_v38  ;;  %v2569_v55 = vpack.c.bf16 %v2567_v50, %v2567_v50  ;;  %v7457_v37 = vld [vmem:[%s10497_s3 + $0x5b0] sm:$0xff]  ;;  %v7440_v39 = vld [vmem:[%s10497_s3 + $0x528] sm:$0xff] }
 0x56e   :  { %v2566_v45 = vmax.f32 %v2563_v47, 0.0  ;;  %v2557_v59 = vpop.f32.mrf.mxu3  ;;  %v7465_v38 = vld [vmem:[%s10497_s3 + $0x5f0] sm:$0xff]  ;;  %v7436_v47 = vld [vmem:[%s10497_s3 + $0x508] sm:$0xff] }
 0x56f   :  { %2571 = vst [vmem:[#allocation2 + $0x98] sm:$0xf] %v2569_v55  ;;  %v2582_v50 = vld [vmem:[#allocation2 + $0x50] sm:$0xff]  ;;  %v7451_v55 = vld [vmem:[%s10497_s3 + $0x580] sm:$0xff]  ;;  %v7472_v27 = vld [vmem:[%s10497_s3 + $0x628] sm:$0xff] }
 0x570   :  { %5440 = vmatpush.bf16.msrb.mxu0 %v7407_v17  ;;  %5479 = vmatpush.bf16.msrb.mxu3 %v7431_v10  ;;  %v2568_v4 = vpack.c.bf16 %v2566_v45, %v2565_v7  ;;  %v7464_v17 = vld [vmem:[%s10497_s3 + $0x5e8] sm:$0xff]  ;;  %v7439_v10 = vld [vmem:[%s10497_s3 + $0x520] sm:$0xff]  ;;  %v3260_v59 = vunpack.c.l.b16 %v2582_v50  ;;  %v3261_v0 = vunpack.c.h.b16 %v2582_v50  ;;  %v7522_v50 = vld [vmem:[%s10497_s3 + $0x7b8] sm:$0xff] }
 0x571   :  { %5453 = vmatpush.bf16.msrb.mxu1 %v7415_v24  ;;  %5466 = vmatpush.bf16.msrb.mxu2 %v7423_v62  ;;  %v2544_v56 = vpop.f32.mrf.mxu2 }
 0x572   :  { %2570 = vst [vmem:[#allocation2 + $0x90] sm:$0xff] %v2568_v4  ;;  %v2583_v4 = vld [vmem:[#allocation2 + $0x58] sm:$0xff] }
 0x573   :  { %v7482_v56 = vld [vmem:[%s10497_s3 + $0x678] sm:$0xff]  ;;  %v3262_v11 = vunpack.c.l.b16 %v2583_v4 }
 0x574   :  { %5441 = vmatpush.bf16.msrb.mxu0 %v7406_v43  ;;  %5480 = vmatpush.bf16.msrb.mxu3 %v7430_v8 }
 0x575   :  { %5454 = vmatpush.bf16.msrb.mxu1 %v7414_v44  ;;  %5467 = vmatpush.bf16.msrb.mxu2 %v7422_v6  ;;  %v7438_v44 = vld [vmem:[%s10497_s3 + $0x518] sm:$0xff]  ;;  %v3301_v20 = vpack.c.b16 %v3262_v11, %v3262_v11  ;;  %v7504_v11 = vld [vmem:[%s10497_s3 + $0x728] sm:$0xff] }
 0x576   :  { %v7462_v6 = vld [vmem:[%s10497_s3 + $0x5d8] sm:$0xff] }
 0x578   :  { %5442 = vmatpush.bf16.msrb.mxu0 %v7405_v3  ;;  %5481 = vmatpush.bf16.msrb.mxu3 %v7429_v49  ;;  %v7453_v3 = vld [vmem:[%s10497_s3 + $0x590] sm:$0xff]  ;;  %v7460_v49 = vld [vmem:[%s10497_s3 + $0x5c8] sm:$0xff] }
 0x579   :  { %5455 = vmatpush.bf16.msrb.mxu1 %v7413_v46  ;;  %5468 = vmatpush.bf16.msrb.mxu2 %v7421_v48  ;;  %v7461_v46 = vld [vmem:[%s10497_s3 + $0x5d0] sm:$0xff]  ;;  %v7452_v48 = vld [vmem:[%s10497_s3 + $0x588] sm:$0xff] }
 0x57c   :  { %5443 = vmatpush.bf16.msrb.mxu0 %v7404_v54  ;;  %5482 = vmatpush.bf16.msrb.mxu3 %v7428_v58  ;;  %v7435_v54 = vld [vmem:[%s10497_s3 + $0x500] sm:$0xff]  ;;  %v7474_v58 = vld [vmem:[%s10497_s3 + $0x638] sm:$0xff] }
 0x57d   :  { %5456 = vmatpush.bf16.msrb.mxu1 %v7412_v2  ;;  %5469 = vmatpush.bf16.msrb.mxu2 %v7420_v57  ;;  %v7443_v2 = vld [vmem:[%s10497_s3 + $0x540] sm:$0xff] }
 0x57e   :  { %v7459_v57 = vld [vmem:[%s10497_s3 + $0x5c0] sm:$0xff] }
 0x580   :  { %5444 = vmatpush.bf16.msrb.mxu0 %v7403_v1  ;;  %5483 = vmatpush.bf16.msrb.mxu3 %v7427_v14  ;;  %v5238_v24 = vpop.f32.mrf.mxu0  ;;  %v7490_v1 = vld [vmem:[%s10497_s3 + $0x6b8] sm:$0xff]  ;;  %v3299_v14 = vpack.c.b16 %v3260_v59, %v3260_v59 }
 0x581   :  { %5457 = vmatpush.bf16.msrb.mxu1 %v7411_v5  ;;  %5470 = vmatpush.bf16.msrb.mxu2 %v7419_v13  ;;  %v5239_v62 = vadd.f32 %v7595_v41, %v5238_v24  ;;  %v7498_v5 = vld [vmem:[%s10497_s3 + $0x6f8] sm:$0xff]  ;;  %v3263_v13 = vunpack.c.h.b16 %v2583_v4 }
 0x582   :  { %v7486_v24 = vld [vmem:[%s10497_s3 + $0x698] sm:$0xff] }
 0x583   :  { %5445 = vmatmul.bf16.vlgmr.msrb.gmra.mxu0 %v3295_v28  ;;  %5484 = vmatmul.bf16.vlgmr.msrb.gmra.mxu3 %v3298_v36  ;;  %v5251_v25 = vpop.f32.mrf.mxu1  ;;  %v7480_v28 = vld [vmem:[%s10497_s3 + $0x668] sm:$0xff] }
 0x584   :  { %5489 = vmatpush.bf16.msra.mxu0 %v7442_v15  ;;  %5528 = vmatpush.bf16.msra.mxu3 %v7466_v22  ;;  %v5252_v43 = vadd.f32 %v5251_v25, %v5239_v62  ;;  %v3300_v15 = vpack.c.b16 %v3261_v0, %v3261_v0  ;;  %v7489_v22 = vld [vmem:[%s10497_s3 + $0x6b0] sm:$0xff]  ;;  %v7494_v25 = vld [vmem:[%s10497_s3 + $0x6d8] sm:$0xff] }
 0x585   :  { %5502 = vmatpush.bf16.msra.mxu1 %v7450_v18  ;;  %5515 = vmatpush.bf16.msra.mxu2 %v7458_v21  ;;  %v7473_v18 = vld [vmem:[%s10497_s3 + $0x630] sm:$0xff]  ;;  %v3302_v21 = vpack.c.b16 %v3263_v13, %v3263_v13  ;;  %v7512_v13 = vld [vmem:[%s10497_s3 + $0x768] sm:$0xff] }
 0x586   :  { %5458 = vmatmul.bf16.vlgmr.msrb.gmra.mxu1 %v3296_v29  ;;  %5471 = vmatmul.bf16.vlgmr.msrb.gmra.mxu2 %v3297_v32  ;;  %v5277_v35 = vpop.f32.mrf.mxu3  ;;  %v7488_v29 = vld [vmem:[%s10497_s3 + $0x6a8] sm:$0xff] }
 0x588   :  { %5490 = vmatpush.bf16.msra.mxu0 %v7441_v30  ;;  %5529 = vmatpush.bf16.msra.mxu3 %v7465_v38  ;;  %v5240_v53 = vpop.f32.mrf.mxu0  ;;  %v7496_v30 = vld [vmem:[%s10497_s3 + $0x6e8] sm:$0xff]  ;;  %v7479_v38 = vld [vmem:[%s10497_s3 + $0x660] sm:$0xff] }
 0x589   :  { %5503 = vmatpush.bf16.msra.mxu1 %v7449_v31  ;;  %5516 = vmatpush.bf16.msra.mxu2 %v7457_v37  ;;  %v5264_v8 = vpop.f32.mrf.mxu2  ;;  %v7471_v37 = vld [vmem:[%s10497_s3 + $0x620] sm:$0xff]  ;;  %v7492_v53 = vld [vmem:[%s10497_s3 + $0x6c8] sm:$0xff] }
 0x58a   :  { %v5265_v42 = vadd.f32 %v5264_v8, %v5252_v43  ;;  %v7469_v43 = vld [vmem:[%s10497_s3 + $0x610] sm:$0xff]  ;;  %v7468_v8 = vld [vmem:[%s10497_s3 + $0x608] sm:$0xff] }
 0x58b   :  { %v5253_v60 = vpop.f32.mrf.mxu1 }
 0x58c   :  { %5491 = vmatpush.bf16.msra.mxu0 %v7440_v39  ;;  %5530 = vmatpush.bf16.msra.mxu3 %v7464_v17  ;;  %v10065_v9 = vadd.f32 %v5277_v35, %v5265_v42  ;;  %v7487_v39 = vld [vmem:[%s10497_s3 + $0x6a0] sm:$0xff]  ;;  %v7478_v17 = vld [vmem:[%s10497_s3 + $0x658] sm:$0xff]  ;;  %v7476_v35 = vld [vmem:[%s10497_s3 + $0x648] sm:$0xff] }
 0x58d   :  { %5504 = vmatpush.bf16.msra.mxu1 %v7448_v40  ;;  %5517 = vmatpush.bf16.msra.mxu2 %v7456_v16  ;;  %v7495_v40 = vld [vmem:[%s10497_s3 + $0x6e0] sm:$0xff]  ;;  %v7470_v16 = vld [vmem:[%s10497_s3 + $0x618] sm:$0xff]  ;;  %v7484_v42 = vld [vmem:[%s10497_s3 + $0x688] sm:$0xff] }
 0x58e   :  { %v5279_v45 = vpop.f32.mrf.mxu3 }
 0x590   :  { %5492 = vmatpush.bf16.msra.mxu0 %v7439_v10  ;;  %5531 = vmatpush.bf16.msra.mxu3 %v7463_v34 }
 0x591   :  { %5505 = vmatpush.bf16.msra.mxu1 %v7447_v26  ;;  %5518 = vmatpush.bf16.msra.mxu2 %v7455_v33  ;;  %v5266_v7 = vpop.f32.mrf.mxu2 }
 0x594   :  { %5493 = vmatpush.bf16.msra.mxu0 %v7438_v44  ;;  %5532 = vmatpush.bf16.msra.mxu3 %v7462_v6  ;;  %v7477_v44 = vld [vmem:[%s10497_s3 + $0x650] sm:$0xff] }
 0x595   :  { %5506 = vmatpush.bf16.msra.mxu1 %v7446_v51  ;;  %5519 = vmatpush.bf16.msra.mxu2 %v7454_v52  ;;  %v7485_v52 = vld [vmem:[%s10497_s3 + $0x690] sm:$0xff] }
 0x596   :  { %v7493_v6 = vld [vmem:[%s10497_s3 + $0x6d0] sm:$0xff] }
 0x598   :  { %5494 = vmatpush.bf16.msra.mxu0 %v7437_v61  ;;  %5533 = vmatpush.bf16.msra.mxu3 %v7461_v46  ;;  %v2585_v46 = vld [vmem:[#allocation2 + $0x68] sm:$0xff] }
 0x599   :  { %5507 = vmatpush.bf16.msra.mxu1 %v7445_v12  ;;  %5520 = vmatpush.bf16.msra.mxu2 %v7453_v3  ;;  %v2584_v12 = vld [vmem:[#allocation2 + $0x60] sm:$0xff]  ;;  %v3267_v4 = vunpack.c.h.b16 %v2585_v46 }
 0x59a   :  { %v7475_v3 = vld [vmem:[%s10497_s3 + $0x640] sm:$0xff]  ;;  %v3264_v7 = vunpack.c.l.b16 %v2584_v12  ;;  %v3265_v45 = vunpack.c.h.b16 %v2584_v12  ;;  %v7554_v12 = vld [vmem:[%s10497_s3 + $0x8b8] sm:$0xff] }
 0x59b   :  { %v3306_v0 = vpack.c.b16 %v3267_v4, %v3267_v4  ;;  %v7544_v4 = vld [vmem:[%s10497_s3 + $0x868] sm:$0xff] }
 0x59c   :  { %5495 = vmatpush.bf16.msra.mxu0 %v7436_v47  ;;  %5534 = vmatpush.bf16.msra.mxu3 %v7460_v49  ;;  %v7483_v47 = vld [vmem:[%s10497_s3 + $0x680] sm:$0xff]  ;;  %v7514_v49 = vld [vmem:[%s10497_s3 + $0x778] sm:$0xff] }
 0x59d   :  { %5508 = vmatpush.bf16.msra.mxu1 %v7444_v63  ;;  %5521 = vmatpush.bf16.msra.mxu2 %v7452_v48  ;;  %v7491_v63 = vld [vmem:[%s10497_s3 + $0x6c0] sm:$0xff]  ;;  %v7506_v48 = vld [vmem:[%s10497_s3 + $0x738] sm:$0xff] }
 0x5a0   :  { %5496 = vmatpush.bf16.msra.mxu0 %v7435_v54  ;;  %5535 = vmatpush.bf16.msra.mxu3 %v7459_v57  ;;  %v5290_v31 = vpop.f32.mrf.mxu0  ;;  %v7530_v54 = vld [vmem:[%s10497_s3 + $0x7f8] sm:$0xff]  ;;  %v3304_v57 = vpack.c.b16 %v3265_v45, %v3265_v45 }
 0x5a1   :  { %5509 = vmatpush.bf16.msra.mxu1 %v7443_v2  ;;  %5522 = vmatpush.bf16.msra.mxu2 %v7451_v55  ;;  %v5291_v36 = vadd.f32 %v5290_v31, %v10065_v9  ;;  %v7467_v9 = vld [vmem:[%s10497_s3 + $0x600] sm:$0xff]  ;;  %v3266_v2 = vunpack.c.l.b16 %v2585_v46  ;;  %v3303_v55 = vpack.c.b16 %v3264_v7, %v3264_v7  ;;  %v7518_v31 = vld [vmem:[%s10497_s3 + $0x798] sm:$0xff] }
 0x5a3   :  { %5497 = vmatmul.bf16.vlgmr.msra.gmra.mxu0 %v3299_v14  ;;  %5536 = vmatmul.bf16.vlgmr.msra.gmra.mxu3 %v3302_v21  ;;  %v5303_v32 = vpop.f32.mrf.mxu1  ;;  %v3305_v59 = vpack.c.b16 %v3266_v2, %v3266_v2  ;;  %v7520_v14 = vld [vmem:[%s10497_s3 + $0x7a8] sm:$0xff]  ;;  %v7503_v21 = vld [vmem:[%s10497_s3 + $0x720] sm:$0xff] }
 0x5a4   :  { %5541 = vmatpush.bf16.msrb.mxu0 %v7474_v58  ;;  %5580 = vmatpush.bf16.msrb.mxu3 %v7498_v5  ;;  %v5304_v41 = vadd.f32 %v5303_v32, %v5291_v36  ;;  %v7505_v58 = vld [vmem:[%s10497_s3 + $0x730] sm:$0xff]  ;;  %v7526_v32 = vld [vmem:[%s10497_s3 + $0x7d8] sm:$0xff]  ;;  %v7536_v2 = vld [vmem:[%s10497_s3 + $0x828] sm:$0xff] }
 0x5a5   :  { %5554 = vmatpush.bf16.msrb.mxu1 %v7482_v56  ;;  %5567 = vmatpush.bf16.msrb.mxu2 %v7490_v1  ;;  %v7513_v56 = vld [vmem:[%s10497_s3 + $0x770] sm:$0xff] }
 0x5a6   :  { %5510 = vmatmul.bf16.vlgmr.msra.gmra.mxu1 %v3300_v15  ;;  %5523 = vmatmul.bf16.vlgmr.msra.gmra.mxu2 %v3301_v20  ;;  %v5329_v10 = vpop.f32.mrf.mxu3  ;;  %v7521_v1 = vld [vmem:[%s10497_s3 + $0x7b0] sm:$0xff]  ;;  %v7528_v15 = vld [vmem:[%s10497_s3 + $0x7e8] sm:$0xff] }
 0x5a7   :  { %v7529_v5 = vld [vmem:[%s10497_s3 + $0x7f0] sm:$0xff] }
 0x5a8   :  { %5542 = vmatpush.bf16.msrb.mxu0 %v7473_v18  ;;  %5581 = vmatpush.bf16.msrb.mxu3 %v7497_v23  ;;  %v5292_v33 = vpop.f32.mrf.mxu0  ;;  %v7519_v23 = vld [vmem:[%s10497_s3 + $0x7a0] sm:$0xff] }
 0x5a9   :  { %5555 = vmatpush.bf16.msrb.mxu1 %v7481_v19  ;;  %5568 = vmatpush.bf16.msrb.mxu2 %v7489_v22  ;;  %v5316_v62 = vpop.f32.mrf.mxu2  ;;  %v7511_v22 = vld [vmem:[%s10497_s3 + $0x760] sm:$0xff]  ;;  %v7524_v33 = vld [vmem:[%s10497_s3 + $0x7c8] sm:$0xff] }
 0x5aa   :  { %v5317_v26 = vadd.f32 %v5316_v62, %v5304_v41  ;;  %v7501_v41 = vld [vmem:[%s10497_s3 + $0x710] sm:$0xff]  ;;  %v7500_v62 = vld [vmem:[%s10497_s3 + $0x708] sm:$0xff] }
 0x5ab   :  { %v5305_v34 = vpop.f32.mrf.mxu1 }
 0x5ac   :  { %5543 = vmatpush.bf16.msrb.mxu0 %v7472_v27  ;;  %5582 = vmatpush.bf16.msrb.mxu3 %v7496_v30  ;;  %v10164_v51 = vadd.f32 %v5329_v10, %v5317_v26  ;;  %v7527_v27 = vld [vmem:[%s10497_s3 + $0x7e0] sm:$0xff]  ;;  %v7510_v30 = vld [vmem:[%s10497_s3 + $0x758] sm:$0xff]  ;;  %v7508_v10 = vld [vmem:[%s10497_s3 + $0x748] sm:$0xff] }
 0x5ad   :  { %5556 = vmatpush.bf16.msrb.mxu1 %v7480_v28  ;;  %5569 = vmatpush.bf16.msrb.mxu2 %v7488_v29  ;;  %v7502_v29 = vld [vmem:[%s10497_s3 + $0x718] sm:$0xff]  ;;  %v7516_v26 = vld [vmem:[%s10497_s3 + $0x788] sm:$0xff] }
 0x5ae   :  { %v5331_v61 = vpop.f32.mrf.mxu3 }
 0x5b0   :  { %5544 = vmatpush.bf16.msrb.mxu0 %v7471_v37  ;;  %5583 = vmatpush.bf16.msrb.mxu3 %v7495_v40 }
 0x5b1   :  { %5557 = vmatpush.bf16.msrb.mxu1 %v7479_v38  ;;  %5570 = vmatpush.bf16.msrb.mxu2 %v7487_v39  ;;  %v5318_v60 = vpop.f32.mrf.mxu2 }
 0x5b4   :  { %5545 = vmatpush.bf16.msrb.mxu0 %v7470_v16  ;;  %5584 = vmatpush.bf16.msrb.mxu3 %v7494_v25  ;;  %v7509_v16 = vld [vmem:[%s10497_s3 + $0x750] sm:$0xff] }
 0x5b5   :  { %5558 = vmatpush.bf16.msrb.mxu1 %v7478_v17  ;;  %5571 = vmatpush.bf16.msrb.mxu2 %v7486_v24  ;;  %v7517_v24 = vld [vmem:[%s10497_s3 + $0x790] sm:$0xff] }
 0x5b6   :  { %v7525_v25 = vld [vmem:[%s10497_s3 + $0x7d0] sm:$0xff] }
 0x5b8   :  { %5546 = vmatpush.bf16.msrb.mxu0 %v7469_v43  ;;  %5585 = vmatpush.bf16.msrb.mxu3 %v7493_v6  ;;  %v2587_v6 = vld [vmem:[#allocation2 + $0x78] sm:$0xff] }
 0x5b9   :  { %5559 = vmatpush.bf16.msrb.mxu1 %v7477_v44  ;;  %5572 = vmatpush.bf16.msrb.mxu2 %v7485_v52  ;;  %v2586_v44 = vld [vmem:[#allocation2 + $0x70] sm:$0xff]  ;;  %v7507_v52 = vld [vmem:[%s10497_s3 + $0x740] sm:$0xff]  ;;  %v3271_v46 = vunpack.c.h.b16 %v2587_v6 }
 0x5ba   :  { %v3268_v60 = vunpack.c.l.b16 %v2586_v44  ;;  %v3269_v61 = vunpack.c.h.b16 %v2586_v44 }
 0x5bb   :  { %v3310_v45 = vpack.c.b16 %v3271_v46, %v3271_v46 }
 0x5bc   :  { %5547 = vmatpush.bf16.msrb.mxu0 %v7468_v8  ;;  %5586 = vmatpush.bf16.msrb.mxu3 %v7492_v53  ;;  %v7515_v8 = vld [vmem:[%s10497_s3 + $0x780] sm:$0xff]  ;;  %v7546_v53 = vld [vmem:[%s10497_s3 + $0x878] sm:$0xff] }
 0x5bd   :  { %5560 = vmatpush.bf16.msrb.mxu1 %v7476_v35  ;;  %5573 = vmatpush.bf16.msrb.mxu2 %v7484_v42  ;;  %v7523_v35 = vld [vmem:[%s10497_s3 + $0x7c0] sm:$0xff]  ;;  %v7538_v42 = vld [vmem:[%s10497_s3 + $0x838] sm:$0xff] }
 0x5c0   :  { %5548 = vmatpush.bf16.msrb.mxu0 %v7467_v9  ;;  %5587 = vmatpush.bf16.msrb.mxu3 %v7491_v63  ;;  %v5342_v18 = vpop.f32.mrf.mxu0  ;;  %v7562_v9 = vld [vmem:[%s10497_s3 + $0x8f8] sm:$0xff]  ;;  %v3308_v63 = vpack.c.b16 %v3269_v61, %v3269_v61  ;;  %v7585_v61 = vld [vmem:[%s10497_s3 + $0x9b0] sm:$0xff] }
 0x5c1   :  { %5561 = vmatpush.bf16.msrb.mxu1 %v7475_v3  ;;  %5574 = vmatpush.bf16.msrb.mxu2 %v7483_v47  ;;  %v5343_v20 = vadd.f32 %v5342_v18, %v10164_v51  ;;  %v7499_v51 = vld [vmem:[%s10497_s3 + $0x700] sm:$0xff]  ;;  %v3270_v3 = vunpack.c.l.b16 %v2587_v6  ;;  %v3307_v47 = vpack.c.b16 %v3268_v60, %v3268_v60  ;;  %v7550_v18 = vld [vmem:[%s10497_s3 + $0x898] sm:$0xff] }
 0x5c3   :  { %5549 = vmatmul.bf16.vlgmr.msrb.gmra.mxu0 %v3303_v55  ;;  %5588 = vmatmul.bf16.vlgmr.msrb.gmra.mxu3 %v3306_v0  ;;  %v5355_v19 = vpop.f32.mrf.mxu1  ;;  %v3309_v7 = vpack.c.b16 %v3270_v3, %v3270_v3  ;;  %v7552_v55 = vld [vmem:[%s10497_s3 + $0x8a8] sm:$0xff]  ;;  %v7535_v0 = vld [vmem:[%s10497_s3 + $0x820] sm:$0xff] }
 0x5c4   :  { %5593 = vmatpush.bf16.msra.mxu0 %v7506_v48  ;;  %5632 = vmatpush.bf16.msra.mxu3 %v7530_v54  ;;  %v5356_v28 = vadd.f32 %v5355_v19, %v5343_v20  ;;  %v7537_v48 = vld [vmem:[%s10497_s3 + $0x830] sm:$0xff]  ;;  %v7558_v19 = vld [vmem:[%s10497_s3 + $0x8d8] sm:$0xff]  ;;  %v7584_v3 = vld [vmem:[%s10497_s3 + $0x9a8] sm:$0xff] }
 0x5c5   :  { %5606 = vmatpush.bf16.msra.mxu1 %v7514_v49  ;;  %5619 = vmatpush.bf16.msra.mxu2 %v7522_v50  ;;  %v7545_v49 = vld [vmem:[%s10497_s3 + $0x870] sm:$0xff] }
 0x5c6   :  { %5562 = vmatmul.bf16.vlgmr.msrb.gmra.mxu1 %v3304_v57  ;;  %5575 = vmatmul.bf16.vlgmr.msrb.gmra.mxu2 %v3305_v59  ;;  %v5381_v37 = vpop.f32.mrf.mxu3  ;;  %v7553_v50 = vld [vmem:[%s10497_s3 + $0x8b0] sm:$0xff]  ;;  %v7560_v57 = vld [vmem:[%s10497_s3 + $0x8e8] sm:$0xff] }
 0x5c7   :  { %v7561_v54 = vld [vmem:[%s10497_s3 + $0x8f0] sm:$0xff] }
 0x5c8   :  { %5594 = vmatpush.bf16.msra.mxu0 %v7505_v58  ;;  %5633 = vmatpush.bf16.msra.mxu3 %v7529_v5  ;;  %v5344_v39 = vpop.f32.mrf.mxu0  ;;  %v7551_v5 = vld [vmem:[%s10497_s3 + $0x8a0] sm:$0xff] }
 0x5c9   :  { %5607 = vmatpush.bf16.msra.mxu1 %v7513_v56  ;;  %5620 = vmatpush.bf16.msra.mxu2 %v7521_v1  ;;  %v5368_v36 = vpop.f32.mrf.mxu2  ;;  %v7543_v1 = vld [vmem:[%s10497_s3 + $0x860] sm:$0xff]  ;;  %v7556_v39 = vld [vmem:[%s10497_s3 + $0x8c8] sm:$0xff] }
 0x5ca   :  { %v5369_v38 = vadd.f32 %v5368_v36, %v5356_v28  ;;  %v7533_v28 = vld [vmem:[%s10497_s3 + $0x810] sm:$0xff]  ;;  %v7532_v36 = vld [vmem:[%s10497_s3 + $0x808] sm:$0xff] }
 0x5cb   :  { %v5357_v40 = vpop.f32.mrf.mxu1 }
 0x5cc   :  { %5595 = vmatpush.bf16.msra.mxu0 %v7504_v11  ;;  %5634 = vmatpush.bf16.msra.mxu3 %v7528_v15  ;;  %v10263_v17 = vadd.f32 %v5381_v37, %v5369_v38  ;;  %v7559_v11 = vld [vmem:[%s10497_s3 + $0x8e0] sm:$0xff]  ;;  %v7542_v15 = vld [vmem:[%s10497_s3 + $0x858] sm:$0xff]  ;;  %v7540_v37 = vld [vmem:[%s10497_s3 + $0x848] sm:$0xff] }
 0x5cd   :  { %5608 = vmatpush.bf16.msra.mxu1 %v7512_v13  ;;  %5621 = vmatpush.bf16.msra.mxu2 %v7520_v14  ;;  %v7534_v14 = vld [vmem:[%s10497_s3 + $0x818] sm:$0xff]  ;;  %v7548_v38 = vld [vmem:[%s10497_s3 + $0x888] sm:$0xff] }
 0x5ce   :  { %v5383_v43 = vpop.f32.mrf.mxu3 }
 0x5d0   :  { %5596 = vmatpush.bf16.msra.mxu0 %v7503_v21  ;;  %5635 = vmatpush.bf16.msra.mxu3 %v7527_v27 }
 0x5d1   :  { %5609 = vmatpush.bf16.msra.mxu1 %v7511_v22  ;;  %5622 = vmatpush.bf16.msra.mxu2 %v7519_v23  ;;  %v5370_v34 = vpop.f32.mrf.mxu2 }
 0x5d2   :  { %v7578_v34 = vld [vmem:[%s10497_s3 + $0x978] sm:$0xff] }
 0x5d4   :  { %5597 = vmatpush.bf16.msra.mxu0 %v7502_v29  ;;  %5636 = vmatpush.bf16.msra.mxu3 %v7526_v32  ;;  %v7541_v29 = vld [vmem:[%s10497_s3 + $0x850] sm:$0xff] }
 0x5d5   :  { %5610 = vmatpush.bf16.msra.mxu1 %v7510_v30  ;;  %5623 = vmatpush.bf16.msra.mxu2 %v7518_v31  ;;  %v7549_v31 = vld [vmem:[%s10497_s3 + $0x890] sm:$0xff] }
 0x5d6   :  { %v7557_v32 = vld [vmem:[%s10497_s3 + $0x8d0] sm:$0xff] }
 0x5d8   :  { %5598 = vmatpush.bf16.msra.mxu0 %v7501_v41  ;;  %5637 = vmatpush.bf16.msra.mxu3 %v7525_v25  ;;  %v7539_v25 = vld [vmem:[%s10497_s3 + $0x840] sm:$0xff] }
 0x5d9   :  { %5611 = vmatpush.bf16.msra.mxu1 %v7509_v16  ;;  %5624 = vmatpush.bf16.msra.mxu2 %v7517_v24  ;;  %v2588_v16 = vld [vmem:[#allocation2 + $0x80] sm:$0xff] }
 0x5da   :  { %v7531_v24 = vld [vmem:[%s10497_s3 + $0x800] sm:$0xff]  ;;  %v3273_v43 = vunpack.c.h.b16 %v2588_v16 }
 0x5dc   :  { %5599 = vmatpush.bf16.msra.mxu0 %v7500_v62  ;;  %5638 = vmatpush.bf16.msra.mxu3 %v7524_v33  ;;  %v7547_v62 = vld [vmem:[%s10497_s3 + $0x880] sm:$0xff]  ;;  %v7570_v33 = vld [vmem:[%s10497_s3 + $0x938] sm:$0xff] }
 0x5dd   :  { %5612 = vmatpush.bf16.msra.mxu1 %v7508_v10  ;;  %5625 = vmatpush.bf16.msra.mxu2 %v7516_v26  ;;  %v7555_v10 = vld [vmem:[%s10497_s3 + $0x8c0] sm:$0xff]  ;;  %v3272_v26 = vunpack.c.l.b16 %v2588_v16 }
 0x5df   :  { %v3311_v6 = vpack.c.b16 %v3272_v26, %v3272_v26 }
 0x5e0   :  { %5600 = vmatpush.bf16.msra.mxu0 %v7499_v51  ;;  %5639 = vmatpush.bf16.msra.mxu3 %v7523_v35  ;;  %v5394_v58 = vpop.f32.mrf.mxu0  ;;  %v7586_v51 = vld [vmem:[%s10497_s3 + $0x9b8] sm:$0xff] }
 0x5e1   :  { %5613 = vmatpush.bf16.msra.mxu1 %v7507_v52  ;;  %5626 = vmatpush.bf16.msra.mxu2 %v7515_v8  ;;  %v5395_v59 = vadd.f32 %v5394_v58, %v10263_v17  ;;  %v2589_v17 = vld [vmem:[#allocation2 + $0x88] sm:$0xff]  ;;  %v3312_v8 = vpack.c.b16 %v3273_v43, %v3273_v43 }
 0x5e2   :  { %v3274_v44 = vunpack.c.l.b16 %v2589_v17  ;;  %v3275_v52 = vunpack.c.h.b16 %v2589_v17 }
 0x5e3   :  { %5601 = vmatmul.bf16.vlgmr.msra.gmra.mxu0 %v3307_v47  ;;  %5640 = vmatmul.bf16.vlgmr.msra.gmra.mxu3 %v3310_v45  ;;  %v5407_v56 = vpop.f32.mrf.mxu1 }
 0x5e4   :  { %5645 = vmatpush.bf16.msrb.mxu0 %v7538_v42  ;;  %5684 = vmatpush.bf16.msrb.mxu3 %v7562_v9  ;;  %v5408_v13 = vadd.f32 %v5407_v56, %v5395_v59  ;;  %v3313_v35 = vpack.c.b16 %v3274_v44, %v3274_v44  ;;  %v7569_v42 = vld [vmem:[%s10497_s3 + $0x930] sm:$0xff]  ;;  %v3314_v60 = vpack.c.b16 %v3275_v52, %v3275_v52  ;;  %v7576_v9 = vld [vmem:[%s10497_s3 + $0x968] sm:$0xff] }
 0x5e5   :  { %5658 = vmatpush.bf16.msrb.mxu1 %v7546_v53  ;;  %5671 = vmatpush.bf16.msrb.mxu2 %v7554_v12  ;;  %v7577_v53 = vld [vmem:[%s10497_s3 + $0x970] sm:$0xff]  ;;  %v7568_v12 = vld [vmem:[%s10497_s3 + $0x928] sm:$0xff] }
 0x5e6   :  { %5614 = vmatmul.bf16.vlgmr.msra.gmra.mxu1 %v3308_v63  ;;  %5627 = vmatmul.bf16.vlgmr.msra.gmra.mxu2 %v3309_v7  ;;  %v5433_v21 = vpop.f32.mrf.mxu3  ;;  %v7583_v7 = vld [vmem:[%s10497_s3 + $0x9a0] sm:$0xff]  ;;  %v7565_v59 = vld [vmem:[%s10497_s3 + $0x910] sm:$0xff] }
 0x5e8   :  { %5646 = vmatpush.bf16.msrb.mxu0 %v7537_v48  ;;  %5685 = vmatpush.bf16.msrb.mxu3 %v7561_v54  ;;  %v5396_v23 = vpop.f32.mrf.mxu0  ;;  %v7567_v48 = vld [vmem:[%s10497_s3 + $0x920] sm:$0xff]  ;;  %v7574_v54 = vld [vmem:[%s10497_s3 + $0x958] sm:$0xff] }
 0x5e9   :  { %5659 = vmatpush.bf16.msrb.mxu1 %v7545_v49  ;;  %5672 = vmatpush.bf16.msrb.mxu2 %v7553_v50  ;;  %v5420_v20 = vpop.f32.mrf.mxu2  ;;  %v7575_v49 = vld [vmem:[%s10497_s3 + $0x960] sm:$0xff]  ;;  %v7566_v50 = vld [vmem:[%s10497_s3 + $0x918] sm:$0xff] }
 0x5ea   :  { %v5421_v22 = vadd.f32 %v5420_v20, %v5408_v13  ;;  %v7572_v13 = vld [vmem:[%s10497_s3 + $0x948] sm:$0xff]  ;;  %v2591_v20 = vld [vmem:[#allocation2 + $0x98] sm:$0xf]  ;;  %v7579_v23 = vld [vmem:[%s10497_s3 + $0x980] sm:$0xff] }
 0x5eb   :  { %v5409_v27 = vpop.f32.mrf.mxu1 }
 0x5ec   :  { %5647 = vmatpush.bf16.msrb.mxu0 %v7536_v2  ;;  %5686 = vmatpush.bf16.msrb.mxu3 %v7560_v57  ;;  %v5434_v30 = vadd.f32 %v5433_v21, %v5421_v22  ;;  %v7582_v2 = vld [vmem:[%s10497_s3 + $0x998] sm:$0xff]  ;;  %v7563_v21 = vld [vmem:[%s10497_s3 + $0x900] sm:$0xff] }
 0x5ed   :  { %5660 = vmatpush.bf16.msrb.mxu1 %v7544_v4  ;;  %5673 = vmatpush.bf16.msrb.mxu2 %v7552_v55  ;;  %v7571_v22 = vld [vmem:[%s10497_s3 + $0x940] sm:$0xff] }
 0x5ee   :  { %v5435_v41 = vpop.f32.mrf.mxu3 }
 0x5f0   :  { %5648 = vmatpush.bf16.msrb.mxu0 %v7535_v0  ;;  %5687 = vmatpush.bf16.msrb.mxu3 %v7559_v11  ;;  %v7573_v0 = vld [vmem:[%s10497_s3 + $0x950] sm:$0xff]  ;;  %v7564_v11 = vld [vmem:[%s10497_s3 + $0x908] sm:$0xff] }
 0x5f1   :  { %5661 = vmatpush.bf16.msrb.mxu1 %v7543_v1  ;;  %5674 = vmatpush.bf16.msrb.mxu2 %v7551_v5  ;;  %v5422_v40 = vpop.f32.mrf.mxu2  ;;  %v7581_v5 = vld [vmem:[%s10497_s3 + $0x990] sm:$0xff] }
 0x5f4   :  { %5649 = vmatpush.bf16.msrb.mxu0 %v7534_v14  ;;  %5688 = vmatpush.bf16.msrb.mxu3 %v7558_v19  ;;  %v7580_v14 = vld [vmem:[%s10497_s3 + $0x988] sm:$0xff]  ;;  %v2590_v19 = vld [vmem:[#allocation2 + $0x90] sm:$0xff] }
 0x5f5   :  { %5662 = vmatpush.bf16.msrb.mxu1 %v7542_v15  ;;  %5675 = vmatpush.bf16.msrb.mxu2 %v7550_v18  ;;  %v3276_v27 = vunpack.c.l.b16 %v2590_v19 }
 0x5f8   :  { %5650 = vmatpush.bf16.msrb.mxu0 %v7533_v28  ;;  %5689 = vmatpush.bf16.msrb.mxu3 %v7557_v32  ;;  %v3277_v28 = vunpack.c.h.b16 %v2590_v19 }
 0x5f9   :  { %5663 = vmatpush.bf16.msrb.mxu1 %v7541_v29  ;;  %5676 = vmatpush.bf16.msrb.mxu2 %v7549_v31  ;;  %v3278_v29 = vunpack.c.l.b16 %v2591_v20 }
 0x5fa   :  { %v3316_v31 = vpack.c.b16 %v3277_v28, %v3277_v28 }
 0x5fb   :  { %v3317_v32 = vpack.c.b16 %v3278_v29, %v3278_v29 }
 0x5fc   :  { %5651 = vmatpush.bf16.msrb.mxu0 %v7532_v36  ;;  %5690 = vmatpush.bf16.msrb.mxu3 %v7556_v39 }
 0x5fd   :  { %5664 = vmatpush.bf16.msrb.mxu1 %v7540_v37  ;;  %5677 = vmatpush.bf16.msrb.mxu2 %v7548_v38 }
 0x600   :  { %5652 = vmatpush.bf16.msrb.mxu0 %v7531_v24  ;;  %5691 = vmatpush.bf16.msrb.mxu3 %v7555_v10  ;;  %v5446_v46 = vpop.f32.mrf.mxu0 }
 0x601   :  { %5665 = vmatpush.bf16.msrb.mxu1 %v7539_v25  ;;  %5678 = vmatpush.bf16.msrb.mxu2 %v7547_v62  ;;  %v5447_v63 = vadd.f32 %v5446_v46, %v5434_v30  ;;  %v3315_v30 = vpack.c.b16 %v3276_v27, %v3276_v27 }
 0x603   :  { %5653 = vmatmul.bf16.vlgmr.msrb.gmra.mxu0 %v3311_v6  ;;  %5692 = vmatmul.bf16.vlgmr.msrb.gmra.mxu3 %v3314_v60  ;;  %v5459_v47 = vpop.f32.mrf.mxu1 }
 0x604   :  { %5697 = vmatpush.bf16.msra.mxu0 %v7570_v33  ;;  %5666 = vmatmul.bf16.vlgmr.msrb.gmra.mxu1 %v3312_v8  ;;  %v5460_v45 = vadd.f32 %v5459_v47, %v5447_v63  ;;  %v7593_v63 = vld [vmem:[%s10500_s5 + $0x30] sm:$0xff] }
 0x605   :  { %5710 = vmatpush.bf16.msra.mxu1 %v7578_v34  ;;  %5723 = vmatpush.bf16.msra.mxu2 %v7586_v51 }
 0x606   :  { %5679 = vmatmul.bf16.vlgmr.msrb.gmra.mxu2 %v3313_v35  ;;  %v5485_v55 = vpop.f32.mrf.mxu3 }
 0x608   :  { %5698 = vmatpush.bf16.msra.mxu0 %v7569_v42  ;;  %v5448_v58 = vpop.f32.mrf.mxu0 }
 0x609   :  { %5711 = vmatpush.bf16.msra.mxu1 %v7577_v53  ;;  %5724 = vmatpush.bf16.msra.mxu2 %v7585_v61  ;;  %v5472_v4 = vpop.f32.mrf.mxu2  ;;  %v7587_v58 = vld [vmem:[%s10500_s5] sm:$0xff] }
 0x60a   :  { %v5473_v57 = vadd.f32 %v5472_v4, %v5460_v45  ;;  %v7591_v45 = vld [vmem:[%s10500_s5 + $0x20] sm:$0xff] }
 0x60b   :  { %v5461_v56 = vpop.f32.mrf.mxu1 }
 0x60c   :  { %5699 = vmatpush.bf16.msra.mxu0 %v7568_v12  ;;  %v5486_v1 = vadd.f32 %v5485_v55, %v5473_v57  ;;  %v7588_v55 = vld [vmem:[%s10500_s5 + $0x8] sm:$0xff] }
 0x60d   :  { %5712 = vmatpush.bf16.msra.mxu1 %v7576_v9  ;;  %5725 = vmatpush.bf16.msra.mxu2 %v7584_v3  ;;  %v7594_v3 = vld [vmem:[%s10500_s5 + $0x38] sm:$0xff] }
 0x60e   :  { %v5487_v18 = vpop.f32.mrf.mxu3  ;;  %5806 = vmatpush.bf16.msra.mxu3 %v7594_v3 }
 0x610   :  { %5700 = vmatpush.bf16.msra.mxu0 %v7567_v48  ;;  %v7592_v48 = vld [vmem:[%s10500_s5 + $0x28] sm:$0xff] }
 0x611   :  { %5713 = vmatpush.bf16.msra.mxu1 %v7575_v49  ;;  %5726 = vmatpush.bf16.msra.mxu2 %v7583_v7  ;;  %v5474_v15 = vpop.f32.mrf.mxu2 }
 0x612   :  { %5807 = vmatpush.bf16.msra.mxu3 %v7593_v63 }
 0x614   :  { %5701 = vmatpush.bf16.msra.mxu0 %v7566_v50  ;;  %v7590_v50 = vld [vmem:[%s10500_s5 + $0x18] sm:$0xff] }
 0x615   :  { %5714 = vmatpush.bf16.msra.mxu1 %v7574_v54  ;;  %5727 = vmatpush.bf16.msra.mxu2 %v7582_v2  ;;  %v7589_v54 = vld [vmem:[%s10500_s5 + $0x10] sm:$0xff] }
 0x616   :  { %5808 = vmatpush.bf16.msra.mxu3 %v7592_v48 }
 0x618   :  { %5702 = vmatpush.bf16.msra.mxu0 %v7565_v59 }
 0x619   :  { %5715 = vmatpush.bf16.msra.mxu1 %v7573_v0  ;;  %5728 = vmatpush.bf16.msra.mxu2 %v7581_v5 }
 0x61a   :  { %5809 = vmatpush.bf16.msra.mxu3 %v7591_v45 }
 0x61c   :  { %5703 = vmatpush.bf16.msra.mxu0 %v7564_v11 }
 0x61d   :  { %5716 = vmatpush.bf16.msra.mxu1 %v7572_v13  ;;  %5729 = vmatpush.bf16.msra.mxu2 %v7580_v14 }
 0x61e   :  { %5810 = vmatpush.bf16.msra.mxu3 %v7590_v50 }
 0x620   :  { %5704 = vmatpush.bf16.msra.mxu0 %v7563_v21  ;;  %v5498_v36 = vpop.f32.mrf.mxu0 }
 0x621   :  { %5717 = vmatpush.bf16.msra.mxu1 %v7571_v22  ;;  %5730 = vmatpush.bf16.msra.mxu2 %v7579_v23  ;;  %v5499_v38 = vadd.f32 %v5498_v36, %v5486_v1 }
 0x622   :  { %5811 = vmatpush.bf16.msra.mxu3 %v7589_v54 }
 0x623   :  { %5705 = vmatmul.bf16.vlgmr.msra.gmra.mxu0 %v3315_v30  ;;  %v5511_v37 = vpop.f32.mrf.mxu1 }
 0x624   :  { %5718 = vmatmul.bf16.vlgmr.msra.gmra.mxu1 %v3316_v31  ;;  %5731 = vmatmul.bf16.vlgmr.msra.gmra.mxu2 %v3317_v32  ;;  %v5512_v39 = vadd.f32 %v5511_v37, %v5499_v38 }
 0x626   :  { %v5537_v41 = vpop.f32.mrf.mxu3  ;;  %5812 = vmatpush.bf16.msra.mxu3 %v7588_v55 }
 0x628   :  { %v5500_v17 = vpop.f32.mrf.mxu0 }
 0x629   :  { %v5524_v40 = vpop.f32.mrf.mxu2 }
 0x62a   :  { %v5525_v16 = vadd.f32 %v5524_v40, %v5512_v39  ;;  %5813 = vmatpush.bf16.msra.mxu3 %v7587_v58  ;;  %v7596_v39 = vld [vmem:[%s10499_s6] ss:$0 sm:$0xff] }
 0x62b   :  { %v5513_v24 = vpop.f32.mrf.mxu1 }
 0x62c   :  { %v5538_v25 = vadd.f32 %v5537_v41, %v5525_v16 }
 0x62e   :  { %v5539_v10 = vpop.f32.mrf.mxu3 }
 0x631   :  { %v5526_v62 = vpop.f32.mrf.mxu2 }
 0x640   :  { %v5550_v26 = vpop.f32.mrf.mxu0 }
 0x641   :  { %v5551_v34 = vadd.f32 %v5550_v26, %v5538_v25 }
 0x643   :  { %v5563_v33 = vpop.f32.mrf.mxu1 }
 0x644   :  { %v5564_v43 = vadd.f32 %v5563_v33, %v5551_v34 }
 0x646   :  { %v5589_v51 = vpop.f32.mrf.mxu3 }
 0x648   :  { %v5552_v6 = vpop.f32.mrf.mxu0 }
 0x649   :  { %v5576_v44 = vpop.f32.mrf.mxu2 }
 0x64a   :  { %v5577_v52 = vadd.f32 %v5576_v44, %v5564_v43 }
 0x64b   :  { %v5565_v8 = vpop.f32.mrf.mxu1 }
 0x64c   :  { %v5590_v35 = vadd.f32 %v5589_v51, %v5577_v52 }
 0x64e   :  { %v5591_v53 = vpop.f32.mrf.mxu3 }
 0x651   :  { %v5578_v42 = vpop.f32.mrf.mxu2 }
 0x660   :  { %v5602_v60 = vpop.f32.mrf.mxu0 }
 0x661   :  { %v5603_v56 = vadd.f32 %v5602_v60, %v5590_v35 }
 0x663   :  { %v5615_v61 = vpop.f32.mrf.mxu1 }
 0x664   :  { %v5616_v5 = vadd.f32 %v5615_v61, %v5603_v56 }
 0x666   :  { %v5641_v9 = vpop.f32.mrf.mxu3 }
 0x668   :  { %v5604_v46 = vpop.f32.mrf.mxu0 }
 0x669   :  { %v5628_v12 = vpop.f32.mrf.mxu2 }
 0x66a   :  { %v5629_v11 = vadd.f32 %v5628_v12, %v5616_v5 }
 0x66b   :  { %v5617_v47 = vpop.f32.mrf.mxu1 }
 0x66c   :  { %v5642_v15 = vadd.f32 %v5641_v9, %v5629_v11 }
 0x66e   :  { %v5643_v7 = vpop.f32.mrf.mxu3 }
 0x671   :  { %v5630_v49 = vpop.f32.mrf.mxu2 }
 0x680   :  { %v5654_v2 = vpop.f32.mrf.mxu0 }
 0x681   :  { %v5667_v4 = vpop.f32.mrf.mxu1  ;;  %v5655_v18 = vadd.f32 %v5654_v2, %v5642_v15 }
 0x683   :  { %v5668_v19 = vadd.f32 %v5667_v4, %v5655_v18 }
 0x686   :  { %v5693_v59 = vpop.f32.mrf.mxu3 }
 0x688   :  { %v5656_v0 = vpop.f32.mrf.mxu0 }
 0x689   :  { %v5680_v57 = vpop.f32.mrf.mxu2  ;;  %v5669_v1 = vpop.f32.mrf.mxu1 }
 0x68a   :  { %v5681_v20 = vadd.f32 %v5680_v57, %v5668_v19 }
 0x68c   :  { %v5694_v21 = vadd.f32 %v5693_v59, %v5681_v20 }
 0x68e   :  { %v5695_v14 = vpop.f32.mrf.mxu3 }
 0x691   :  { %v5682_v13 = vpop.f32.mrf.mxu2 }
 0x6a0   :  { %v5706_v22 = vpop.f32.mrf.mxu0 }
 0x6a1   :  { %v5719_v23 = vpop.f32.mrf.mxu1  ;;  %v5707_v27 = vadd.f32 %v5706_v22, %v5694_v21 }
 0x6a3   :  { %v5720_v28 = vadd.f32 %v5719_v23, %v5707_v27 }
 0x6a7   :  { %v5732_v29 = vpop.f32.mrf.mxu2 }
 0x6a8   :  { %v5733_v30 = vadd.f32 %v5732_v29, %v5720_v28  ;;  %v5708_v31 = vpop.f32.mrf.mxu0 }
 0x6a9   :  { %v5721_v32 = vpop.f32.mrf.mxu1 }
 0x6aa   :  { %v5736_v36 = vmax.f32 %v5733_v30, 0.0 }
 0x6ac   :  { %v5737_v37 = vpack.c.bf16 %v5736_v36, %v5736_v36 }
 0x6ae   :  { %5814 = vmatmul.bf16.vlgmr.msra.gmra.mxu3 %v5737_v37 }
 0x6af   :  { %v5734_v38 = vpop.f32.mrf.mxu2 }
 0x731   :  { %v5815_v40 = vpop.f32.mrf.mxu3 }
 0x732   :  { %v5816_v41 = vadd.f32 %v7596_v39, %v5815_v40 }
 0x734   :  { %5819 = vst [vmem:[%s10501_s7] sm:$0xff] %v5816_v41 }
 0x739   :  { %v5817_v16 = vpop.f32.mrf.mxu3 }

</bundles_post_ra>
